<compile_context>
chip_gen: v6e
topology: v6e:2x2x1
jax: 0.10.0
libtpu: 0.0.40
codegen_flags: <defaults>
</compile_context>

<pallas_src>
import functools
import math

import jax
import jax.numpy as jnp
from jax import lax
from jax.experimental import pallas as pl
from jax.experimental.pallas import tpu as pltpu


_LANE = 128
_SUBLANE = 8
_BN_EPS = 1e-5


def _round_up(x, m):
    return ((x + m - 1) // m) * m


def _pad_c(c):
    """Channel padding: sublane (8) granularity for narrow dims, lane (128)
    for wide dims (lane-dense stores without 32x waste on tiny layers)."""
    return _round_up(c, _SUBLANE) if c < _LANE else _round_up(c, _LANE)


def _compiler_params():
    try:
        cap = int(pltpu.get_tpu_info().vmem_capacity_bytes)
        vmem_limit = min(cap * 3 // 4, 100 * 1024 * 1024)   # ~96M v5e/v6e, 48M v7x
    except Exception:  # best-effort hardware query; fall back to v7x-safe cap
        vmem_limit = 48 * 1024 * 1024
    return pltpu.CompilerParams(
        dimension_semantics=("parallel",),       # batch axis -> megacore on v7x
        vmem_limit_bytes=vmem_limit,
    )


# ---------------------------------------------------------------------------
# Fused Pallas kernel
# ---------------------------------------------------------------------------
def _zero_halo(ref, d, h, w):
    """Zero only the halo border of a (h+2d, w+2d, c) padded scratch plane."""
    hp, wp, c = ref.shape
    z_row = jnp.zeros((d, wp, c), ref.dtype)
    ref[0:d, :, :] = z_row
    ref[d + h:d + h + d, :, :] = z_row
    z_col = jnp.zeros((h, d, c), ref.dtype)
    ref[d:d + h, 0:d, :] = z_col
    ref[d:d + h, d + w:d + w + d, :] = z_col


def _resblock_kernel(*refs, stride, dil_a, dil_b, same_shape, want_xbn):
    """Fused ResBlock forward for one batch element per grid step."""
    it = iter(refs)
    x_ref = next(it)                            # (1, H, W, Cpi)  f32
    scale_a_ref = next(it)                      # (1, Cpi)        folded BN
    bias_a_ref = next(it)                       # (1, Cpi)
    w2a_ref = next(it)                          # (9, Cpi, Cpm)   compute dtype
    scale_b_ref = next(it)                      # (1, Cpm)
    bias_b_ref = next(it)                       # (1, Cpm)
    w2b_ref = next(it)                          # (9, Cpm, Cpo)
    w1_ref = None if same_shape else next(it)   # (Cpi, Cpo)
    out_ref = next(it)                          # (1, Ho, Wo, Cpo)
    xbn_ref = next(it) if want_xbn else None    # (1, H, W, Cpi)
    pad_a = next(it)                            # (H+2da, W+2da, Cpi) scratch
    pad_b = next(it)                            # (Ho+2db, Wo+2db, Cpm) scratch

    H, W, Cpi = x_ref.shape[1], x_ref.shape[2], x_ref.shape[3]
    Ho, Wo, Cpo = out_ref.shape[1], out_ref.shape[2], out_ref.shape[3]
    Cpm = w2a_ref.shape[2]
    Mo = Ho * Wo

    # Re-zero only the thin halo border; interiors are fully rewritten below.
    _zero_halo(pad_a, dil_a, H, W)
    _zero_halo(pad_b, dil_b, Ho, Wo)

    # ---- BN(2a) + ReLU prologue (f32 elementwise), single read of x ----
    xv = x_ref[...]
    ya = jnp.maximum(
        xv * scale_a_ref[...].reshape(1, 1, 1, Cpi)
        + bias_a_ref[...].reshape(1, 1, 1, Cpi), 0.0)
    if want_xbn:
        xbn_ref[...] = ya.astype(xbn_ref.dtype)

    # MXU operands live in the (bf16 by default) scratch; cast happens once.
    pad_a[dil_a:dil_a + H, dil_a:dil_a + W, :] = ya[0].astype(pad_a.dtype)
    xa = pad_a[...]

    # ---- conv_branch2a: 3x3 (stride, dil_a) as 9 accumulated MXU dots ----
    acc = jnp.zeros((Mo, Cpm), jnp.float32)
    for t in range(9):
        kh, kw = t // 3, t % 3
        h0, w0 = kh * dil_a, kw * dil_a
        tap = lax.slice(
            xa, (h0, w0, 0),
            (h0 + (Ho - 1) * stride + 1, w0 + (Wo - 1) * stride + 1, Cpi),
            (stride, stride, 1))
        acc = acc + jnp.dot(tap.reshape(Mo, Cpi), w2a_ref[t],
                            preferred_element_type=jnp.float32)

    # ---- BN(2b1) + ReLU on the f32 accumulator ----
    yb = jnp.maximum(acc * scale_b_ref[...] + bias_b_ref[...], 0.0)
    pad_b[dil_b:dil_b + Ho, dil_b:dil_b + Wo, :] = (
        yb.reshape(Ho, Wo, Cpm).astype(pad_b.dtype))
    xb = pad_b[...]

    # ---- conv_branch2b1: 3x3 (stride 1, dil_b), 9 accumulated MXU dots ----
    acc2 = jnp.zeros((Mo, Cpo), jnp.float32)
    for t in range(9):
        kh, kw = t // 3, t % 3
        h0, w0 = kh * dil_b, kw * dil_b
        tap = lax.slice(xb, (h0, w0, 0), (h0 + Ho, w0 + Wo, Cpm))
        acc2 = acc2 + jnp.dot(tap.reshape(Mo, Cpm), w2b_ref[t],
                              preferred_element_type=jnp.float32)

    # ---- residual shortcut (identity or 1x1 strided projection) ----
    if same_shape:
        shortcut = xv.reshape(Mo, Cpo).astype(jnp.float32)
    else:
        y0 = ya[0]
        if stride != 1:
            y0 = lax.slice(y0, (0, 0, 0),
                           ((Ho - 1) * stride + 1, (Wo - 1) * stride + 1, Cpi),
                           (stride, stride, 1))
        shortcut = jnp.dot(y0.reshape(Mo, Cpi).astype(w1_ref.dtype), w1_ref[...],
                           preferred_element_type=jnp.float32)

    out_ref[...] = (acc2 + shortcut).reshape(1, Ho, Wo, Cpo).astype(out_ref.dtype)


# ---------------------------------------------------------------------------
# pallas_call wrapper (grid over batch; weights stay VMEM-resident)
# ---------------------------------------------------------------------------
def _fused_resblock(x, packed, cfg, want_xbn):
    N, H, W, Cpi = x.shape
    stride = cfg["stride"]
    da = cfg["first_dilation"]
    db = cfg["dilation"]
    same_shape = cfg["same_shape"]
    Ho = (H - 1) // stride + 1
    Wo = (W - 1) // stride + 1
    Cpm = packed["w2a"].shape[2]
    Cpo = packed["w2b"].shape[2]
    cdt = packed["w2a"].dtype

    resident = pl.Buffered(1)   # constant index_map -> single-buffered, DMA'd once
    inputs = [x, packed["scale_a"], packed["bias_a"], packed["w2a"],
              packed["scale_b"], packed["bias_b"], packed["w2b"]]
    in_specs = [
        pl.BlockSpec((1, H, W, Cpi), lambda n: (n, 0, 0, 0)),
        pl.BlockSpec((1, Cpi), lambda n: (0, 0), pipeline_mode=resident),
        pl.BlockSpec((1, Cpi), lambda n: (0, 0), pipeline_mode=resident),
        pl.BlockSpec((9, Cpi, Cpm), lambda n: (0, 0, 0), pipeline_mode=resident),
        pl.BlockSpec((1, Cpm), lambda n: (0, 0), pipeline_mode=resident),
        pl.BlockSpec((1, Cpm), lambda n: (0, 0), pipeline_mode=resident),
        pl.BlockSpec((9, Cpm, Cpo), lambda n: (0, 0, 0), pipeline_mode=resident),
    ]
    if not same_shape:
        inputs.append(packed["w1"])
        in_specs.append(
            pl.BlockSpec((Cpi, Cpo), lambda n: (0, 0), pipeline_mode=resident))

    out_shapes = [jax.ShapeDtypeStruct((N, Ho, Wo, Cpo), x.dtype)]
    out_specs = [pl.BlockSpec((1, Ho, Wo, Cpo), lambda n: (n, 0, 0, 0))]
    if want_xbn:
        out_shapes.append(jax.ShapeDtypeStruct((N, H, W, Cpi), x.dtype))
        out_specs.append(pl.BlockSpec((1, H, W, Cpi), lambda n: (n, 0, 0, 0)))

    Mo = Ho * Wo
    flops = 2 * N * Mo * 9 * (Cpi * Cpm + Cpm * Cpo)
    if not same_shape:
        flops += 2 * N * Mo * Cpi * Cpo
    bytes_accessed = sum(int(a.size) * a.dtype.itemsize for a in inputs)
    bytes_accessed += sum(
        math.prod(s.shape) * x.dtype.itemsize for s in out_shapes)

    kern = functools.partial(_resblock_kernel, stride=stride, dil_a=da,
                             dil_b=db, same_shape=same_shape, want_xbn=want_xbn)
    return pl.pallas_call(
        kern,
        out_shape=tuple(out_shapes),
        grid_spec=pltpu.PrefetchScalarGridSpec(
            num_scalar_prefetch=0,
            grid=(N,),
            in_specs=in_specs,
            out_specs=tuple(out_specs),
            scratch_shapes=[
                pltpu.VMEM((H + 2 * da, W + 2 * da, Cpi), cdt),
                pltpu.VMEM((Ho + 2 * db, Wo + 2 * db, Cpm), cdt),
            ],
        ),
        compiler_params=_compiler_params(),
        cost_estimate=pl.CostEstimate(flops=int(flops), transcendentals=0,
                                      bytes_accessed=int(bytes_accessed)),
    )(*inputs)


# ---------------------------------------------------------------------------
# Parameter init (PyTorch-style raw params) + one-time packing for the kernel
# ---------------------------------------------------------------------------
def _bn_params(key, c):
    k1, k2 = jax.random.split(key)
    return {
        "gamma": 1.0 + 0.1 * jax.random.normal(k1, (c,), jnp.float32),
        "beta": 0.1 * jax.random.normal(k2, (c,), jnp.float32),
        "mean": 0.05 * jnp.arange(c, dtype=jnp.float32),
        "var": 1.0 + 0.1 * jnp.arange(c, dtype=jnp.float32),
    }


def init_resblock(key, in_channels, mid_channels, out_channels,
                  stride=1, first_dilation=None, dilation=1):
    same_shape = (in_channels == out_channels) and (stride == 1)
    if first_dilation is None:
        first_dilation = dilation
    keys = jax.random.split(key, 5)
    params = {
        "bn_branch2a": _bn_params(keys[0], in_channels),
        "conv_branch2a_w": 0.1 * jax.random.normal(          # OIHW (raw, PyTorch)
            keys[1], (mid_channels, in_channels, 3, 3), jnp.float32),
        "bn_branch2b1": _bn_params(keys[2], mid_channels),
        "conv_branch2b1_w": 0.1 * jax.random.normal(
            keys[3], (out_channels, mid_channels, 3, 3), jnp.float32),
    }
    if not same_shape:
        params["conv_branch1_w"] = 0.1 * jax.random.normal(
            keys[4], (out_channels, in_channels, 1, 1), jnp.float32)
    cfg = {"same_shape": same_shape, "stride": stride,
           "first_dilation": first_dilation, "dilation": dilation,
           "in_channels": in_channels, "mid_channels": mid_channels,
           "out_channels": out_channels}
    return params, cfg


def prepare_params(params, cfg, compute_dtype=jnp.bfloat16):
    """One-time packing: fold BN (scale stays f32), OIHW->(9, I, O) tap-major
    weights in the MXU compute dtype, pad channel dims per _pad_c."""
    Cin, Cmid, Cout = cfg["in_channels"], cfg["mid_channels"], cfg["out_channels"]
    Cpi, Cpm, Cpo = _pad_c(Cin), _pad_c(Cmid), _pad_c(Cout)

    def fold_bn(p, c, cp):
        inv = p["gamma"] / jnp.sqrt(p["var"] + _BN_EPS)
        scale = jnp.pad(inv, (0, cp - c))
        bias = jnp.pad(p["beta"] - p["mean"] * inv, (0, cp - c))
        return (scale.reshape(1, cp).astype(jnp.float32),
                bias.reshape(1, cp).astype(jnp.float32))

    def pack3x3(w_oihw, ci, cpi, co, cpo):
        w = jnp.transpose(w_oihw, (2, 3, 1, 0))                    # HWIO
        w = jnp.pad(w, ((0, 0), (0, 0), (0, cpi - ci), (0, cpo - co)))
        return w.reshape(9, cpi, cpo).astype(compute_dtype)        # tap-major

    packed = {}
    packed["scale_a"], packed["bias_a"] = fold_bn(params["bn_branch2a"], Cin, Cpi)
    packed["scale_b"], packed["bias_b"] = fold_bn(params["bn_branch2b1"], Cmid, Cpm)
    packed["w2a"] = pack3x3(params["conv_branch2a_w"], Cin, Cpi, Cmid, Cpm)
    packed["w2b"] = pack3x3(params["conv_branch2b1_w"], Cmid, Cpm, Cout, Cpo)
    if not cfg["same_shape"]:
        w1 = jnp.transpose(params["conv_branch1_w"], (2, 3, 1, 0)).reshape(Cin, Cout)
        packed["w1"] = jnp.pad(
            w1, ((0, Cpi - Cin), (0, Cpo - Cout))).astype(compute_dtype)
    return packed


# ---------------------------------------------------------------------------
# Forward (PyTorch module semantics: NCHW in / NCHW out)
# ---------------------------------------------------------------------------
def resblock_forward(packed, cfg, x_nchw, get_x_bn_relu=False):
    N, C, H, W = x_nchw.shape
    Cpi = packed["scale_a"].shape[1]
    x = jnp.transpose(x_nchw, (0, 2, 3, 1)).astype(jnp.float32)    # NHWC
    if Cpi != C:
        x = jnp.pad(x, ((0, 0), (0, 0), (0, 0), (0, Cpi - C)))

    outs = _fused_resblock(x, packed, cfg, want_xbn=get_x_bn_relu)
    out_nchw = jnp.transpose(outs[0][..., :cfg["out_channels"]], (0, 3, 1, 2))
    if get_x_bn_relu:
        xbn_nchw = jnp.transpose(outs[1][..., :cfg["in_channels"]], (0, 3, 1, 2))
        return out_nchw, xbn_nchw
    return out_nchw


# ---------------------------------------------------------------------------
# Pure-JAX reference (for correctness check)
# ---------------------------------------------------------------------------
def _bn_relu_ref(x_nchw, p):
    c = x_nchw.shape[1]
    sh = (1, c, 1, 1)
    y = (x_nchw - p["mean"].reshape(sh)) / jnp.sqrt(p["var"].reshape(sh) + _BN_EPS)
    y = y * p["gamma"].reshape(sh) + p["beta"].reshape(sh)
    return jnp.maximum(y, 0.0)


def _conv_ref(x_nchw, w_oihw, stride, padding, dilation):
    return lax.conv_general_dilated(
        x_nchw, w_oihw, window_strides=(stride, stride),
        padding=[(padding, padding), (padding, padding)],
        rhs_dilation=(dilation, dilation),
        dimension_numbers=("NCHW", "OIHW", "NCHW"))


def resblock_ref(params, cfg, x_nchw):
    branch2 = _bn_relu_ref(x_nchw, params["bn_branch2a"])
    x_bn_relu = branch2
    if not cfg["same_shape"]:
        branch1 = _conv_ref(branch2, params["conv_branch1_w"], cfg["stride"], 0, 1)
    else:
        branch1 = x_nchw
    branch2 = _conv_ref(branch2, params["conv_branch2a_w"], cfg["stride"],
                        cfg["first_dilation"], cfg["first_dilation"])
    branch2 = _bn_relu_ref(branch2, params["bn_branch2b1"])
    branch2 = _conv_ref(branch2, params["conv_branch2b1_w"], 1,
                        cfg["dilation"], cfg["dilation"])
    return branch1 + branch2, x_bn_relu


# ---------------------------------------------------------------------------
if __name__ == "__main__":
    key = jax.random.PRNGKey(0)
    keys = jax.random.split(key, 4)

    # Config 1: projection shortcut (in != out channels), get_x_bn_relu=True.
    N, Cin, H, W = 2, 4, 16, 16
    Cmid, Cout = 4, 8
    x1 = jax.random.normal(keys[0], (N, Cin, H, W), jnp.float32)
    params1, cfg1 = init_resblock(keys[1], Cin, Cmid, Cout, stride=1, dilation=1)
    ref_out1, ref_xbn1 = resblock_ref(params1, cfg1, x1)

    # (a) f32 MXU path: tight numerical check.
    packed1_f32 = prepare_params(params1, cfg1, compute_dtype=jnp.float32)
    out1, xbn1 = jax.block_until_ready(
        resblock_forward(packed1_f32, cfg1, x1, get_x_bn_relu=True))
    assert out1.shape == (N, Cout, H, W)
    assert xbn1.shape == (N, Cin, H, W)
    assert jnp.allclose(out1, ref_out1, atol=1e-3, rtol=1e-3)
    assert jnp.allclose(xbn1, ref_xbn1, atol=1e-3, rtol=1e-3)

    # (b) bf16 MXU operands (v6e/v7x fast path), f32 accumulation: looser check.
    packed1_bf16 = prepare_params(params1, cfg1)   # default bf16
    out1b, xbn1b = jax.block_until_ready(
        resblock_forward(packed1_bf16, cfg1, x1, get_x_bn_relu=True))
    assert jnp.allclose(out1b, ref_out1, atol=5e-2, rtol=5e-2)
    assert jnp.allclose(xbn1b, ref_xbn1, atol=1e-3, rtol=1e-3)

    # Config 2: identity shortcut (same_shape), dilation=2, bf16 path.
    Cin2 = Cmid2 = Cout2 = 8
    x2 = jax.random.normal(keys[2], (N, Cin2, H, W), jnp.float32)
    params2, cfg2 = init_resblock(keys[3], Cin2, Cmid2, Cout2, stride=1, dilation=2)
    packed2 = prepare_params(params2, cfg2)
    out2 = jax.block_until_ready(resblock_forward(packed2, cfg2, x2))
    ref_out2, _ = resblock_ref(params2, cfg2, x2)
    assert out2.shape == (N, Cout2, H, W)
    assert jnp.allclose(out2, ref_out2, atol=5e-2, rtol=5e-2)

    print("KERNEL_OK")
</pallas_src>

<mosaic_0001>
module attributes {stable_mosaic.version = 11 : i64} {
  func.func @_resblock_kernel(%arg0: i32, %arg1: memref<1x16x16x8xf32, #tpu.memory_space<vmem>>, %arg2: memref<1x8xf32, #tpu.memory_space<vmem>>, %arg3: memref<1x8xf32, #tpu.memory_space<vmem>>, %arg4: memref<9x8x8xf32, #tpu.memory_space<vmem>>, %arg5: memref<1x8xf32, #tpu.memory_space<vmem>>, %arg6: memref<1x8xf32, #tpu.memory_space<vmem>>, %arg7: memref<9x8x8xf32, #tpu.memory_space<vmem>>, %arg8: memref<8x8xf32, #tpu.memory_space<vmem>>, %arg9: memref<1x16x16x8xf32, #tpu.memory_space<vmem>>, %arg10: memref<1x16x16x8xf32, #tpu.memory_space<vmem>>, %arg11: memref<18x18x8xf32, #tpu.memory_space<vmem>>, %arg12: memref<18x18x8xf32, #tpu.memory_space<vmem>>) attributes {dimension_semantics = [#tpu.dimension_semantics<parallel>], iteration_bounds = array<i64: 2>, scalar_prefetch = 0 : i64, scratch_operands = 2 : i64, tpu.core_type = #tpu.core_type<tc>, window_params = [{transform_indices = @transform_0, window_bounds = array<i64: 1, 16, 16, 8>}, {pipeline_mode = #tpu.pipeline_mode<synchronous>, transform_indices = @transform_1, window_bounds = array<i64: 1, 8>}, {pipeline_mode = #tpu.pipeline_mode<synchronous>, transform_indices = @transform_2, window_bounds = array<i64: 1, 8>}, {pipeline_mode = #tpu.pipeline_mode<synchronous>, transform_indices = @transform_3, window_bounds = array<i64: 9, 8, 8>}, {pipeline_mode = #tpu.pipeline_mode<synchronous>, transform_indices = @transform_4, window_bounds = array<i64: 1, 8>}, {pipeline_mode = #tpu.pipeline_mode<synchronous>, transform_indices = @transform_5, window_bounds = array<i64: 1, 8>}, {pipeline_mode = #tpu.pipeline_mode<synchronous>, transform_indices = @transform_6, window_bounds = array<i64: 9, 8, 8>}, {pipeline_mode = #tpu.pipeline_mode<synchronous>, transform_indices = @transform_7, window_bounds = array<i64: 8, 8>}, {transform_indices = @transform_8, window_bounds = array<i64: 1, 16, 16, 8>}, {transform_indices = @transform_9, window_bounds = array<i64: 1, 16, 16, 8>}]} {
    %cst = arith.constant 0.000000e+00 : f32
    %0 = vector.broadcast %cst : f32 to vector<1x18x8xf32>
    %c0 = arith.constant 0 : index
    %c0_0 = arith.constant 0 : index
    %c0_1 = arith.constant 0 : index
    %1 = vector.load %arg11[%c0, %c0_0, %c0_1] : memref<18x18x8xf32, #tpu.memory_space<vmem>>, vector<1x18x8xf32>
    tpu.vector_store %arg11[%c0, %c0_0, %c0_1], %0 {strides = array<i32>} : memref<18x18x8xf32, #tpu.memory_space<vmem>>, vector<1x18x8xf32>,
    %c17 = arith.constant 17 : index
    %c0_2 = arith.constant 0 : index
    %c0_3 = arith.constant 0 : index
    %2 = vector.load %arg11[%c17, %c0_2, %c0_3] : memref<18x18x8xf32, #tpu.memory_space<vmem>>, vector<1x18x8xf32>
    tpu.vector_store %arg11[%c17, %c0_2, %c0_3], %0 {strides = array<i32>} : memref<18x18x8xf32, #tpu.memory_space<vmem>>, vector<1x18x8xf32>,
    %cst_4 = arith.constant 0.000000e+00 : f32
    %3 = vector.broadcast %cst_4 : f32 to vector<16x1x8xf32>
    %c1 = arith.constant 1 : index
    %c0_5 = arith.constant 0 : index
    %c0_6 = arith.constant 0 : index
    %4 = vector.load %arg11[%c1, %c0_5, %c0_6] : memref<18x18x8xf32, #tpu.memory_space<vmem>>, vector<16x1x8xf32>
    tpu.vector_store %arg11[%c1, %c0_5, %c0_6], %3 {strides = array<i32>} : memref<18x18x8xf32, #tpu.memory_space<vmem>>, vector<16x1x8xf32>,
    %c1_7 = arith.constant 1 : index
    %c17_8 = arith.constant 17 : index
    %c0_9 = arith.constant 0 : index
    %5 = vector.load %arg11[%c1_7, %c17_8, %c0_9] : memref<18x18x8xf32, #tpu.memory_space<vmem>>, vector<16x1x8xf32>
    tpu.vector_store %arg11[%c1_7, %c17_8, %c0_9], %3 {strides = array<i32>} : memref<18x18x8xf32, #tpu.memory_space<vmem>>, vector<16x1x8xf32>,
    %cst_10 = arith.constant 0.000000e+00 : f32
    %6 = vector.broadcast %cst_10 : f32 to vector<1x18x8xf32>
    %c0_11 = arith.constant 0 : index
    %c0_12 = arith.constant 0 : index
    %c0_13 = arith.constant 0 : index
    %7 = vector.load %arg12[%c0_11, %c0_12, %c0_13] : memref<18x18x8xf32, #tpu.memory_space<vmem>>, vector<1x18x8xf32>
    tpu.vector_store %arg12[%c0_11, %c0_12, %c0_13], %6 {strides = array<i32>} : memref<18x18x8xf32, #tpu.memory_space<vmem>>, vector<1x18x8xf32>,
    %c17_14 = arith.constant 17 : index
    %c0_15 = arith.constant 0 : index
    %c0_16 = arith.constant 0 : index
    %8 = vector.load %arg12[%c17_14, %c0_15, %c0_16] : memref<18x18x8xf32, #tpu.memory_space<vmem>>, vector<1x18x8xf32>
    tpu.vector_store %arg12[%c17_14, %c0_15, %c0_16], %6 {strides = array<i32>} : memref<18x18x8xf32, #tpu.memory_space<vmem>>, vector<1x18x8xf32>,
    %cst_17 = arith.constant 0.000000e+00 : f32
    %9 = vector.broadcast %cst_17 : f32 to vector<16x1x8xf32>
    %c1_18 = arith.constant 1 : index
    %c0_19 = arith.constant 0 : index
    %c0_20 = arith.constant 0 : index
    %10 = vector.load %arg12[%c1_18, %c0_19, %c0_20] : memref<18x18x8xf32, #tpu.memory_space<vmem>>, vector<16x1x8xf32>
    tpu.vector_store %arg12[%c1_18, %c0_19, %c0_20], %9 {strides = array<i32>} : memref<18x18x8xf32, #tpu.memory_space<vmem>>, vector<16x1x8xf32>,
    %c1_21 = arith.constant 1 : index
    %c17_22 = arith.constant 17 : index
    %c0_23 = arith.constant 0 : index
    %11 = vector.load %arg12[%c1_21, %c17_22, %c0_23] : memref<18x18x8xf32, #tpu.memory_space<vmem>>, vector<16x1x8xf32>
    tpu.vector_store %arg12[%c1_21, %c17_22, %c0_23], %9 {strides = array<i32>} : memref<18x18x8xf32, #tpu.memory_space<vmem>>, vector<16x1x8xf32>,
    %c0_24 = arith.constant 0 : index
    %c0_25 = arith.constant 0 : index
    %c0_26 = arith.constant 0 : index
    %c0_27 = arith.constant 0 : index
    %12 = vector.load %arg1[%c0_24, %c0_25, %c0_26, %c0_27] : memref<1x16x16x8xf32, #tpu.memory_space<vmem>>, vector<1x16x16x8xf32>
    %c0_28 = arith.constant 0 : index
    %c0_29 = arith.constant 0 : index
    %13 = vector.load %arg2[%c0_28, %c0_29] : memref<1x8xf32, #tpu.memory_space<vmem>>, vector<1x8xf32>
    %14 = vector.shape_cast %13 : vector<1x8xf32> to vector<1x1x1x8xf32>
    %15 = vector.broadcast %14 : vector<1x1x1x8xf32> to vector<1x16x16x8xf32>
    %16 = arith.mulf %12, %15 : vector<1x16x16x8xf32>
    %c0_30 = arith.constant 0 : index
    %c0_31 = arith.constant 0 : index
    %17 = vector.load %arg3[%c0_30, %c0_31] : memref<1x8xf32, #tpu.memory_space<vmem>>, vector<1x8xf32>
    %18 = vector.shape_cast %17 : vector<1x8xf32> to vector<1x1x1x8xf32>
    %19 = vector.broadcast %18 : vector<1x1x1x8xf32> to vector<1x16x16x8xf32>
    %20 = arith.addf %16, %19 : vector<1x16x16x8xf32>
    %cst_32 = arith.constant 0.000000e+00 : f32
    %21 = vector.broadcast %cst_32 : f32 to vector<1x16x16x8xf32>
    %22 = arith.maximumf %20, %21 : vector<1x16x16x8xf32>
    %c0_33 = arith.constant 0 : index
    %c0_34 = arith.constant 0 : index
    %c0_35 = arith.constant 0 : index
    %c0_36 = arith.constant 0 : index
    %23 = vector.load %arg10[%c0_33, %c0_34, %c0_35, %c0_36] : memref<1x16x16x8xf32, #tpu.memory_space<vmem>>, vector<1x16x16x8xf32>
    tpu.vector_store %arg10[%c0_33, %c0_34, %c0_35, %c0_36], %22 {strides = array<i32>} : memref<1x16x16x8xf32, #tpu.memory_space<vmem>>, vector<1x16x16x8xf32>,
    %24 = vector.shape_cast %22 : vector<1x16x16x8xf32> to vector<16x16x8xf32>
    %c1_37 = arith.constant 1 : index
    %c1_38 = arith.constant 1 : index
    %c0_39 = arith.constant 0 : index
    %25 = vector.load %arg11[%c1_37, %c1_38, %c0_39] : memref<18x18x8xf32, #tpu.memory_space<vmem>>, vector<16x16x8xf32>
    tpu.vector_store %arg11[%c1_37, %c1_38, %c0_39], %24 {strides = array<i32>} : memref<18x18x8xf32, #tpu.memory_space<vmem>>, vector<16x16x8xf32>,
    %c0_40 = arith.constant 0 : index
    %c0_41 = arith.constant 0 : index
    %c0_42 = arith.constant 0 : index
    %26 = vector.load %arg11[%c0_40, %c0_41, %c0_42] : memref<18x18x8xf32, #tpu.memory_space<vmem>>, vector<18x18x8xf32>
    %cst_43 = arith.constant 0.000000e+00 : f32
    %27 = vector.broadcast %cst_43 : f32 to vector<256x8xf32>
    %28 = vector.extract_strided_slice %26 {offsets = [0, 0, 0], sizes = [16, 16, 8], strides = [1, 1, 1]} : vector<18x18x8xf32> to vector<16x16x8xf32>
    %29 = vector.shape_cast %28 : vector<16x16x8xf32> to vector<256x8xf32>
    %c0_44 = arith.constant 0 : index
    %c0_45 = arith.constant 0 : index
    %c0_46 = arith.constant 0 : index
    %30 = vector.load %arg4[%c0_44, %c0_45, %c0_46] : memref<9x8x8xf32, #tpu.memory_space<vmem>>, vector<1x8x8xf32>
    %31 = vector.shape_cast %30 : vector<1x8x8xf32> to vector<8x8xf32>
    %cst_47 = arith.constant dense<0.000000e+00> : vector<256x8xf32>
    %32 = tpu.matmul %29, %31, %cst_47 {dimension_numbers = #tpu.dot_dimension_numbers<[1], [0], [0], [1], [0, 0, 1, 1], [], []>} : vector<256x8xf32>, vector<8x8xf32>, vector<256x8xf32> -> vector<256x8xf32>
    %33 = arith.addf %27, %32 : vector<256x8xf32>
    %34 = vector.extract_strided_slice %26 {offsets = [0, 1, 0], sizes = [16, 16, 8], strides = [1, 1, 1]} : vector<18x18x8xf32> to vector<16x16x8xf32>
    %35 = vector.shape_cast %34 : vector<16x16x8xf32> to vector<256x8xf32>
    %c1_48 = arith.constant 1 : index
    %c0_49 = arith.constant 0 : index
    %c0_50 = arith.constant 0 : index
    %36 = vector.load %arg4[%c1_48, %c0_49, %c0_50] : memref<9x8x8xf32, #tpu.memory_space<vmem>>, vector<1x8x8xf32>
    %37 = vector.shape_cast %36 : vector<1x8x8xf32> to vector<8x8xf32>
    %cst_51 = arith.constant dense<0.000000e+00> : vector<256x8xf32>
    %38 = tpu.matmul %35, %37, %cst_51 {dimension_numbers = #tpu.dot_dimension_numbers<[1], [0], [0], [1], [0, 0, 1, 1], [], []>} : vector<256x8xf32>, vector<8x8xf32>, vector<256x8xf32> -> vector<256x8xf32>
    %39 = arith.addf %33, %38 : vector<256x8xf32>
    %40 = vector.extract_strided_slice %26 {offsets = [0, 2, 0], sizes = [16, 16, 8], strides = [1, 1, 1]} : vector<18x18x8xf32> to vector<16x16x8xf32>
    %41 = vector.shape_cast %40 : vector<16x16x8xf32> to vector<256x8xf32>
    %c2 = arith.constant 2 : index
    %c0_52 = arith.constant 0 : index
    %c0_53 = arith.constant 0 : index
    %42 = vector.load %arg4[%c2, %c0_52, %c0_53] : memref<9x8x8xf32, #tpu.memory_space<vmem>>, vector<1x8x8xf32>
    %43 = vector.shape_cast %42 : vector<1x8x8xf32> to vector<8x8xf32>
    %cst_54 = arith.constant dense<0.000000e+00> : vector<256x8xf32>
    %44 = tpu.matmul %41, %43, %cst_54 {dimension_numbers = #tpu.dot_dimension_numbers<[1], [0], [0], [1], [0, 0, 1, 1], [], []>} : vector<256x8xf32>, vector<8x8xf32>, vector<256x8xf32> -> vector<256x8xf32>
    %45 = arith.addf %39, %44 : vector<256x8xf32>
    %46 = vector.extract_strided_slice %26 {offsets = [1, 0, 0], sizes = [16, 16, 8], strides = [1, 1, 1]} : vector<18x18x8xf32> to vector<16x16x8xf32>
    %47 = vector.shape_cast %46 : vector<16x16x8xf32> to vector<256x8xf32>
    %c3 = arith.constant 3 : index
    %c0_55 = arith.constant 0 : index
    %c0_56 = arith.constant 0 : index
    %48 = vector.load %arg4[%c3, %c0_55, %c0_56] : memref<9x8x8xf32, #tpu.memory_space<vmem>>, vector<1x8x8xf32>
    %49 = vector.shape_cast %48 : vector<1x8x8xf32> to vector<8x8xf32>
    %cst_57 = arith.constant dense<0.000000e+00> : vector<256x8xf32>
    %50 = tpu.matmul %47, %49, %cst_57 {dimension_numbers = #tpu.dot_dimension_numbers<[1], [0], [0], [1], [0, 0, 1, 1], [], []>} : vector<256x8xf32>, vector<8x8xf32>, vector<256x8xf32> -> vector<256x8xf32>
    %51 = arith.addf %45, %50 : vector<256x8xf32>
    %52 = vector.extract_strided_slice %26 {offsets = [1, 1, 0], sizes = [16, 16, 8], strides = [1, 1, 1]} : vector<18x18x8xf32> to vector<16x16x8xf32>
    %53 = vector.shape_cast %52 : vector<16x16x8xf32> to vector<256x8xf32>
    %c4 = arith.constant 4 : index
    %c0_58 = arith.constant 0 : index
    %c0_59 = arith.constant 0 : index
    %54 = vector.load %arg4[%c4, %c0_58, %c0_59] : memref<9x8x8xf32, #tpu.memory_space<vmem>>, vector<1x8x8xf32>
    %55 = vector.shape_cast %54 : vector<1x8x8xf32> to vector<8x8xf32>
    %cst_60 = arith.constant dense<0.000000e+00> : vector<256x8xf32>
    %56 = tpu.matmul %53, %55, %cst_60 {dimension_numbers = #tpu.dot_dimension_numbers<[1], [0], [0], [1], [0, 0, 1, 1], [], []>} : vector<256x8xf32>, vector<8x8xf32>, vector<256x8xf32> -> vector<256x8xf32>
    %57 = arith.addf %51, %56 : vector<256x8xf32>
    %58 = vector.extract_strided_slice %26 {offsets = [1, 2, 0], sizes = [16, 16, 8], strides = [1, 1, 1]} : vector<18x18x8xf32> to vector<16x16x8xf32>
    %59 = vector.shape_cast %58 : vector<16x16x8xf32> to vector<256x8xf32>
    %c5 = arith.constant 5 : index
    %c0_61 = arith.constant 0 : index
    %c0_62 = arith.constant 0 : index
    %60 = vector.load %arg4[%c5, %c0_61, %c0_62] : memref<9x8x8xf32, #tpu.memory_space<vmem>>, vector<1x8x8xf32>
    %61 = vector.shape_cast %60 : vector<1x8x8xf32> to vector<8x8xf32>
    %cst_63 = arith.constant dense<0.000000e+00> : vector<256x8xf32>
    %62 = tpu.matmul %59, %61, %cst_63 {dimension_numbers = #tpu.dot_dimension_numbers<[1], [0], [0], [1], [0, 0, 1, 1], [], []>} : vector<256x8xf32>, vector<8x8xf32>, vector<256x8xf32> -> vector<256x8xf32>
    %63 = arith.addf %57, %62 : vector<256x8xf32>
    %64 = vector.extract_strided_slice %26 {offsets = [2, 0, 0], sizes = [16, 16, 8], strides = [1, 1, 1]} : vector<18x18x8xf32> to vector<16x16x8xf32>
    %65 = vector.shape_cast %64 : vector<16x16x8xf32> to vector<256x8xf32>
    %c6 = arith.constant 6 : index
    %c0_64 = arith.constant 0 : index
    %c0_65 = arith.constant 0 : index
    %66 = vector.load %arg4[%c6, %c0_64, %c0_65] : memref<9x8x8xf32, #tpu.memory_space<vmem>>, vector<1x8x8xf32>
    %67 = vector.shape_cast %66 : vector<1x8x8xf32> to vector<8x8xf32>
    %cst_66 = arith.constant dense<0.000000e+00> : vector<256x8xf32>
    %68 = tpu.matmul %65, %67, %cst_66 {dimension_numbers = #tpu.dot_dimension_numbers<[1], [0], [0], [1], [0, 0, 1, 1], [], []>} : vector<256x8xf32>, vector<8x8xf32>, vector<256x8xf32> -> vector<256x8xf32>
    %69 = arith.addf %63, %68 : vector<256x8xf32>
    %70 = vector.extract_strided_slice %26 {offsets = [2, 1, 0], sizes = [16, 16, 8], strides = [1, 1, 1]} : vector<18x18x8xf32> to vector<16x16x8xf32>
    %71 = vector.shape_cast %70 : vector<16x16x8xf32> to vector<256x8xf32>
    %c7 = arith.constant 7 : index
    %c0_67 = arith.constant 0 : index
    %c0_68 = arith.constant 0 : index
    %72 = vector.load %arg4[%c7, %c0_67, %c0_68] : memref<9x8x8xf32, #tpu.memory_space<vmem>>, vector<1x8x8xf32>
    %73 = vector.shape_cast %72 : vector<1x8x8xf32> to vector<8x8xf32>
    %cst_69 = arith.constant dense<0.000000e+00> : vector<256x8xf32>
    %74 = tpu.matmul %71, %73, %cst_69 {dimension_numbers = #tpu.dot_dimension_numbers<[1], [0], [0], [1], [0, 0, 1, 1], [], []>} : vector<256x8xf32>, vector<8x8xf32>, vector<256x8xf32> -> vector<256x8xf32>
    %75 = arith.addf %69, %74 : vector<256x8xf32>
    %76 = vector.extract_strided_slice %26 {offsets = [2, 2, 0], sizes = [16, 16, 8], strides = [1, 1, 1]} : vector<18x18x8xf32> to vector<16x16x8xf32>
    %77 = vector.shape_cast %76 : vector<16x16x8xf32> to vector<256x8xf32>
    %c8 = arith.constant 8 : index
    %c0_70 = arith.constant 0 : index
    %c0_71 = arith.constant 0 : index
    %78 = vector.load %arg4[%c8, %c0_70, %c0_71] : memref<9x8x8xf32, #tpu.memory_space<vmem>>, vector<1x8x8xf32>
    %79 = vector.shape_cast %78 : vector<1x8x8xf32> to vector<8x8xf32>
    %cst_72 = arith.constant dense<0.000000e+00> : vector<256x8xf32>
    %80 = tpu.matmul %77, %79, %cst_72 {dimension_numbers = #tpu.dot_dimension_numbers<[1], [0], [0], [1], [0, 0, 1, 1], [], []>} : vector<256x8xf32>, vector<8x8xf32>, vector<256x8xf32> -> vector<256x8xf32>
    %81 = arith.addf %75, %80 : vector<256x8xf32>
    %c0_73 = arith.constant 0 : index
    %c0_74 = arith.constant 0 : index
    %82 = vector.load %arg5[%c0_73, %c0_74] : memref<1x8xf32, #tpu.memory_space<vmem>>, vector<1x8xf32>
    %83 = vector.broadcast %82 : vector<1x8xf32> to vector<256x8xf32>
    %84 = arith.mulf %81, %83 : vector<256x8xf32>
    %c0_75 = arith.constant 0 : index
    %c0_76 = arith.constant 0 : index
    %85 = vector.load %arg6[%c0_75, %c0_76] : memref<1x8xf32, #tpu.memory_space<vmem>>, vector<1x8xf32>
    %86 = vector.broadcast %85 : vector<1x8xf32> to vector<256x8xf32>
    %87 = arith.addf %84, %86 : vector<256x8xf32>
    %cst_77 = arith.constant 0.000000e+00 : f32
    %88 = vector.broadcast %cst_77 : f32 to vector<256x8xf32>
    %89 = arith.maximumf %87, %88 : vector<256x8xf32>
    %90 = vector.shape_cast %89 : vector<256x8xf32> to vector<16x16x8xf32>
    %c1_78 = arith.constant 1 : index
    %c1_79 = arith.constant 1 : index
    %c0_80 = arith.constant 0 : index
    %91 = vector.load %arg12[%c1_78, %c1_79, %c0_80] : memref<18x18x8xf32, #tpu.memory_space<vmem>>, vector<16x16x8xf32>
    tpu.vector_store %arg12[%c1_78, %c1_79, %c0_80], %90 {strides = array<i32>} : memref<18x18x8xf32, #tpu.memory_space<vmem>>, vector<16x16x8xf32>,
    %c0_81 = arith.constant 0 : index
    %c0_82 = arith.constant 0 : index
    %c0_83 = arith.constant 0 : index
    %92 = vector.load %arg12[%c0_81, %c0_82, %c0_83] : memref<18x18x8xf32, #tpu.memory_space<vmem>>, vector<18x18x8xf32>
    %cst_84 = arith.constant 0.000000e+00 : f32
    %93 = vector.broadcast %cst_84 : f32 to vector<256x8xf32>
    %94 = vector.extract_strided_slice %92 {offsets = [0, 0, 0], sizes = [16, 16, 8], strides = [1, 1, 1]} : vector<18x18x8xf32> to vector<16x16x8xf32>
    %95 = vector.shape_cast %94 : vector<16x16x8xf32> to vector<256x8xf32>
    %c0_85 = arith.constant 0 : index
    %c0_86 = arith.constant 0 : index
    %c0_87 = arith.constant 0 : index
    %96 = vector.load %arg7[%c0_85, %c0_86, %c0_87] : memref<9x8x8xf32, #tpu.memory_space<vmem>>, vector<1x8x8xf32>
    %97 = vector.shape_cast %96 : vector<1x8x8xf32> to vector<8x8xf32>
    %cst_88 = arith.constant dense<0.000000e+00> : vector<256x8xf32>
    %98 = tpu.matmul %95, %97, %cst_88 {dimension_numbers = #tpu.dot_dimension_numbers<[1], [0], [0], [1], [0, 0, 1, 1], [], []>} : vector<256x8xf32>, vector<8x8xf32>, vector<256x8xf32> -> vector<256x8xf32>
    %99 = arith.addf %93, %98 : vector<256x8xf32>
    %100 = vector.extract_strided_slice %92 {offsets = [0, 1, 0], sizes = [16, 16, 8], strides = [1, 1, 1]} : vector<18x18x8xf32> to vector<16x16x8xf32>
    %101 = vector.shape_cast %100 : vector<16x16x8xf32> to vector<256x8xf32>
    %c1_89 = arith.constant 1 : index
    %c0_90 = arith.constant 0 : index
    %c0_91 = arith.constant 0 : index
    %102 = vector.load %arg7[%c1_89, %c0_90, %c0_91] : memref<9x8x8xf32, #tpu.memory_space<vmem>>, vector<1x8x8xf32>
    %103 = vector.shape_cast %102 : vector<1x8x8xf32> to vector<8x8xf32>
    %cst_92 = arith.constant dense<0.000000e+00> : vector<256x8xf32>
    %104 = tpu.matmul %101, %103, %cst_92 {dimension_numbers = #tpu.dot_dimension_numbers<[1], [0], [0], [1], [0, 0, 1, 1], [], []>} : vector<256x8xf32>, vector<8x8xf32>, vector<256x8xf32> -> vector<256x8xf32>
    %105 = arith.addf %99, %104 : vector<256x8xf32>
    %106 = vector.extract_strided_slice %92 {offsets = [0, 2, 0], sizes = [16, 16, 8], strides = [1, 1, 1]} : vector<18x18x8xf32> to vector<16x16x8xf32>
    %107 = vector.shape_cast %106 : vector<16x16x8xf32> to vector<256x8xf32>
    %c2_93 = arith.constant 2 : index
    %c0_94 = arith.constant 0 : index
    %c0_95 = arith.constant 0 : index
    %108 = vector.load %arg7[%c2_93, %c0_94, %c0_95] : memref<9x8x8xf32, #tpu.memory_space<vmem>>, vector<1x8x8xf32>
    %109 = vector.shape_cast %108 : vector<1x8x8xf32> to vector<8x8xf32>
    %cst_96 = arith.constant dense<0.000000e+00> : vector<256x8xf32>
    %110 = tpu.matmul %107, %109, %cst_96 {dimension_numbers = #tpu.dot_dimension_numbers<[1], [0], [0], [1], [0, 0, 1, 1], [], []>} : vector<256x8xf32>, vector<8x8xf32>, vector<256x8xf32> -> vector<256x8xf32>
    %111 = arith.addf %105, %110 : vector<256x8xf32>
    %112 = vector.extract_strided_slice %92 {offsets = [1, 0, 0], sizes = [16, 16, 8], strides = [1, 1, 1]} : vector<18x18x8xf32> to vector<16x16x8xf32>
    %113 = vector.shape_cast %112 : vector<16x16x8xf32> to vector<256x8xf32>
    %c3_97 = arith.constant 3 : index
    %c0_98 = arith.constant 0 : index
    %c0_99 = arith.constant 0 : index
    %114 = vector.load %arg7[%c3_97, %c0_98, %c0_99] : memref<9x8x8xf32, #tpu.memory_space<vmem>>, vector<1x8x8xf32>
    %115 = vector.shape_cast %114 : vector<1x8x8xf32> to vector<8x8xf32>
    %cst_100 = arith.constant dense<0.000000e+00> : vector<256x8xf32>
    %116 = tpu.matmul %113, %115, %cst_100 {dimension_numbers = #tpu.dot_dimension_numbers<[1], [0], [0], [1], [0, 0, 1, 1], [], []>} : vector<256x8xf32>, vector<8x8xf32>, vector<256x8xf32> -> vector<256x8xf32>
    %117 = arith.addf %111, %116 : vector<256x8xf32>
    %118 = vector.extract_strided_slice %92 {offsets = [1, 1, 0], sizes = [16, 16, 8], strides = [1, 1, 1]} : vector<18x18x8xf32> to vector<16x16x8xf32>
    %119 = vector.shape_cast %118 : vector<16x16x8xf32> to vector<256x8xf32>
    %c4_101 = arith.constant 4 : index
    %c0_102 = arith.constant 0 : index
    %c0_103 = arith.constant 0 : index
    %120 = vector.load %arg7[%c4_101, %c0_102, %c0_103] : memref<9x8x8xf32, #tpu.memory_space<vmem>>, vector<1x8x8xf32>
    %121 = vector.shape_cast %120 : vector<1x8x8xf32> to vector<8x8xf32>
    %cst_104 = arith.constant dense<0.000000e+00> : vector<256x8xf32>
    %122 = tpu.matmul %119, %121, %cst_104 {dimension_numbers = #tpu.dot_dimension_numbers<[1], [0], [0], [1], [0, 0, 1, 1], [], []>} : vector<256x8xf32>, vector<8x8xf32>, vector<256x8xf32> -> vector<256x8xf32>
    %123 = arith.addf %117, %122 : vector<256x8xf32>
    %124 = vector.extract_strided_slice %92 {offsets = [1, 2, 0], sizes = [16, 16, 8], strides = [1, 1, 1]} : vector<18x18x8xf32> to vector<16x16x8xf32>
    %125 = vector.shape_cast %124 : vector<16x16x8xf32> to vector<256x8xf32>
    %c5_105 = arith.constant 5 : index
    %c0_106 = arith.constant 0 : index
    %c0_107 = arith.constant 0 : index
    %126 = vector.load %arg7[%c5_105, %c0_106, %c0_107] : memref<9x8x8xf32, #tpu.memory_space<vmem>>, vector<1x8x8xf32>
    %127 = vector.shape_cast %126 : vector<1x8x8xf32> to vector<8x8xf32>
    %cst_108 = arith.constant dense<0.000000e+00> : vector<256x8xf32>
    %128 = tpu.matmul %125, %127, %cst_108 {dimension_numbers = #tpu.dot_dimension_numbers<[1], [0], [0], [1], [0, 0, 1, 1], [], []>} : vector<256x8xf32>, vector<8x8xf32>, vector<256x8xf32> -> vector<256x8xf32>
    %129 = arith.addf %123, %128 : vector<256x8xf32>
    %130 = vector.extract_strided_slice %92 {offsets = [2, 0, 0], sizes = [16, 16, 8], strides = [1, 1, 1]} : vector<18x18x8xf32> to vector<16x16x8xf32>
    %131 = vector.shape_cast %130 : vector<16x16x8xf32> to vector<256x8xf32>
    %c6_109 = arith.constant 6 : index
    %c0_110 = arith.constant 0 : index
    %c0_111 = arith.constant 0 : index
    %132 = vector.load %arg7[%c6_109, %c0_110, %c0_111] : memref<9x8x8xf32, #tpu.memory_space<vmem>>, vector<1x8x8xf32>
    %133 = vector.shape_cast %132 : vector<1x8x8xf32> to vector<8x8xf32>
    %cst_112 = arith.constant dense<0.000000e+00> : vector<256x8xf32>
    %134 = tpu.matmul %131, %133, %cst_112 {dimension_numbers = #tpu.dot_dimension_numbers<[1], [0], [0], [1], [0, 0, 1, 1], [], []>} : vector<256x8xf32>, vector<8x8xf32>, vector<256x8xf32> -> vector<256x8xf32>
    %135 = arith.addf %129, %134 : vector<256x8xf32>
    %136 = vector.extract_strided_slice %92 {offsets = [2, 1, 0], sizes = [16, 16, 8], strides = [1, 1, 1]} : vector<18x18x8xf32> to vector<16x16x8xf32>
    %137 = vector.shape_cast %136 : vector<16x16x8xf32> to vector<256x8xf32>
    %c7_113 = arith.constant 7 : index
    %c0_114 = arith.constant 0 : index
    %c0_115 = arith.constant 0 : index
    %138 = vector.load %arg7[%c7_113, %c0_114, %c0_115] : memref<9x8x8xf32, #tpu.memory_space<vmem>>, vector<1x8x8xf32>
    %139 = vector.shape_cast %138 : vector<1x8x8xf32> to vector<8x8xf32>
    %cst_116 = arith.constant dense<0.000000e+00> : vector<256x8xf32>
    %140 = tpu.matmul %137, %139, %cst_116 {dimension_numbers = #tpu.dot_dimension_numbers<[1], [0], [0], [1], [0, 0, 1, 1], [], []>} : vector<256x8xf32>, vector<8x8xf32>, vector<256x8xf32> -> vector<256x8xf32>
    %141 = arith.addf %135, %140 : vector<256x8xf32>
    %142 = vector.extract_strided_slice %92 {offsets = [2, 2, 0], sizes = [16, 16, 8], strides = [1, 1, 1]} : vector<18x18x8xf32> to vector<16x16x8xf32>
    %143 = vector.shape_cast %142 : vector<16x16x8xf32> to vector<256x8xf32>
    %c8_117 = arith.constant 8 : index
    %c0_118 = arith.constant 0 : index
    %c0_119 = arith.constant 0 : index
    %144 = vector.load %arg7[%c8_117, %c0_118, %c0_119] : memref<9x8x8xf32, #tpu.memory_space<vmem>>, vector<1x8x8xf32>
    %145 = vector.shape_cast %144 : vector<1x8x8xf32> to vector<8x8xf32>
    %cst_120 = arith.constant dense<0.000000e+00> : vector<256x8xf32>
    %146 = tpu.matmul %143, %145, %cst_120 {dimension_numbers = #tpu.dot_dimension_numbers<[1], [0], [0], [1], [0, 0, 1, 1], [], []>} : vector<256x8xf32>, vector<8x8xf32>, vector<256x8xf32> -> vector<256x8xf32>
    %147 = arith.addf %141, %146 : vector<256x8xf32>
    %148 = vector.shape_cast %22 : vector<1x16x16x8xf32> to vector<16x16x8xf32>
    %149 = vector.shape_cast %148 : vector<16x16x8xf32> to vector<256x8xf32>
    %c0_121 = arith.constant 0 : index
    %c0_122 = arith.constant 0 : index
    %150 = vector.load %arg8[%c0_121, %c0_122] : memref<8x8xf32, #tpu.memory_space<vmem>>, vector<8x8xf32>
    %cst_123 = arith.constant dense<0.000000e+00> : vector<256x8xf32>
    %151 = tpu.matmul %149, %150, %cst_123 {dimension_numbers = #tpu.dot_dimension_numbers<[1], [0], [0], [1], [0, 0, 1, 1], [], []>} : vector<256x8xf32>, vector<8x8xf32>, vector<256x8xf32> -> vector<256x8xf32>
    %152 = arith.addf %147, %151 : vector<256x8xf32>
    %153 = vector.shape_cast %152 : vector<256x8xf32> to vector<1x16x16x8xf32>
    %c0_124 = arith.constant 0 : index
    %c0_125 = arith.constant 0 : index
    %c0_126 = arith.constant 0 : index
    %c0_127 = arith.constant 0 : index
    %154 = vector.load %arg9[%c0_124, %c0_125, %c0_126, %c0_127] : memref<1x16x16x8xf32, #tpu.memory_space<vmem>>, vector<1x16x16x8xf32>
    tpu.vector_store %arg9[%c0_124, %c0_125, %c0_126, %c0_127], %153 {strides = array<i32>} : memref<1x16x16x8xf32, #tpu.memory_space<vmem>>, vector<1x16x16x8xf32>,
    return
  }
  func.func @transform_0(%arg0: i32) -> (i32, i32, i32, i32) {
    %c0_i32 = arith.constant 0 : i32
    %c0_i32_0 = arith.constant 0 : i32
    %c0_i32_1 = arith.constant 0 : i32
    %c0_i32_2 = arith.constant 0 : i32
    return %arg0, %c0_i32, %c0_i32_0, %c0_i32_1 : i32, i32, i32, i32
  }
  func.func @transform_1(%arg0: i32) -> (i32, i32) {
    %c0_i32 = arith.constant 0 : i32
    %c0_i32_0 = arith.constant 0 : i32
    %c0_i32_1 = arith.constant 0 : i32
    return %c0_i32, %c0_i32_0 : i32, i32
  }
  func.func @transform_2(%arg0: i32) -> (i32, i32) {
    %c0_i32 = arith.constant 0 : i32
    %c0_i32_0 = arith.constant 0 : i32
    %c0_i32_1 = arith.constant 0 : i32
    return %c0_i32, %c0_i32_0 : i32, i32
  }
  func.func @transform_3(%arg0: i32) -> (i32, i32, i32) {
    %c0_i32 = arith.constant 0 : i32
    %c0_i32_0 = arith.constant 0 : i32
    %c0_i32_1 = arith.constant 0 : i32
    %c0_i32_2 = arith.constant 0 : i32
    return %c0_i32, %c0_i32_0, %c0_i32_1 : i32, i32, i32
  }
  func.func @transform_4(%arg0: i32) -> (i32, i32) {
    %c0_i32 = arith.constant 0 : i32
    %c0_i32_0 = arith.constant 0 : i32
    %c0_i32_1 = arith.constant 0 : i32
    return %c0_i32, %c0_i32_0 : i32, i32
  }
  func.func @transform_5(%arg0: i32) -> (i32, i32) {
    %c0_i32 = arith.constant 0 : i32
    %c0_i32_0 = arith.constant 0 : i32
    %c0_i32_1 = arith.constant 0 : i32
    return %c0_i32, %c0_i32_0 : i32, i32
  }
  func.func @transform_6(%arg0: i32) -> (i32, i32, i32) {
    %c0_i32 = arith.constant 0 : i32
    %c0_i32_0 = arith.constant 0 : i32
    %c0_i32_1 = arith.constant 0 : i32
    %c0_i32_2 = arith.constant 0 : i32
    return %c0_i32, %c0_i32_0, %c0_i32_1 : i32, i32, i32
  }
  func.func @transform_7(%arg0: i32) -> (i32, i32) {
    %c0_i32 = arith.constant 0 : i32
    %c0_i32_0 = arith.constant 0 : i32
    %c0_i32_1 = arith.constant 0 : i32
    return %c0_i32, %c0_i32_0 : i32, i32
  }
  func.func @transform_8(%arg0: i32) -> (i32, i32, i32, i32) {
    %c0_i32 = arith.constant 0 : i32
    %c0_i32_0 = arith.constant 0 : i32
    %c0_i32_1 = arith.constant 0 : i32
    %c0_i32_2 = arith.constant 0 : i32
    return %arg0, %c0_i32, %c0_i32_0, %c0_i32_1 : i32, i32, i32, i32
  }
  func.func @transform_9(%arg0: i32) -> (i32, i32, i32, i32) {
    %c0_i32 = arith.constant 0 : i32
    %c0_i32_0 = arith.constant 0 : i32
    %c0_i32_1 = arith.constant 0 : i32
    %c0_i32_2 = arith.constant 0 : i32
    return %arg0, %c0_i32, %c0_i32_0, %c0_i32_1 : i32, i32, i32, i32
  }
}

</mosaic_0001>

<bundles_post_ra>
// kernel: tpu_custom_call.1
= control target key start
LH: loop header
LB: loop body
LE: loop exit
PB: predicated region body
PF: predicated region fallthrough
CT: control target
= control target key end

     0   :  { %s9100_s30 = smov 0   ;;  %s13017_s0 = inlined_call_operand.vmem [shape: f32[2,16,16,8], index: 0, kind: input, shape index: {}]   ;;  %s13018_s1 = inlined_call_operand.vmem [shape: f32[1,8], index: 1, kind: input, shape index: {}]   ;;  %s13019_s2 = inlined_call_operand.vmem [shape: f32[1,8], index: 2, kind: input, shape index: {}]   ;;  %s13020_s3 = inlined_call_operand.vmem [shape: f32[9,8,8], index: 3, kind: input, shape index: {}]   ;;  %s13021_s4 = inlined_call_operand.vmem [shape: f32[1,8], index: 4, kind: input, shape index: {}]   ;;  %s13022_s5 = inlined_call_operand.vmem [shape: f32[1,8], index: 5, kind: input, shape index: {}]   ;;  %s13023_s6 = inlined_call_operand.vmem [shape: f32[9,8,8], index: 6, kind: input, shape index: {}]   ;;  %s13024_s7 = inlined_call_operand.vmem [shape: f32[8,8], index: 7, kind: input, shape index: {}]   ;;  %s13025_s8 = inlined_call_operand.vmem [shape: f32[2,16,16,8], index: 8, kind: output, shape index: {0}]   ;;  %s13026_s9 = inlined_call_operand.vmem [shape: f32[2,16,16,8], index: 9, kind: output, shape index: {1}]  }
   0x1 LB: > { %s6793_s10 = sadd.s32 4294967295, %s9047_s30   ;;  %p6797_p0 = scmp.ge.s32.totalorder %s9047_s30, 1  ;;  %s9047_s30 = sphi %s9100_s30, %s20_s30  }
   0x2   : > { %p290_p1 = scmp.lt.s32.totalorder %s9047_s30, 3 }
   0x4   : > { %p291_p2 = pnand %p6797_p0, %p290_p1 }
   0x6   : > { %294 = sbr.rel (%p291_p2) target bundleno = 1045 (0x415), region = 52 }
   0xb   : > { %v9111_v0 = vld [vmem:[%s13020_s3 + $0x8] sm:$0xff]  ;;  %vm346_vm0 = vcmask 64512   ;;  %p9115_p3 = scmp.lt.s32.totalorder %s6793_s10, 1  ;;  %vm356_vm1 = vcmask 57344   ;;  %v9049_v1 = vmov 0.0   ;;  %v9268_v2 = vld [vmem:[%s13020_s3] sm:$0xff] }
   0xc   : > { %9014 = vmatprep.subr.mxu1 %v9111_v0  ;;  %8064 = vmatprep.subr.mxu0 %v9111_v0  ;;  %347 = vst.msk [vmem:[#allocation2] sm:$0xff] %vm346_vm0, %v9049_v1  ;;  %348 = vst.msk [vmem:[#allocation2 + $0x8] sm:$0xff] %vm346_vm0, %v9049_v1  ;;  %vm349_vm2 = vcmask 58368   ;;  %v6871_v3 = vld [vmem:[%s13020_s3 + $0x10] sm:$0xff]  ;;  %v9289_v4 = vld [vmem:[%s13018_s1] ss:$0 sm:$0xff] }
   0xd   : > { %352 = vst.msk [vmem:[#allocation2 + $0x198] sm:$0xff] %vm346_vm0, %v9049_v1  ;;  %353 = vst.msk [vmem:[#allocation2 + $0x1a0] sm:$0xff] %vm346_vm0, %v9049_v1  ;;  %9015 = vmatpush3.msra.mxu1 %v9111_v0  ;;  %8065 = vmatpush3.msra.mxu0 %v9111_v0  ;;  %s13708_s10 = smov (!%p9115_p3, %s6793_s10), 1  ;;  %v9300_v5 = vld [vmem:[%s13019_s2] ss:$0 sm:$0xff]  ;;  %vm738_vm3 = vcmask 1046528  }
   0xe   : > { %389 = vst.msk [vmem:[#allocation3] sm:$0xff] %vm346_vm0, %v9049_v1  ;;  %390 = vst.msk [vmem:[#allocation3 + $0x8] sm:$0xff] %vm346_vm0, %v9049_v1  ;;  %8114 = vmatprep.subr.mxu1 %v9268_v2  ;;  %8164 = vmatprep.subr.mxu0 %v6871_v3  ;;  %s9284_s18 = sshll.u32 %s13708_s10, 8  ;;  %v9356_v43 = vld [vmem:[%s13020_s3 + $0x20] sm:$0xff]  ;;  %vm1399_vm4 = vcmask 1045504  }
   0xf   : > { %393 = vst.msk [vmem:[#allocation3 + $0x198] sm:$0xff] %vm346_vm0, %v9049_v1  ;;  %394 = vst.msk [vmem:[#allocation3 + $0x1a0] sm:$0xff] %vm346_vm0, %v9049_v1  ;;  %s9295_s23 = scalar_lea.vmem %s13017_s0, %s9284_s18  ;;  %s9328_s28 = scalar_lea.vmem %s13026_s9, %s9284_s18 }
  0x10   : > { %364 = vst.msk [vmem:[#allocation2 + $0xc0] sm:$0x1] %vm356_vm1, %v9049_v1  ;;  %357 = vst.msk [vmem:[#allocation2 + $0x18] sm:$0x1] %vm356_vm1, %v9049_v1  ;;  %v443_v6 = vld [vmem:[%s9295_s23 + $0x70] sm:$0xff]  ;;  %v444_v7 = vld [vmem:[%s9295_s23 + $0x78] sm:$0xff]  ;;  %s12862_s13 = scalar_lea.vmem %s13025_s8, %s9284_s18 }
  0x11   : > { %358 = vst.msk [vmem:[#allocation2 + $0x30] sm:$0x1] %vm356_vm1, %v9049_v1  ;;  %359 = vst.msk [vmem:[#allocation2 + $0x48] sm:$0x1] %vm356_vm1, %v9049_v1  ;;  %v429_v8 = vld [vmem:[%s9295_s23] sm:$0xff]  ;;  %v482_v9 = vmul.f32 %v9289_v4, %v443_v6  ;;  %v483_v10 = vmul.f32 %v9289_v4, %v444_v7  ;;  %v430_v11 = vld [vmem:[%s9295_s23 + $0x8] sm:$0xff] }
  0x12   : > { %360 = vst.msk [vmem:[#allocation2 + $0x60] sm:$0x1] %vm356_vm1, %v9049_v1  ;;  %361 = vst.msk [vmem:[#allocation2 + $0x78] sm:$0x1] %vm356_vm1, %v9049_v1  ;;  %v468_v12 = vmul.f32 %v9289_v4, %v429_v8  ;;  %v445_v13 = vld [vmem:[%s9295_s23 + $0x80] sm:$0xff]  ;;  %v446_v14 = vld [vmem:[%s9295_s23 + $0x88] sm:$0xff]  ;;  %v469_v17 = vmul.f32 %v9289_v4, %v430_v11 }
  0x13   : > { %362 = vst.msk [vmem:[#allocation2 + $0x90] sm:$0x1] %vm356_vm1, %v9049_v1  ;;  %363 = vst.msk [vmem:[#allocation2 + $0xa8] sm:$0x1] %vm356_vm1, %v9049_v1  ;;  %v9311_v15 = vld [vmem:[#allocation2] sm:$0xff]  ;;  %v9313_v16 = vld [vmem:[#allocation2 + $0x8] sm:$0xff]  ;;  %v484_v18 = vmul.f32 %v9289_v4, %v445_v13  ;;  %v485_v19 = vmul.f32 %v9289_v4, %v446_v14  ;;  %v521_v22 = vadd.f32 %v9300_v5, %v482_v9 }
  0x14   : > { %365 = vst.msk [vmem:[#allocation2 + $0xd8] sm:$0x1] %vm356_vm1, %v9049_v1  ;;  %366 = vst.msk [vmem:[#allocation2 + $0xf0] sm:$0x1] %vm356_vm1, %v9049_v1  ;;  %v739_v20 = vrot.slane %v9311_v15, 1  ;;  %v740_v21 = vrot.slane %v9313_v16, 1  ;;  %v522_v23 = vadd.f32 %v9300_v5, %v483_v10  ;;  %v507_v26 = vadd.f32 %v9300_v5, %v468_v12 }
  0x15   : > { %367 = vst.msk [vmem:[#allocation2 + $0x108] sm:$0x1] %vm356_vm1, %v9049_v1  ;;  %368 = vst.msk [vmem:[#allocation2 + $0x120] sm:$0x1] %vm356_vm1, %v9049_v1  ;;  %v508_v27 = vadd.f32 %v9300_v5, %v469_v17  ;;  %v431_v28 = vld [vmem:[%s9295_s23 + $0x10] sm:$0xff]  ;;  %v432_v29 = vld [vmem:[%s9295_s23 + $0x18] sm:$0xff]  ;;  %v523_v34 = vadd.f32 %v9300_v5, %v484_v18  ;;  %v524_v41 = vadd.f32 %v9300_v5, %v485_v19 }
  0x16   : > { %369 = vst.msk [vmem:[#allocation2 + $0x138] sm:$0x1] %vm356_vm1, %v9049_v1  ;;  %370 = vst.msk [vmem:[#allocation2 + $0x150] sm:$0x1] %vm356_vm1, %v9049_v1  ;;  %v447_v30 = vld [vmem:[%s9295_s23 + $0x90] sm:$0xff]  ;;  %v741_v31 = vsel %vm738_vm3, %v739_v20, %v740_v21  ;;  %v9337_v32 = vmax.f32 %v521_v22, 0.0  ;;  %v470_v45 = vmul.f32 %v9289_v4, %v431_v28  ;;  %v471_v46 = vmul.f32 %v9289_v4, %v432_v29 }
  0x17   : > { %371 = vst.msk [vmem:[#allocation2 + $0x168] sm:$0x1] %vm356_vm1, %v9049_v1  ;;  %372 = vst.msk [vmem:[#allocation2 + $0x180] sm:$0x1] %vm356_vm1, %v9049_v1  ;;  %v9339_v33 = vmax.f32 %v522_v23, 0.0  ;;  %v448_v35 = vld [vmem:[%s9295_s23 + $0x98] sm:$0xff]  ;;  %8066 = vmatprep.mubr.msk.f32.mxu0 %vm346_vm0, %v741_v31  ;;  %v486_v47 = vmul.f32 %v9289_v4, %v447_v30 }
  0x18   : > { %373 = vst.msk [vmem:[#allocation2 + $0x29] sm:$0x1] %vm356_vm1, %v9049_v1  ;;  %374 = vst.msk [vmem:[#allocation2 + $0x41] sm:$0x1] %vm356_vm1, %v9049_v1  ;;  %v433_v36 = vld [vmem:[%s9295_s23 + $0x20] sm:$0xff]  ;;  %v434_v37 = vld [vmem:[%s9295_s23 + $0x28] sm:$0xff]  ;;  %v487_v50 = vmul.f32 %v9289_v4, %v448_v35  ;;  %v509_v53 = vadd.f32 %v9300_v5, %v470_v45  ;;  %v510_v54 = vadd.f32 %v9300_v5, %v471_v46 }
  0x19   : > { %375 = vst.msk [vmem:[#allocation2 + $0x59] sm:$0x1] %vm356_vm1, %v9049_v1  ;;  %376 = vst.msk [vmem:[#allocation2 + $0x71] sm:$0x1] %vm356_vm1, %v9049_v1  ;;  %v9347_v39 = vmax.f32 %v507_v26, 0.0  ;;  %v9349_v40 = vmax.f32 %v508_v27, 0.0  ;;  %v472_v51 = vmul.f32 %v9289_v4, %v433_v36  ;;  %v473_v52 = vmul.f32 %v9289_v4, %v434_v37 }
  0x1a   : > { %377 = vst.msk [vmem:[#allocation2 + $0x89] sm:$0x1] %vm356_vm1, %v9049_v1  ;;  %378 = vst.msk [vmem:[#allocation2 + $0xa1] sm:$0x1] %vm356_vm1, %v9049_v1  ;;  %v449_v42 = vld [vmem:[%s9295_s23 + $0xa0] sm:$0xff]  ;;  %v9369_v44 = vmax.f32 %v523_v34, 0.0  ;;  %v525_v55 = vadd.f32 %v9300_v5, %v486_v47  ;;  %v526_v57 = vadd.f32 %v9300_v5, %v487_v50 }
  0x1b   : > { %379 = vst.msk [vmem:[#allocation2 + $0xb9] sm:$0x1] %vm356_vm1, %v9049_v1  ;;  %380 = vst.msk [vmem:[#allocation2 + $0xd1] sm:$0x1] %vm356_vm1, %v9049_v1  ;;  %v450_v48 = vld [vmem:[%s9295_s23 + $0xa8] sm:$0xff]  ;;  %v9385_v49 = vmax.f32 %v524_v41, 0.0  ;;  %v488_v56 = vmul.f32 %v9289_v4, %v449_v42  ;;  %v511_v58 = vadd.f32 %v9300_v5, %v472_v51  ;;  %v512_v59 = vadd.f32 %v9300_v5, %v473_v52 }
  0x1c   : > { %381 = vst.msk [vmem:[#allocation2 + $0xe9] sm:$0x1] %vm356_vm1, %v9049_v1  ;;  %382 = vst.msk [vmem:[#allocation2 + $0x101] sm:$0x1] %vm356_vm1, %v9049_v1  ;;  %v489_v60 = vmul.f32 %v9289_v4, %v450_v48  ;;  %v435_v61 = vld [vmem:[%s9295_s23 + $0x30] sm:$0xff]  ;;  %v436_v62 = vld [vmem:[%s9295_s23 + $0x38] sm:$0xff] }
  0x1d   : > { %383 = vst.msk [vmem:[#allocation2 + $0x119] sm:$0x1] %vm356_vm1, %v9049_v1  ;;  %384 = vst.msk [vmem:[#allocation2 + $0x131] sm:$0x1] %vm356_vm1, %v9049_v1  ;;  %v451_v63 = vld [vmem:[%s9295_s23 + $0xb0] sm:$0xff]  ;;  %v9412_v0 = vmax.f32 %v509_v53, 0.0  ;;  %v527_v6 = vadd.f32 %v9300_v5, %v488_v56  ;;  %v474_v17 = vmul.f32 %v9289_v4, %v435_v61  ;;  %v475_v18 = vmul.f32 %v9289_v4, %v436_v62 }
  0x1e   : > { %385 = vst.msk [vmem:[#allocation2 + $0x149] sm:$0x1] %vm356_vm1, %v9049_v1  ;;  %386 = vst.msk [vmem:[#allocation2 + $0x161] sm:$0x1] %vm356_vm1, %v9049_v1  ;;  %v452_v7 = vld [vmem:[%s9295_s23 + $0xb8] sm:$0xff]  ;;  %v437_v8 = vld [vmem:[%s9295_s23 + $0x40] sm:$0xff]  ;;  %v528_v13 = vadd.f32 %v9300_v5, %v489_v60  ;;  %v490_v19 = vmul.f32 %v9289_v4, %v451_v63 }
  0x1f   : > { %387 = vst.msk [vmem:[#allocation2 + $0x179] sm:$0x1] %vm356_vm1, %v9049_v1  ;;  %388 = vst.msk [vmem:[#allocation2 + $0x191] sm:$0x1] %vm356_vm1, %v9049_v1  ;;  %v438_v9 = vld [vmem:[%s9295_s23 + $0x48] sm:$0xff]  ;;  %v9422_v10 = vmax.f32 %v526_v57, 0.0  ;;  %v476_v26 = vmul.f32 %v9289_v4, %v437_v8  ;;  %v513_v35 = vadd.f32 %v9300_v5, %v474_v17  ;;  %v514_v42 = vadd.f32 %v9300_v5, %v475_v18 }
  0x20   : > { %397 = vst.msk [vmem:[#allocation3 + $0x18] sm:$0x1] %vm356_vm1, %v9049_v1  ;;  %398 = vst.msk [vmem:[#allocation3 + $0x30] sm:$0x1] %vm356_vm1, %v9049_v1  ;;  %v9424_v11 = vmax.f32 %v511_v58, 0.0  ;;  %v9426_v12 = vmax.f32 %v512_v59, 0.0  ;;  %v477_v27 = vmul.f32 %v9289_v4, %v438_v9  ;;  %v529_v45 = vadd.f32 %v9300_v5, %v490_v19 }
  0x21   : > { %399 = vst.msk [vmem:[#allocation3 + $0x48] sm:$0x1] %vm356_vm1, %v9049_v1  ;;  %400 = vst.msk [vmem:[#allocation3 + $0x60] sm:$0x1] %vm356_vm1, %v9049_v1  ;;  %v9444_v14 = vmax.f32 %v527_v6, 0.0  ;;  %v9470_v23 = vmax.f32 %v528_v13, 0.0 }
  0x22   : > { %401 = vst.msk [vmem:[#allocation3 + $0x78] sm:$0x1] %vm356_vm1, %v9049_v1  ;;  %402 = vst.msk [vmem:[#allocation3 + $0x90] sm:$0x1] %vm356_vm1, %v9049_v1  ;;  %v9520_v56 = vmax.f32 %v513_v35, 0.0  ;;  %v9525_v57 = vld [vmem:[%s13020_s3 + $0x18] sm:$0xff] }
  0x23   : > { %403 = vst.msk [vmem:[#allocation3 + $0xa8] sm:$0x1] %vm356_vm1, %v9049_v1  ;;  %404 = vst.msk [vmem:[#allocation3 + $0xc0] sm:$0x1] %vm356_vm1, %v9049_v1  ;;  %v9534_v59 = vmax.f32 %v514_v42, 0.0  ;;  %v9537_v61 = vmax.f32 %v529_v45, 0.0 }
  0x24   : > { %405 = vst.msk [vmem:[#allocation3 + $0xd8] sm:$0x1] %vm356_vm1, %v9049_v1  ;;  %406 = vst.msk [vmem:[#allocation3 + $0xf0] sm:$0x1] %vm356_vm1, %v9049_v1  ;;  %v453_v62 = vld [vmem:[%s9295_s23 + $0xc0] sm:$0xff]  ;;  %v454_v63 = vld [vmem:[%s9295_s23 + $0xc8] sm:$0xff] }
  0x25   : > { %407 = vst.msk [vmem:[#allocation3 + $0x108] sm:$0x1] %vm356_vm1, %v9049_v1  ;;  %408 = vst.msk [vmem:[#allocation3 + $0x120] sm:$0x1] %vm356_vm1, %v9049_v1  ;;  %v492_v42 = vmul.f32 %v9289_v4, %v453_v62  ;;  %v493_v45 = vmul.f32 %v9289_v4, %v454_v63 }
  0x26   : > { %409 = vst.msk [vmem:[#allocation3 + $0x138] sm:$0x1] %vm356_vm1, %v9049_v1  ;;  %410 = vst.msk [vmem:[#allocation3 + $0x150] sm:$0x1] %vm356_vm1, %v9049_v1 }
  0x27   : > { %411 = vst.msk [vmem:[#allocation3 + $0x168] sm:$0x1] %vm356_vm1, %v9049_v1  ;;  %412 = vst.msk [vmem:[#allocation3 + $0x180] sm:$0x1] %vm356_vm1, %v9049_v1 }
  0x28   : > { %413 = vst.msk [vmem:[#allocation3 + $0x29] sm:$0x1] %vm356_vm1, %v9049_v1  ;;  %414 = vst.msk [vmem:[#allocation3 + $0x41] sm:$0x1] %vm356_vm1, %v9049_v1 }
  0x29   : > { %415 = vst.msk [vmem:[#allocation3 + $0x59] sm:$0x1] %vm356_vm1, %v9049_v1  ;;  %416 = vst.msk [vmem:[#allocation3 + $0x71] sm:$0x1] %vm356_vm1, %v9049_v1 }
  0x2a   : > { %417 = vst.msk [vmem:[#allocation3 + $0x89] sm:$0x1] %vm356_vm1, %v9049_v1  ;;  %418 = vst.msk [vmem:[#allocation3 + $0xa1] sm:$0x1] %vm356_vm1, %v9049_v1 }
  0x2b   : > { %419 = vst.msk [vmem:[#allocation3 + $0xb9] sm:$0x1] %vm356_vm1, %v9049_v1  ;;  %420 = vst.msk [vmem:[#allocation3 + $0xd1] sm:$0x1] %vm356_vm1, %v9049_v1 }
  0x2c   : > { %421 = vst.msk [vmem:[#allocation3 + $0xe9] sm:$0x1] %vm356_vm1, %v9049_v1  ;;  %422 = vst.msk [vmem:[#allocation3 + $0x101] sm:$0x1] %vm356_vm1, %v9049_v1 }
  0x2d   : > { %423 = vst.msk [vmem:[#allocation3 + $0x119] sm:$0x1] %vm356_vm1, %v9049_v1  ;;  %424 = vst.msk [vmem:[#allocation3 + $0x131] sm:$0x1] %vm356_vm1, %v9049_v1 }
  0x2e   : > { %425 = vst.msk [vmem:[#allocation3 + $0x149] sm:$0x1] %vm356_vm1, %v9049_v1  ;;  %426 = vst.msk [vmem:[#allocation3 + $0x161] sm:$0x1] %vm356_vm1, %v9049_v1 }
  0x2f   : > { %427 = vst.msk [vmem:[#allocation3 + $0x179] sm:$0x1] %vm356_vm1, %v9049_v1  ;;  %428 = vst.msk [vmem:[#allocation3 + $0x191] sm:$0x1] %vm356_vm1, %v9049_v1 }
  0x30   : > { %350 = vst.msk [vmem:[#allocation2 + $0x10] sm:$0x3] %vm349_vm2, %v9049_v1  ;;  %391 = vst.msk [vmem:[#allocation3 + $0x10] sm:$0x3] %vm349_vm2, %v9049_v1 }
  0x31   : > { %354 = vst.msk [vmem:[#allocation2 + $0x1a8] sm:$0x3] %vm349_vm2, %v9049_v1  ;;  %395 = vst.msk [vmem:[#allocation3 + $0x1a8] sm:$0x3] %vm349_vm2, %v9049_v1  ;;  %v9414_v1 = vmax.f32 %v510_v54, 0.0 }
  0x32   : > { %13201 = vst [vmem:[#allocation4_spill] sm:$0xff] %v9337_v32  ;;  %13202 = vst [vmem:[#allocation5_spill] sm:$0xff] %v9339_v33 }
  0x33   : > { %13203 = vst [vmem:[#allocation6_spill] sm:$0xff] %v9347_v39  ;;  %13204 = vst [vmem:[#allocation7_spill] sm:$0xff] %v9349_v40 }
  0x34   : > { %585 = vst.msk [vmem:[%s9328_s28 + $0x70] sm:$0xff] %vm346_vm0, %v9337_v32  ;;  %586 = vst.msk [vmem:[%s9328_s28 + $0x78] sm:$0xff] %vm346_vm0, %v9339_v33 }
  0x35   : > { %617 = vst.msk [vmem:[#allocation2 + $0xc1] sm:$0xff] %vm346_vm0, %v9337_v32  ;;  %618 = vst.msk [vmem:[#allocation2 + $0xc9] sm:$0xff] %vm346_vm0, %v9339_v33  ;;  %v455_v33 = vld [vmem:[%s9295_s23 + $0xd0] sm:$0xff] }
  0x36   : > { %13205 = vst [vmem:[#allocation8_spill] sm:$0xff] %v9369_v44  ;;  %571 = vst.msk [vmem:[%s9328_s28] sm:$0xff] %vm346_vm0, %v9347_v39 }
  0x37   : > { %v9322_v24 = vld [vmem:[#allocation2 + $0x10] sm:$0x3]  ;;  %572 = vst.msk [vmem:[%s9328_s28 + $0x8] sm:$0xff] %vm346_vm0, %v9349_v40  ;;  %603 = vst.msk [vmem:[#allocation2 + $0x19] sm:$0xff] %vm346_vm0, %v9347_v39 }
  0x38   : > { %v742_v25 = vrot.slane %v9322_v24, 1  ;;  %604 = vst.msk [vmem:[#allocation2 + $0x21] sm:$0xff] %vm346_vm0, %v9349_v40  ;;  %13206 = vst [vmem:[#allocation9_spill] sm:$0xff] %v9385_v49  ;;  %v458_v40 = vld [vmem:[%s9295_s23 + $0xe8] sm:$0xff] }
  0x39   : > { %587 = vst.msk [vmem:[%s9328_s28 + $0x80] sm:$0xff] %vm346_vm0, %v9369_v44  ;;  %619 = vst.msk [vmem:[#allocation2 + $0xd9] sm:$0xff] %vm346_vm0, %v9369_v44  ;;  %v440_v44 = vld [vmem:[%s9295_s23 + $0x58] sm:$0xff] }
  0x3a   : > { %v743_v38 = vsel %vm738_vm3, %v740_v21, %v742_v25  ;;  %588 = vst.msk [vmem:[%s9328_s28 + $0x88] sm:$0xff] %vm346_vm0, %v9385_v49  ;;  %620 = vst.msk [vmem:[#allocation2 + $0xe1] sm:$0xff] %vm346_vm0, %v9385_v49  ;;  %v491_v25 = vmul.f32 %v9289_v4, %v452_v7  ;;  %v439_v49 = vld [vmem:[%s9295_s23 + $0x50] sm:$0xff] }
  0x3b   : > { %8067 = vmatmul.mubr.msk.f32.vlgmr.msra.gmra.mxu0 %vm346_vm0, %v743_v38  ;;  %13207 = vst [vmem:[#allocation10_spill] sm:$0xff] %v9412_v0  ;;  %13208 = vst [vmem:[#allocation11_spill] sm:$0xff] %v9414_v1 }
  0x3c   : > { %8165 = vmatpush3.msra.mxu0 %v6871_v3  ;;  %v9416_v3 = vmax.f32 %v525_v55, 0.0  ;;  %13210 = vst [vmem:[#allocation13_spill] sm:$0xff] %v9422_v10  ;;  %13211 = vst [vmem:[#allocation14_spill] sm:$0xff] %v9424_v11  ;;  %v9449_v20 = vld [vmem:[#allocation2 + $0xc0] sm:$0xff]  ;;  %v9451_v21 = vld [vmem:[#allocation2 + $0xc8] sm:$0xff]  ;;  %v530_v60 = vadd.f32 %v9300_v5, %v491_v25 }
  0x3d   : > { %8264 = vmatprep.subr.mxu0 %v9356_v43  ;;  %13212 = vst [vmem:[#allocation15_spill] sm:$0xff] %v9426_v12  ;;  %573 = vst.msk [vmem:[%s9328_s28 + $0x10] sm:$0xff] %vm346_vm0, %v9412_v0  ;;  %v9453_v22 = vld [vmem:[#allocation2 + $0xd0] sm:$0x3]  ;;  %v779_v28 = vrot.slane %v9449_v20, 1  ;;  %v780_v29 = vrot.slane %v9451_v21, 1 }
  0x3e   : > { %13209 = vst [vmem:[#allocation12_spill] sm:$0xff] %v9416_v3  ;;  %574 = vst.msk [vmem:[%s9328_s28 + $0x18] sm:$0xff] %vm346_vm0, %v9414_v1  ;;  %v782_v30 = vrot.slane %v9453_v22, 1  ;;  %v9478_v31 = vld [vmem:[#allocation2 + $0x18] sm:$0xff] }
  0x3f   : > { %605 = vst.msk [vmem:[#allocation2 + $0x31] sm:$0xff] %vm346_vm0, %v9412_v0  ;;  %606 = vst.msk [vmem:[#allocation2 + $0x39] sm:$0xff] %vm346_vm0, %v9414_v1  ;;  %v9480_v34 = vld [vmem:[#allocation2 + $0x20] sm:$0xff]  ;;  %v744_v36 = vrot.slane %v9478_v31, 1  ;;  %v9492_v41 = vld [vmem:[#allocation2 + $0x28] sm:$0x3]  ;;  %v9502_v46 = vsel %vm738_vm3, %v779_v28, %v780_v29 }
  0x40   : > { %589 = vst.msk [vmem:[%s9328_s28 + $0x90] sm:$0xff] %vm346_vm0, %v9416_v3  ;;  %621 = vst.msk [vmem:[#allocation2 + $0xf1] sm:$0xff] %vm346_vm0, %v9416_v3  ;;  %v745_v37 = vrot.slane %v9480_v34, 1  ;;  %v9490_v38 = vld [vmem:[#allocation2 + $0xd8] sm:$0xff]  ;;  %v9505_v47 = vsel %vm738_vm3, %v780_v29, %v782_v30  ;;  %v747_v51 = vrot.slane %v9492_v41, 1  ;;  %8090 = vmatprep.mubr.msk.f32.mxu1 %vm346_vm0, %v9502_v46  ;;  %v442_v1 = vld [vmem:[%s9295_s23 + $0x68] sm:$0xff] }
  0x41   : > { %13213 = vst [vmem:[#allocation16_spill] sm:$0xff] %v9444_v14  ;;  %590 = vst.msk [vmem:[%s9328_s28 + $0x98] sm:$0xff] %vm346_vm0, %v9422_v10  ;;  %v9507_v48 = vld [vmem:[#allocation2 + $0xe0] sm:$0xff]  ;;  %v784_v50 = vrot.slane %v9490_v38, 1  ;;  %v9511_v52 = vld [vmem:[#allocation2 + $0xe8] sm:$0x3]  ;;  %8091 = vmatmul.mubr.msk.f32.vlgmr.msra.gmra.mxu1 %vm346_vm0, %v9505_v47 }
  0x42   : > { %622 = vst.msk [vmem:[#allocation2 + $0xf9] sm:$0xff] %vm346_vm0, %v9422_v10  ;;  %575 = vst.msk [vmem:[%s9328_s28 + $0x20] sm:$0xff] %vm346_vm0, %v9424_v11  ;;  %v9516_v53 = vsel %vm738_vm3, %v744_v36, %v745_v37  ;;  %v785_v54 = vrot.slane %v9507_v48, 1  ;;  %v787_v55 = vrot.slane %v9511_v52, 1  ;;  %v9532_v58 = vsel %vm738_vm3, %v745_v37, %v747_v51  ;;  %8115 = vmatpush3.msra.mxu1 %v9268_v2  ;;  %v457_v0 = vld [vmem:[%s9295_s23 + $0xe0] sm:$0xff] }
  0x43   : > { %576 = vst.msk [vmem:[%s9328_s28 + $0x28] sm:$0xff] %vm346_vm0, %v9426_v12  ;;  %607 = vst.msk [vmem:[#allocation2 + $0x49] sm:$0xff] %vm346_vm0, %v9424_v11  ;;  %8069 = vmatprep.mubr.msk.f32.mxu0 %vm346_vm0, %v9516_v53  ;;  %v515_v2 = vadd.f32 %v9300_v5, %v476_v26  ;;  %v516_v26 = vadd.f32 %v9300_v5, %v477_v27  ;;  %8214 = vmatprep.subr.mxu1 %v9525_v57 }
  0x44   : > { %608 = vst.msk [vmem:[#allocation2 + $0x51] sm:$0xff] %vm346_vm0, %v9426_v12  ;;  %13214 = vst [vmem:[#allocation17_spill] sm:$0xff] %v9470_v23  ;;  %v9543_v6 = vsel %vm738_vm3, %v784_v50, %v785_v54  ;;  %8070 = vmatmul.mubr.msk.f32.gmra.mxu0 %vm346_vm0, %v9532_v58  ;;  %v9548_v7 = vsel %vm738_vm3, %v785_v54, %v787_v55 }
  0x45   : > { %591 = vst.msk [vmem:[%s9328_s28 + $0xa0] sm:$0xff] %vm346_vm0, %v9444_v14  ;;  %623 = vst.msk [vmem:[#allocation2 + $0x109] sm:$0xff] %vm346_vm0, %v9444_v14  ;;  %8093 = vmatprep.mubr.msk.f32.mxu1 %vm346_vm0, %v9543_v6 }
  0x46   : > { %592 = vst.msk [vmem:[%s9328_s28 + $0xa8] sm:$0xff] %vm346_vm0, %v9470_v23  ;;  %624 = vst.msk [vmem:[#allocation2 + $0x111] sm:$0xff] %vm346_vm0, %v9470_v23  ;;  %v9550_v8 = vld [vmem:[#allocation2 + $0x30] sm:$0xff]  ;;  %v9552_v9 = vld [vmem:[#allocation2 + $0x38] sm:$0xff]  ;;  %8094 = vmatmul.mubr.msk.f32.gmra.mxu1 %vm346_vm0, %v9548_v7 }
  0x47   : > { %13215 = vst [vmem:[#allocation18_spill] sm:$0xff] %v9502_v46  ;;  %13216 = vst [vmem:[#allocation19_spill] sm:$0xff] %v9505_v47  ;;  %v9554_v13 = vld [vmem:[#allocation2 + $0xf0] sm:$0xff]  ;;  %v749_v17 = vrot.slane %v9550_v8, 1  ;;  %v750_v18 = vrot.slane %v9552_v9, 1 }
  0x48   : > { %13217 = vst [vmem:[#allocation20_spill] sm:$0xff] %v9516_v53  ;;  %13218 = vst [vmem:[#allocation21_spill] sm:$0xff] %v9520_v56  ;;  %v789_v25 = vrot.slane %v9554_v13, 1  ;;  %v9569_v28 = vld [vmem:[#allocation2 + $0x40] sm:$0x3] }
  0x49   : > { %13219 = vst [vmem:[#allocation22_spill] sm:$0xff] %v9532_v58  ;;  %13220 = vst [vmem:[#allocation23_spill] sm:$0xff] %v9534_v59  ;;  %v9566_v19 = vld [vmem:[#allocation2 + $0xf8] sm:$0xff]  ;;  %v752_v30 = vrot.slane %v9569_v28, 1  ;;  %v9585_v35 = vld [vmem:[#allocation2 + $0x100] sm:$0x3]  ;;  %v9596_v27 = vsel %vm738_vm3, %v749_v17, %v750_v18 }
  0x4a   : > { %13221 = vst [vmem:[#allocation24_spill] sm:$0xff] %v9537_v61  ;;  %13222 = vst [vmem:[#allocation25_spill] sm:$0xff] %v9543_v6  ;;  %v790_v29 = vrot.slane %v9566_v19, 1  ;;  %v9587_v36 = vld [vmem:[#allocation2 + $0x48] sm:$0xff]  ;;  %v792_v50 = vrot.slane %v9585_v35, 1  ;;  %8072 = vmatprep.mubr.msk.f32.mxu0 %vm346_vm0, %v9596_v27 }
  0x4b   : > { %13223 = vst [vmem:[#allocation26_spill] sm:$0xff] %v9548_v7  ;;  %577 = vst.msk [vmem:[%s9328_s28 + $0x30] sm:$0xff] %vm346_vm0, %v9520_v56  ;;  %v9589_v37 = vld [vmem:[#allocation2 + $0x50] sm:$0xff]  ;;  %v754_v51 = vrot.slane %v9587_v36, 1  ;;  %v9611_v63 = vsel %vm738_vm3, %v750_v18, %v752_v30  ;;  %v9615_v14 = vld [vmem:[#allocation2 + $0x58] sm:$0x3] }
  0x4c   : > { %609 = vst.msk [vmem:[#allocation2 + $0x61] sm:$0xff] %vm346_vm0, %v9520_v56  ;;  %578 = vst.msk [vmem:[%s9328_s28 + $0x38] sm:$0xff] %vm346_vm0, %v9534_v59  ;;  %v755_v54 = vrot.slane %v9589_v37, 1  ;;  %v9601_v55 = vld [vmem:[#allocation2 + $0x108] sm:$0xff]  ;;  %v9608_v62 = vsel %vm738_vm3, %v789_v25, %v790_v29  ;;  %8073 = vmatmul.mubr.msk.f32.gmra.mxu0 %vm346_vm0, %v9611_v63  ;;  %v9624_v25 = vsel %vm738_vm3, %v790_v29, %v792_v50  ;;  %v757_v30 = vrot.slane %v9615_v14, 1 }
  0x4d   : > { %610 = vst.msk [vmem:[#allocation2 + $0x69] sm:$0xff] %vm346_vm0, %v9534_v59  ;;  %593 = vst.msk [vmem:[%s9328_s28 + $0xb0] sm:$0xff] %vm346_vm0, %v9537_v61  ;;  %v794_v17 = vrot.slane %v9601_v55, 1  ;;  %v9617_v10 = vld [vmem:[#allocation2 + $0x118] sm:$0x3]  ;;  %8096 = vmatprep.mubr.msk.f32.mxu1 %vm346_vm0, %v9608_v62  ;;  %v9639_v29 = vmax.f32 %v530_v60, 0.0  ;;  %v531_v60 = vadd.f32 %v9300_v5, %v492_v42  ;;  %v479_v42 = vmul.f32 %v9289_v4, %v440_v44 }
  0x4e   : > { %625 = vst.msk [vmem:[#allocation2 + $0x121] sm:$0xff] %vm346_vm0, %v9537_v61  ;;  %13224 = vst [vmem:[#allocation27_spill] sm:$0xff] %v9596_v27  ;;  %v9603_v61 = vld [vmem:[#allocation2 + $0x110] sm:$0xff]  ;;  %v9627_v18 = vsel %vm738_vm3, %v754_v51, %v755_v54  ;;  %v797_v3 = vrot.slane %v9617_v10, 1  ;;  %v9641_v50 = vmax.f32 %v515_v2, 0.0  ;;  %v9643_v51 = vmax.f32 %v516_v26, 0.0  ;;  %8097 = vmatmul.mubr.msk.f32.gmra.mxu1 %vm346_vm0, %v9624_v25 }
  0x4f   : > { %13225 = vst [vmem:[#allocation28_spill] sm:$0xff] %v9608_v62  ;;  %13226 = vst [vmem:[#allocation29_spill] sm:$0xff] %v9611_v63  ;;  %v795_v23 = vrot.slane %v9603_v61, 1  ;;  %8075 = vmatprep.mubr.msk.f32.mxu0 %vm346_vm0, %v9627_v18  ;;  %v9648_v59 = vsel %vm738_vm3, %v755_v54, %v757_v30  ;;  %v532_v2 = vadd.f32 %v9300_v5, %v493_v45  ;;  %v441_v54 = vld [vmem:[%s9295_s23 + $0x60] sm:$0xff] }
  0x50   : > { %13227 = vst [vmem:[#allocation30_spill] sm:$0xff] %v9624_v25  ;;  %13228 = vst [vmem:[#allocation31_spill] sm:$0xff] %v9627_v18  ;;  %v494_v45 = vmul.f32 %v9289_v4, %v455_v33  ;;  %8076 = vmatmul.mubr.msk.f32.gmra.mxu0 %vm346_vm0, %v9648_v59  ;;  %v518_v44 = vadd.f32 %v9300_v5, %v479_v42  ;;  %v481_v42 = vmul.f32 %v9289_v4, %v442_v1 }
  0x51   : > { %v9637_v32 = vsel %vm738_vm3, %v794_v17, %v795_v23  ;;  %13230 = vst [vmem:[#allocation33_spill] sm:$0xff] %v9639_v29  ;;  %13231 = vst [vmem:[#allocation34_spill] sm:$0xff] %v9641_v50  ;;  %v9651_v56 = vsel %vm738_vm3, %v795_v23, %v797_v3  ;;  %v456_v17 = vld [vmem:[%s9295_s23 + $0xd8] sm:$0xff]  ;;  %v478_v23 = vmul.f32 %v9289_v4, %v439_v49 }
  0x52   : > { %13229 = vst [vmem:[#allocation32_spill] sm:$0xff] %v9637_v32  ;;  %13232 = vst [vmem:[#allocation35_spill] sm:$0xff] %v9643_v51  ;;  %8099 = vmatprep.mubr.msk.f32.mxu1 %vm346_vm0, %v9637_v32  ;;  %v495_v33 = vmul.f32 %v9289_v4, %v456_v17  ;;  %v480_v17 = vmul.f32 %v9289_v4, %v441_v54 }
  0x53   : > { %13233 = vst [vmem:[#allocation36_spill] sm:$0xff] %v9648_v59  ;;  %13234 = vst [vmem:[#allocation37_spill] sm:$0xff] %v9651_v56  ;;  %v9653_v12 = vld [vmem:[#allocation2 + $0x60] sm:$0xff]  ;;  %v517_v49 = vadd.f32 %v9300_v5, %v478_v23  ;;  %8100 = vmatmul.mubr.msk.f32.gmra.mxu1 %vm346_vm0, %v9651_v56 }
  0x54   : > { %v9660_v26 = vld [vmem:[#allocation2 + $0x68] sm:$0xff]  ;;  %v759_v11 = vrot.slane %v9653_v12, 1  ;;  %594 = vst.msk [vmem:[%s9328_s28 + $0xb8] sm:$0xff] %vm346_vm0, %v9639_v29  ;;  %626 = vst.msk [vmem:[#allocation2 + $0x129] sm:$0xff] %vm346_vm0, %v9639_v29  ;;  %v9668_v3 = vld [vmem:[#allocation2 + $0x70] sm:$0x3]  ;;  %v534_v23 = vadd.f32 %v9300_v5, %v495_v33  ;;  %v519_v54 = vadd.f32 %v9300_v5, %v480_v17 }
  0x55   : > { %579 = vst.msk [vmem:[%s9328_s28 + $0x40] sm:$0xff] %vm346_vm0, %v9641_v50  ;;  %580 = vst.msk [vmem:[%s9328_s28 + $0x48] sm:$0xff] %vm346_vm0, %v9643_v51  ;;  %v760_v30 = vrot.slane %v9660_v26, 1  ;;  %v762_v29 = vrot.slane %v9668_v3, 1 }
  0x56   : > { %611 = vst.msk [vmem:[#allocation2 + $0x79] sm:$0xff] %vm346_vm0, %v9641_v50  ;;  %612 = vst.msk [vmem:[#allocation2 + $0x81] sm:$0xff] %vm346_vm0, %v9643_v51  ;;  %v9688_v50 = vmax.f32 %v531_v60, 0.0  ;;  %v9691_v51 = vmax.f32 %v532_v2, 0.0  ;;  %v9703_v60 = vld [vmem:[#allocation2 + $0x120] sm:$0xff]  ;;  %v533_v2 = vadd.f32 %v9300_v5, %v494_v45  ;;  %v9746_v1 = vmax.f32 %v534_v23, 0.0 }
  0x57   : > { %v9701_v39 = vsel %vm738_vm3, %v759_v11, %v760_v30  ;;  %v9706_v32 = vsel %vm738_vm3, %v760_v30, %v762_v29  ;;  %v9722_v11 = vmax.f32 %v517_v49, 0.0  ;;  %v9724_v29 = vmax.f32 %v518_v44, 0.0 }
  0x58   : > { %13235 = vst [vmem:[#allocation38_spill] sm:$0xff] %v9688_v50  ;;  %13236 = vst [vmem:[#allocation39_spill] sm:$0xff] %v9691_v51  ;;  %8078 = vmatprep.mubr.msk.f32.mxu0 %vm346_vm0, %v9701_v39  ;;  %v9730_v45 = vmax.f32 %v533_v2, 0.0  ;;  %v496_v30 = vmul.f32 %v9289_v4, %v457_v0  ;;  %v799_v49 = vrot.slane %v9703_v60, 1  ;;  %v520_v0 = vadd.f32 %v9300_v5, %v481_v42 }
  0x59   : > { %13237 = vst [vmem:[#allocation40_spill] sm:$0xff] %v9701_v39  ;;  %13238 = vst [vmem:[#allocation41_spill] sm:$0xff] %v9706_v32  ;;  %8079 = vmatmul.mubr.msk.f32.gmra.mxu0 %vm346_vm0, %v9706_v32  ;;  %v9760_v2 = vmax.f32 %v519_v54, 0.0  ;;  %v1400_v39 = vrot.slane %v9311_v15, 2 }
  0x5a   : > { %595 = vst.msk [vmem:[%s9328_s28 + $0xc0] sm:$0xff] %vm346_vm0, %v9688_v50  ;;  %627 = vst.msk [vmem:[#allocation2 + $0x139] sm:$0xff] %vm346_vm0, %v9688_v50  ;;  %v535_v17 = vadd.f32 %v9300_v5, %v496_v30  ;;  %v9778_v30 = vmax.f32 %v520_v0, 0.0 }
  0x5b   : > { %596 = vst.msk [vmem:[%s9328_s28 + $0xc8] sm:$0xff] %vm346_vm0, %v9691_v51  ;;  %628 = vst.msk [vmem:[#allocation2 + $0x141] sm:$0xff] %vm346_vm0, %v9691_v51  ;;  %v497_v51 = vmul.f32 %v9289_v4, %v458_v40  ;;  %v9749_v40 = vld [vmem:[#allocation2 + $0x128] sm:$0xff]  ;;  %v9751_v44 = vld [vmem:[#allocation2 + $0x130] sm:$0x3] }
  0x5c   : > { %13239 = vst [vmem:[#allocation42_spill] sm:$0xff] %v9722_v11  ;;  %13240 = vst [vmem:[#allocation43_spill] sm:$0xff] %v9724_v29  ;;  %v800_v42 = vrot.slane %v9749_v40, 1  ;;  %v802_v50 = vrot.slane %v9751_v44, 1 }
  0x5d   : > { %13241 = vst [vmem:[#allocation44_spill] sm:$0xff] %v9730_v45  ;;  %581 = vst.msk [vmem:[%s9328_s28 + $0x50] sm:$0xff] %vm346_vm0, %v9722_v11  ;;  %v9753_v33 = vld [vmem:[#allocation2 + $0x78] sm:$0xff]  ;;  %v536_v23 = vadd.f32 %v9300_v5, %v497_v51  ;;  %v9769_v56 = vld [vmem:[#allocation2 + $0x88] sm:$0x3] }
  0x5e   : > { %582 = vst.msk [vmem:[%s9328_s28 + $0x58] sm:$0xff] %vm346_vm0, %v9724_v29  ;;  %613 = vst.msk [vmem:[#allocation2 + $0x91] sm:$0xff] %vm346_vm0, %v9722_v11  ;;  %v764_v11 = vrot.slane %v9753_v33, 1  ;;  %v767_v51 = vrot.slane %v9769_v56, 1  ;;  %v9788_v25 = vsel %vm738_vm3, %v799_v49, %v800_v42 }
  0x5f   : > { %614 = vst.msk [vmem:[#allocation2 + $0x99] sm:$0xff] %vm346_vm0, %v9724_v29  ;;  %13242 = vst [vmem:[#allocation45_spill] sm:$0xff] %v9746_v1  ;;  %v9766_v29 = vld [vmem:[#allocation2 + $0x80] sm:$0xff]  ;;  %v9795_v0 = vmax.f32 %v536_v23, 0.0  ;;  %8102 = vmatprep.mubr.msk.f32.mxu1 %vm346_vm0, %v9788_v25 }
  0x60   : > { %597 = vst.msk [vmem:[%s9328_s28 + $0xd0] sm:$0xff] %vm346_vm0, %v9730_v45  ;;  %629 = vst.msk [vmem:[#allocation2 + $0x151] sm:$0xff] %vm346_vm0, %v9730_v45  ;;  %v765_v54 = vrot.slane %v9766_v29, 1  ;;  %v9785_v45 = vmax.f32 %v535_v17, 0.0 }
  0x61   : > { %13243 = vst [vmem:[#allocation46_spill] sm:$0xff] %v9760_v2  ;;  %598 = vst.msk [vmem:[%s9328_s28 + $0xd8] sm:$0xff] %vm346_vm0, %v9746_v1  ;;  %v9793_v62 = vld [vmem:[#allocation2 + $0x138] sm:$0xff] }
  0x62   : > { %630 = vst.msk [vmem:[#allocation2 + $0x159] sm:$0xff] %vm346_vm0, %v9746_v1  ;;  %13244 = vst [vmem:[#allocation47_spill] sm:$0xff] %v9778_v30  ;;  %v9791_v1 = vsel %vm738_vm3, %v800_v42, %v802_v50  ;;  %v9800_v7 = vsel %vm738_vm3, %v764_v11, %v765_v54  ;;  %v804_v17 = vrot.slane %v9793_v62, 1  ;;  %v9806_v49 = vsel %vm738_vm3, %v765_v54, %v767_v51  ;;  %v9808_v50 = vld [vmem:[#allocation2 + $0x148] sm:$0x3] }
  0x63   : > { %583 = vst.msk [vmem:[%s9328_s28 + $0x60] sm:$0xff] %vm346_vm0, %v9760_v2  ;;  %615 = vst.msk [vmem:[#allocation2 + $0xa9] sm:$0xff] %vm346_vm0, %v9760_v2  ;;  %v9802_v2 = vld [vmem:[#allocation2 + $0x140] sm:$0xff]  ;;  %8103 = vmatmul.mubr.msk.f32.gmra.mxu1 %vm346_vm0, %v9791_v1  ;;  %8081 = vmatprep.mubr.msk.f32.mxu0 %vm346_vm0, %v9800_v7  ;;  %v807_v23 = vrot.slane %v9808_v50, 1 }
  0x64   : > { %13245 = vst [vmem:[#allocation48_spill] sm:$0xff] %v9785_v45  ;;  %13246 = vst [vmem:[#allocation49_spill] sm:$0xff] %v9788_v25  ;;  %v805_v11 = vrot.slane %v9802_v2, 1  ;;  %8082 = vmatmul.mubr.msk.f32.gmra.mxu0 %vm346_vm0, %v9806_v49 }
  0x65   : > { %13247 = vst [vmem:[#allocation50_spill] sm:$0xff] %v9791_v1  ;;  %13248 = vst [vmem:[#allocation51_spill] sm:$0xff] %v9795_v0  ;;  %v9833_v42 = vld [vmem:[#allocation2 + $0x90] sm:$0xff] }
  0x66   : > { %13249 = vst [vmem:[#allocation52_spill] sm:$0xff] %v9800_v7  ;;  %13250 = vst [vmem:[#allocation53_spill] sm:$0xff] %v9806_v49  ;;  %v9835_v54 = vld [vmem:[#allocation2 + $0x98] sm:$0xff]  ;;  %v9837_v51 = vld [vmem:[#allocation2 + $0xa0] sm:$0x3]  ;;  %v769_v1 = vrot.slane %v9833_v42, 1 }
  0x67   : > { %584 = vst.msk [vmem:[%s9328_s28 + $0x68] sm:$0xff] %vm346_vm0, %v9778_v30  ;;  %616 = vst.msk [vmem:[#allocation2 + $0xb1] sm:$0xff] %vm346_vm0, %v9778_v30  ;;  %v9843_v30 = vsel %vm738_vm3, %v805_v11, %v807_v23  ;;  %v770_v25 = vrot.slane %v9835_v54, 1  ;;  %v772_v46 = vrot.slane %v9837_v51, 1 }
  0x68   : > { %599 = vst.msk [vmem:[%s9328_s28 + $0xe0] sm:$0xff] %vm346_vm0, %v9785_v45  ;;  %631 = vst.msk [vmem:[#allocation2 + $0x169] sm:$0xff] %vm346_vm0, %v9785_v45  ;;  %v9840_v45 = vsel %vm738_vm3, %v804_v17, %v805_v11 }
  0x69   : > { %600 = vst.msk [vmem:[%s9328_s28 + $0xe8] sm:$0xff] %vm346_vm0, %v9795_v0  ;;  %632 = vst.msk [vmem:[#allocation2 + $0x171] sm:$0xff] %vm346_vm0, %v9795_v0  ;;  %v9847_v0 = vld [vmem:[#allocation2 + $0x150] sm:$0xff]  ;;  %8105 = vmatprep.mubr.msk.f32.mxu1 %vm346_vm0, %v9840_v45  ;;  %v9851_v6 = vld [vmem:[#allocation2 + $0x158] sm:$0xff]  ;;  %v9860_v11 = vsel %vm738_vm3, %v769_v1, %v770_v25 }
  0x6a   : > { %13251 = vst [vmem:[#allocation54_spill] sm:$0xff] %v9840_v45  ;;  %13252 = vst [vmem:[#allocation55_spill] sm:$0xff] %v9843_v30  ;;  %v809_v47 = vrot.slane %v9847_v0, 1  ;;  %v9855_v17 = vld [vmem:[#allocation2 + $0x160] sm:$0x3]  ;;  %8106 = vmatmul.mubr.msk.f32.gmra.mxu1 %vm346_vm0, %v9843_v30  ;;  %v810_v23 = vrot.slane %v9851_v6, 1  ;;  %8084 = vmatprep.mubr.msk.f32.mxu0 %vm346_vm0, %v9860_v11  ;;  %v9869_v45 = vsel %vm738_vm3, %v770_v25, %v772_v46 }
  0x6b   : > { %13253 = vst [vmem:[#allocation56_spill] sm:$0xff] %v9860_v11  ;;  %v812_v49 = vrot.slane %v9855_v17, 1  ;;  %v9864_v7 = vld [vmem:[#allocation2 + $0xa8] sm:$0xff]  ;;  %13254 = vst [vmem:[#allocation57_spill] sm:$0xff] %v9869_v45  ;;  %v1401_v30 = vrot.slane %v9313_v16, 2  ;;  %8085 = vmatmul.mubr.msk.f32.gmra.mxu0 %vm346_vm0, %v9869_v45 }
  0x6c   : > { %v774_v32 = vrot.slane %v9864_v7, 1  ;;  %v9875_v1 = vsel %vm738_vm3, %v809_v47, %v810_v23 }
  0x6d   : > { %13255 = vst [vmem:[#allocation58_spill] sm:$0xff] %v9875_v1  ;;  %v9880_v59 = vsel %vm738_vm3, %v810_v23, %v812_v49  ;;  %8108 = vmatprep.mubr.msk.f32.mxu1 %vm346_vm0, %v9875_v1  ;;  %v1403_v23 = vrot.slane %v9322_v24, 2 }
  0x6e   : > { %13256 = vst [vmem:[#allocation59_spill] sm:$0xff] %v9880_v59  ;;  %v9882_v18 = vld [vmem:[#allocation2 + $0xb0] sm:$0xff]  ;;  %v9886_v46 = vld [vmem:[#allocation2 + $0xb8] sm:$0x3]  ;;  %8109 = vmatmul.mubr.msk.f32.gmra.mxu1 %vm346_vm0, %v9880_v59 }
  0x6f   : > { %v9884_v11 = vld [vmem:[#allocation2 + $0x168] sm:$0xff]  ;;  %v775_v25 = vrot.slane %v9882_v18, 1  ;;  %v777_v45 = vrot.slane %v9886_v46, 1 }
  0x70   : > { %13257 = vst [vmem:[#allocation60_spill] sm:$0xff] %v9884_v11  ;;  %v9891_v47 = vld [vmem:[#allocation2 + $0x170] sm:$0xff]  ;;  %v814_v63 = vrot.slane %v9884_v11, 1  ;;  %v9895_v49 = vld [vmem:[#allocation2 + $0x178] sm:$0x3]  ;;  %v1402_v11 = vsel %vm1399_vm4, %v1400_v39, %v1401_v30  ;;  %v1404_v39 = vsel %vm1399_vm4, %v1401_v30, %v1403_v23 }
  0x71   : > { %v815_v27 = vrot.slane %v9891_v47, 1  ;;  %v817_v58 = vrot.slane %v9895_v49, 1  ;;  %v9903_v1 = vsel %vm738_vm3, %v774_v32, %v775_v25  ;;  %v9906_v53 = vsel %vm738_vm3, %v775_v25, %v777_v45  ;;  %v9951_v30 = vld [vmem:[%s13020_s3 + $0x30] sm:$0xff] }
  0x72   : > { %13258 = vst [vmem:[#allocation61_spill] sm:$0xff] %v9903_v1  ;;  %13259 = vst [vmem:[#allocation62_spill] sm:$0xff] %v9906_v53  ;;  %8087 = vmatprep.mubr.msk.f32.mxu0 %vm346_vm0, %v9903_v1  ;;  %v1405_v32 = vrot.slane %v9478_v31, 2  ;;  %v1406_v45 = vrot.slane %v9480_v34, 2  ;;  %v459_v23 = vld [vmem:[%s9295_s23 + $0xf0] sm:$0xff] }
  0x73   : > { %v9912_v24 = vsel %vm738_vm3, %v814_v63, %v815_v27  ;;  %v9915_v59 = vsel %vm738_vm3, %v815_v27, %v817_v58  ;;  %8088 = vmatmul.mubr.msk.f32.gmra.mxu0 %vm346_vm0, %v9906_v53  ;;  %v1408_v58 = vrot.slane %v9492_v41, 2  ;;  %v1410_v27 = vrot.slane %v9550_v8, 2 }
  0x74   : > { %8111 = vmatprep.mubr.msk.f32.mxu1 %vm346_vm0, %v9912_v24  ;;  %8166 = vmatprep.mubr.msk.f32.mxu0 %vm346_vm0, %v1402_v11  ;;  %v1411_v63 = vrot.slane %v9552_v9, 2  ;;  %v9934_v25 = vsel %vm1399_vm4, %v1405_v32, %v1406_v45  ;;  %v9939_v11 = vld [vmem:[%s13020_s3 + $0x28] sm:$0xff]  ;;  %v1413_v41 = vrot.slane %v9569_v28, 2  ;;  %v1416_v32 = vrot.slane %v9589_v37, 2 }
  0x75   : > { %8112 = vmatmul.mubr.msk.f32.gmra.mxu1 %vm346_vm0, %v9915_v59 }
  0x76   : > { %8116 = vmatprep.mubr.msk.f32.mxu1 %vm346_vm0, %v9311_v15  ;;  %v9945_v15 = vsel %vm1399_vm4, %v1406_v45, %v1408_v58  ;;  %v460_v45 = vld [vmem:[%s9295_s23 + $0xf8] sm:$0xff]  ;;  %v9975_v28 = vsel %vm1399_vm4, %v1411_v63, %v1413_v41 }
  0x77   : > { %8167 = vmatmul.mubr.msk.f32.vlgmr.msra.gmra.mxu0 %vm346_vm0, %v1404_v39  ;;  %13260 = vst [vmem:[#allocation63_spill] sm:$0xff] %v9945_v15  ;;  %13261 = vst [vmem:[#allocation64_spill] sm:$0xff] %v9975_v28  ;;  %v1418_v39 = vrot.slane %v9615_v14, 2  ;;  %v499_v58 = vmul.f32 %v9289_v4, %v460_v45  ;;  %v1423_v14 = vrot.slane %v9668_v3, 2  ;;  %v1425_v45 = vrot.slane %v9753_v33, 2 }
  0x78   : > { %8265 = vmatpush3.msra.mxu0 %v9356_v43  ;;  %v1415_v43 = vrot.slane %v9587_v36, 2  ;;  %8169 = vmatprep.mubr.msk.f32.mxu0 %vm346_vm0, %v9934_v25  ;;  %v1428_v3 = vrot.slane %v9769_v56, 2 }
  0x79   : > { %8117 = vmatmul.mubr.msk.f32.vlgmr.msra.gmra.mxu1 %vm346_vm0, %v9313_v16  ;;  %v9958_v16 = vsel %vm1399_vm4, %v1410_v27, %v1411_v63  ;;  %8364 = vmatprep.subr.mxu0 %v9951_v30  ;;  %v538_v41 = vadd.f32 %v9300_v5, %v499_v58  ;;  %v1431_v58 = vrot.slane %v9835_v54, 2 }
  0x7a   : > { %8215 = vmatpush3.msra.mxu1 %v9525_v57  ;;  %8119 = vmatprep.mubr.msk.f32.mxu1 %vm346_vm0, %v9478_v31  ;;  %v498_v57 = vmul.f32 %v9289_v4, %v459_v23  ;;  %v9982_v27 = vsel %vm1399_vm4, %v1415_v43, %v1416_v32  ;;  %v1420_v23 = vrot.slane %v9653_v12, 2  ;;  %v9994_v4 = vsel %vm1399_vm4, %v1416_v32, %v1418_v39 }
  0x7b   : > { %8314 = vmatprep.subr.mxu1 %v9939_v11  ;;  %8170 = vmatmul.mubr.msk.f32.gmra.mxu0 %vm346_vm0, %v9945_v15  ;;  %13262 = vst [vmem:[#allocation65_spill] sm:$0xff] %v9982_v27  ;;  %v1421_v15 = vrot.slane %v9660_v26, 2  ;;  %v1430_v39 = vrot.slane %v9833_v42, 2 }
  0x7c   : > { %8172 = vmatprep.mubr.msk.f32.mxu0 %vm346_vm0, %v9958_v16  ;;  %v537_v63 = vadd.f32 %v9300_v5, %v498_v57  ;;  %v1426_v57 = vrot.slane %v9766_v29, 2 }
  0x7d   : > { %8120 = vmatmul.mubr.msk.f32.gmra.mxu1 %vm346_vm0, %v9480_v34  ;;  %v10001_v43 = vsel %vm1399_vm4, %v1420_v23, %v1421_v15  ;;  %v10021_v5 = vsel %vm1399_vm4, %v1421_v15, %v1423_v14  ;;  %v1433_v15 = vrot.slane %v9837_v51, 2  ;;  %v10049_v23 = vsel %vm1399_vm4, %v1430_v39, %v1431_v58 }
  0x7e   : > { %8122 = vmatprep.mubr.msk.f32.mxu1 %vm346_vm0, %v9550_v8  ;;  %v10032_v32 = vsel %vm1399_vm4, %v1425_v45, %v1426_v57  ;;  %v10043_v56 = vsel %vm1399_vm4, %v1426_v57, %v1428_v3  ;;  %v1436_v14 = vrot.slane %v9882_v18, 2  ;;  %v1440_v57 = vrot.slane %v9449_v20, 2 }
  0x7f   : > { %8173 = vmatmul.mubr.msk.f32.gmra.mxu0 %vm346_vm0, %v9975_v28  ;;  %v10005_v28 = vmax.f32 %v537_v63, 0.0  ;;  %v1435_v63 = vrot.slane %v9864_v7, 2  ;;  %v10060_v51 = vsel %vm1399_vm4, %v1431_v58, %v1433_v15  ;;  %v1441_v3 = vrot.slane %v9451_v21, 2 }
  0x80   : > { %8175 = vmatprep.mubr.msk.f32.mxu0 %vm346_vm0, %v9982_v27  ;;  %v10007_v27 = vmax.f32 %v538_v41, 0.0  ;;  %v1438_v41 = vrot.slane %v9886_v46, 2  ;;  %v1443_v39 = vrot.slane %v9453_v22, 2  ;;  %v1445_v15 = vrot.slane %v9490_v38, 2 }
  0x81   : > { %8123 = vmatmul.mubr.msk.f32.gmra.mxu1 %vm346_vm0, %v9552_v9  ;;  %13263 = vst [vmem:[#allocation66_spill] sm:$0xff] %v10005_v28  ;;  %601 = vst.msk [vmem:[%s9328_s28 + $0xf0] sm:$0xff] %vm346_vm0, %v10005_v28  ;;  %v10066_v45 = vsel %vm1399_vm4, %v1435_v63, %v1436_v14  ;;  %v10083_v58 = vsel %vm1399_vm4, %v1440_v57, %v1441_v3  ;;  %v1446_v63 = vrot.slane %v9507_v48, 2  ;;  %v1450_v57 = vrot.slane %v9554_v13, 2 }
  0x82   : > { %8125 = vmatprep.mubr.msk.f32.mxu1 %vm346_vm0, %v9587_v36  ;;  %13264 = vst [vmem:[#allocation67_spill] sm:$0xff] %v10007_v27  ;;  %633 = vst.msk [vmem:[#allocation2 + $0x181] sm:$0xff] %vm346_vm0, %v10005_v28  ;;  %v10077_v46 = vsel %vm1399_vm4, %v1436_v14, %v1438_v41  ;;  %v10094_v22 = vsel %vm1399_vm4, %v1441_v3, %v1443_v39  ;;  %v1448_v14 = vrot.slane %v9511_v52, 2  ;;  %v1453_v3 = vrot.slane %v9585_v35, 2 }
  0x83   : > { %8176 = vmatmul.mubr.msk.f32.gmra.mxu0 %vm346_vm0, %v9994_v4  ;;  %602 = vst.msk [vmem:[%s9328_s28 + $0xf8] sm:$0xff] %vm346_vm0, %v10007_v27  ;;  %634 = vst.msk [vmem:[#allocation2 + $0x189] sm:$0xff] %vm346_vm0, %v10007_v27  ;;  %v10100_v41 = vsel %vm1399_vm4, %v1445_v15, %v1446_v63  ;;  %v1451_v27 = vrot.slane %v9566_v19, 2  ;;  %v1455_v15 = vrot.slane %v9601_v55, 2  ;;  %v1456_v28 = vrot.slane %v9603_v61, 2 }
  0x84   : > { %8178 = vmatprep.mubr.msk.f32.mxu0 %vm346_vm0, %v10001_v43  ;;  %v10111_v52 = vsel %vm1399_vm4, %v1446_v63, %v1448_v14  ;;  %v1458_v63 = vrot.slane %v9617_v10, 2 }
  0x85   : > { %8126 = vmatmul.mubr.msk.f32.gmra.mxu1 %vm346_vm0, %v9589_v37  ;;  %13265 = vst [vmem:[#allocation68_spill] sm:$0xff] %v10111_v52  ;;  %v10117_v39 = vsel %vm1399_vm4, %v1450_v57, %v1451_v27  ;;  %v10128_v35 = vsel %vm1399_vm4, %v1451_v27, %v1453_v3  ;;  %v10134_v14 = vsel %vm1399_vm4, %v1455_v15, %v1456_v28  ;;  %v1460_v57 = vrot.slane %v9703_v60, 2 }
  0x86   : > { %8128 = vmatprep.mubr.msk.f32.mxu1 %vm346_vm0, %v9653_v12  ;;  %13266 = vst [vmem:[#allocation69_spill] sm:$0xff] %v10128_v35  ;;  %v10145_v10 = vsel %vm1399_vm4, %v1456_v28, %v1458_v63  ;;  %v1463_v27 = vrot.slane %v9751_v44, 2  ;;  %v1465_v15 = vrot.slane %v9793_v62, 2  ;;  %v1468_v28 = vrot.slane %v9808_v50, 2 }
  0x87   : > { %8179 = vmatmul.mubr.msk.f32.gmra.mxu0 %vm346_vm0, %v10021_v5  ;;  %13267 = vst [vmem:[#allocation70_spill] sm:$0xff] %v10145_v10 }
  0x88   : > { %8181 = vmatprep.mubr.msk.f32.mxu0 %vm346_vm0, %v10032_v32 }
  0x89   : > { %8129 = vmatmul.mubr.msk.f32.gmra.mxu1 %vm346_vm0, %v9660_v26 }
  0x8a   : > { %8131 = vmatprep.mubr.msk.f32.mxu1 %vm346_vm0, %v9753_v33 }
  0x8b   : > { %8182 = vmatmul.mubr.msk.f32.gmra.mxu0 %vm346_vm0, %v10043_v56 }
  0x8c   : > { %8184 = vmatprep.mubr.msk.f32.mxu0 %vm346_vm0, %v10049_v23 }
  0x8d   : > { %8132 = vmatmul.mubr.msk.f32.gmra.mxu1 %vm346_vm0, %v9766_v29 }
  0x8e   : > { %8134 = vmatprep.mubr.msk.f32.mxu1 %vm346_vm0, %v9833_v42 }
  0x8f   : > { %8185 = vmatmul.mubr.msk.f32.gmra.mxu0 %vm346_vm0, %v10060_v51 }
  0x90   : > { %8187 = vmatprep.mubr.msk.f32.mxu0 %vm346_vm0, %v10066_v45 }
  0x91   : > { %8135 = vmatmul.mubr.msk.f32.gmra.mxu1 %vm346_vm0, %v9835_v54 }
  0x92   : > { %8137 = vmatprep.mubr.msk.f32.mxu1 %vm346_vm0, %v9864_v7 }
  0x93   : > { %8188 = vmatmul.mubr.msk.f32.gmra.mxu0 %vm346_vm0, %v10077_v46 }
  0x94   : > { %8190 = vmatprep.mubr.msk.f32.mxu0 %vm346_vm0, %v10083_v58 }
  0x95   : > { %8138 = vmatmul.mubr.msk.f32.gmra.mxu1 %vm346_vm0, %v9882_v18 }
  0x96   : > { %8140 = vmatprep.mubr.msk.f32.mxu1 %vm346_vm0, %v9449_v20 }
  0x97   : > { %8191 = vmatmul.mubr.msk.f32.gmra.mxu0 %vm346_vm0, %v10094_v22 }
  0x98   : > { %8193 = vmatprep.mubr.msk.f32.mxu0 %vm346_vm0, %v10100_v41 }
  0x99   : > { %8141 = vmatmul.mubr.msk.f32.gmra.mxu1 %vm346_vm0, %v9451_v21 }
  0x9a   : > { %8143 = vmatprep.mubr.msk.f32.mxu1 %vm346_vm0, %v9490_v38 }
  0x9b   : > { %8194 = vmatmul.mubr.msk.f32.gmra.mxu0 %vm346_vm0, %v10111_v52  ;;  %v1461_v52 = vrot.slane %v9749_v40, 2 }
  0x9c   : > { %8196 = vmatprep.mubr.msk.f32.mxu0 %vm346_vm0, %v10117_v39 }
  0x9d   : > { %8144 = vmatmul.mubr.msk.f32.gmra.mxu1 %vm346_vm0, %v9507_v48  ;;  %v10151_v3 = vsel %vm1399_vm4, %v1460_v57, %v1461_v52  ;;  %v10162_v44 = vsel %vm1399_vm4, %v1461_v52, %v1463_v27  ;;  %v1470_v57 = vrot.slane %v9847_v0, 2  ;;  %v1473_v52 = vrot.slane %v9855_v17, 2 }
  0x9e   : > { %8146 = vmatprep.mubr.msk.f32.mxu1 %vm346_vm0, %v9554_v13  ;;  %13268 = vst [vmem:[#allocation71_spill] sm:$0xff] %v10151_v3  ;;  %13269 = vst [vmem:[#allocation72_spill] sm:$0xff] %v10162_v44 }
  0x9f   : > { %8197 = vmatmul.mubr.msk.f32.gmra.mxu0 %vm346_vm0, %v10128_v35  ;;  %v1466_v35 = vrot.slane %v9802_v2, 2 }
  0xa0   : > { %8199 = vmatprep.mubr.msk.f32.mxu0 %vm346_vm0, %v10134_v14 }
  0xa1   : > { %8147 = vmatmul.mubr.msk.f32.gmra.mxu1 %vm346_vm0, %v9566_v19  ;;  %v10168_v63 = vsel %vm1399_vm4, %v1465_v15, %v1466_v35  ;;  %v10179_v50 = vsel %vm1399_vm4, %v1466_v35, %v1468_v28  ;;  %v13270_v15 = vld [vmem:[#allocation60_spill] sm:$0xff]  ;;  %v1478_v35 = vrot.slane %v9895_v49, 2 }
  0xa2   : > { %8149 = vmatprep.mubr.msk.f32.mxu1 %vm346_vm0, %v9601_v55  ;;  %v13271_v49 = vld [vmem:[#allocation20_spill] sm:$0xff] }
  0xa3   : > { %8200 = vmatmul.mubr.msk.f32.gmra.mxu0 %vm346_vm0, %v10145_v10  ;;  %v1471_v10 = vrot.slane %v9851_v6, 2 }
  0xa4   : > { %8202 = vmatprep.mubr.msk.f32.mxu0 %vm346_vm0, %v10151_v3  ;;  %v1475_v3 = vrot.slane %v13270_v15, 2 }
  0xa5   : > { %8150 = vmatmul.mubr.msk.f32.gmra.mxu1 %vm346_vm0, %v9603_v61  ;;  %v10185_v27 = vsel %vm1399_vm4, %v1470_v57, %v1471_v10  ;;  %v10196_v17 = vsel %vm1399_vm4, %v1471_v10, %v1473_v52  ;;  %v10236_v57 = vld [vmem:[%s13020_s3 + $0x40] sm:$0xff]  ;;  %v13274_v52 = vld [vmem:[#allocation29_spill] sm:$0xff] }
  0xa6   : > { %8152 = vmatprep.mubr.msk.f32.mxu1 %vm346_vm0, %v9703_v60 }
  0xa7   : > { %8203 = vmatmul.mubr.msk.f32.gmra.mxu0 %vm346_vm0, %v10162_v44  ;;  %v1476_v44 = vrot.slane %v9891_v47, 2 }
  0xa8   : > { %8205 = vmatprep.mubr.msk.f32.mxu0 %vm346_vm0, %v10168_v63 }
  0xa9   : > { %8153 = vmatmul.mubr.msk.f32.gmra.mxu1 %vm346_vm0, %v9749_v40  ;;  %v10202_v28 = vsel %vm1399_vm4, %v1475_v3, %v1476_v44  ;;  %v10211_v10 = vsel %vm1399_vm4, %v1476_v44, %v1478_v35  ;;  %v13272_v3 = vld [vmem:[#allocation22_spill] sm:$0xff]  ;;  %v10228_v44 = vld [vmem:[%s13020_s3 + $0x38] sm:$0xff]  ;;  %v13278_v35 = vld [vmem:[#allocation41_spill] sm:$0xff] }
  0xaa   : > { %8155 = vmatprep.mubr.msk.f32.mxu1 %vm346_vm0, %v9793_v62 }
  0xab   : > { %8206 = vmatmul.mubr.msk.f32.gmra.mxu0 %vm346_vm0, %v10179_v50 }
  0xac   : > { %8208 = vmatprep.mubr.msk.f32.mxu0 %vm346_vm0, %v10185_v27 }
  0xad   : > { %8156 = vmatmul.mubr.msk.f32.gmra.mxu1 %vm346_vm0, %v9802_v2 }
  0xae   : > { %8158 = vmatprep.mubr.msk.f32.mxu1 %vm346_vm0, %v9847_v0 }
  0xaf   : > { %8209 = vmatmul.mubr.msk.f32.gmra.mxu0 %vm346_vm0, %v10196_v17 }
  0xb0   : > { %8211 = vmatprep.mubr.msk.f32.mxu0 %vm346_vm0, %v10202_v28 }
  0xb1   : > { %8159 = vmatmul.mubr.msk.f32.gmra.mxu1 %vm346_vm0, %v9851_v6 }
  0xb2   : > { %8161 = vmatprep.mubr.msk.f32.mxu1 %vm346_vm0, %v13270_v15 }
  0xb3   : > { %8212 = vmatmul.mubr.msk.f32.gmra.mxu0 %vm346_vm0, %v10211_v10 }
  0xb4   : > { %8266 = vmatprep.mubr.msk.f32.mxu0 %vm346_vm0, %v13271_v49  ;;  %v13279_v49 = vld [vmem:[#allocation52_spill] sm:$0xff] }
  0xb5   : > { %8162 = vmatmul.mubr.msk.f32.gmra.mxu1 %vm346_vm0, %v9891_v47 }
  0xb6   : > { %8216 = vmatprep.mubr.msk.f32.mxu1 %vm346_vm0, %v9478_v31  ;;  %v13273_v31 = vld [vmem:[#allocation27_spill] sm:$0xff] }
  0xb7   : > { %8267 = vmatmul.mubr.msk.f32.vlgmr.msra.gmra.mxu0 %vm346_vm0, %v13272_v3  ;;  %v13280_v3 = vld [vmem:[#allocation53_spill] sm:$0xff] }
  0xb8   : > { %8365 = vmatpush3.msra.mxu0 %v9951_v30  ;;  %8269 = vmatprep.mubr.msk.f32.mxu0 %vm346_vm0, %v13273_v31  ;;  %v13277_v30 = vld [vmem:[#allocation40_spill] sm:$0xff] }
  0xb9   : > { %8217 = vmatmul.mubr.msk.f32.vlgmr.msra.gmra.mxu1 %vm346_vm0, %v9480_v34  ;;  %8464 = vmatprep.subr.mxu0 %v10236_v57  ;;  %v13275_v34 = vld [vmem:[#allocation31_spill] sm:$0xff] }
  0xba   : > { %8315 = vmatpush3.msra.mxu1 %v9939_v11  ;;  %8219 = vmatprep.mubr.msk.f32.mxu1 %vm346_vm0, %v9550_v8  ;;  %v13276_v11 = vld [vmem:[#allocation36_spill] sm:$0xff] }
  0xbb   : > { %8414 = vmatprep.subr.mxu1 %v10228_v44  ;;  %8270 = vmatmul.mubr.msk.f32.gmra.mxu0 %vm346_vm0, %v13274_v52 }
  0xbc   : > { %8272 = vmatprep.mubr.msk.f32.mxu0 %vm346_vm0, %v13275_v34 }
  0xbd   : > { %8220 = vmatmul.mubr.msk.f32.gmra.mxu1 %vm346_vm0, %v9552_v9 }
  0xbe   : > { %8222 = vmatprep.mubr.msk.f32.mxu1 %vm346_vm0, %v9587_v36 }
  0xbf   : > { %8273 = vmatmul.mubr.msk.f32.gmra.mxu0 %vm346_vm0, %v13276_v11 }
  0xc0   : > { %8275 = vmatprep.mubr.msk.f32.mxu0 %vm346_vm0, %v13277_v30  ;;  %v13281_v30 = vld [vmem:[#allocation56_spill] sm:$0xff] }
  0xc1   : > { %8223 = vmatmul.mubr.msk.f32.gmra.mxu1 %vm346_vm0, %v9589_v37 }
  0xc2   : > { %8225 = vmatprep.mubr.msk.f32.mxu1 %vm346_vm0, %v9653_v12 }
  0xc3   : > { %8276 = vmatmul.mubr.msk.f32.gmra.mxu0 %vm346_vm0, %v13278_v35  ;;  %v13282_v35 = vld [vmem:[#allocation57_spill] sm:$0xff] }
  0xc4   : > { %8278 = vmatprep.mubr.msk.f32.mxu0 %vm346_vm0, %v13279_v49  ;;  %v13296_v49 = vld [vmem:[#allocation59_spill] sm:$0xff] }
  0xc5   : > { %8226 = vmatmul.mubr.msk.f32.gmra.mxu1 %vm346_vm0, %v9660_v26 }
  0xc6   : > { %8228 = vmatprep.mubr.msk.f32.mxu1 %vm346_vm0, %v9753_v33 }
  0xc7   : > { %8279 = vmatmul.mubr.msk.f32.gmra.mxu0 %vm346_vm0, %v13280_v3  ;;  %v10347_v3 = vld [vmem:[#allocation2 + $0x190] sm:$0x3] }
  0xc8   : > { %8281 = vmatprep.mubr.msk.f32.mxu0 %vm346_vm0, %v13281_v30  ;;  %v13283_v30 = vld [vmem:[#allocation18_spill] sm:$0xff] }
  0xc9   : > { %8229 = vmatmul.mubr.msk.f32.gmra.mxu1 %vm346_vm0, %v9766_v29 }
  0xca   : > { %8231 = vmatprep.mubr.msk.f32.mxu1 %vm346_vm0, %v9833_v42 }
  0xcb   : > { %8282 = vmatmul.mubr.msk.f32.gmra.mxu0 %vm346_vm0, %v13282_v35  ;;  %v13284_v35 = vld [vmem:[#allocation19_spill] sm:$0xff] }
  0xcc   : > { %8284 = vmatprep.mubr.msk.f32.mxu0 %vm346_vm0, %v9903_v1  ;;  %v13285_v1 = vld [vmem:[#allocation25_spill] sm:$0xff] }
  0xcd   : > { %8232 = vmatmul.mubr.msk.f32.gmra.mxu1 %vm346_vm0, %v9835_v54 }
  0xce   : > { %8234 = vmatprep.mubr.msk.f32.mxu1 %vm346_vm0, %v9864_v7 }
  0xcf   : > { %8285 = vmatmul.mubr.msk.f32.gmra.mxu0 %vm346_vm0, %v9906_v53  ;;  %v13286_v53 = vld [vmem:[#allocation26_spill] sm:$0xff] }
  0xd0   : > { %8287 = vmatprep.mubr.msk.f32.mxu0 %vm346_vm0, %v13283_v30  ;;  %v13287_v30 = vld [vmem:[#allocation28_spill] sm:$0xff] }
  0xd1   : > { %8235 = vmatmul.mubr.msk.f32.gmra.mxu1 %vm346_vm0, %v9882_v18 }
  0xd2   : > { %8237 = vmatprep.mubr.msk.f32.mxu1 %vm346_vm0, %v9449_v20  ;;  %v13288_v20 = vld [vmem:[#allocation30_spill] sm:$0xff] }
  0xd3   : > { %8288 = vmatmul.mubr.msk.f32.gmra.mxu0 %vm346_vm0, %v13284_v35 }
  0xd4   : > { %8290 = vmatprep.mubr.msk.f32.mxu0 %vm346_vm0, %v13285_v1  ;;  %v10335_v1 = vld [vmem:[#allocation2 + $0x188] sm:$0xff] }
  0xd5   : > { %8238 = vmatmul.mubr.msk.f32.gmra.mxu1 %vm346_vm0, %v9451_v21  ;;  %v13289_v21 = vld [vmem:[#allocation32_spill] sm:$0xff]  ;;  %v2070_v35 = vrot.slane %v10335_v1, 1 }
  0xd6   : > { %8240 = vmatprep.mubr.msk.f32.mxu1 %vm346_vm0, %v9490_v38 }
  0xd7   : > { %8291 = vmatmul.mubr.msk.f32.gmra.mxu0 %vm346_vm0, %v13286_v53  ;;  %v13290_v53 = vld [vmem:[#allocation37_spill] sm:$0xff] }
  0xd8   : > { %8293 = vmatprep.mubr.msk.f32.mxu0 %vm346_vm0, %v13287_v30  ;;  %v13291_v30 = vld [vmem:[#allocation49_spill] sm:$0xff] }
  0xd9   : > { %8241 = vmatmul.mubr.msk.f32.gmra.mxu1 %vm346_vm0, %v9507_v48 }
  0xda   : > { %8243 = vmatprep.mubr.msk.f32.mxu1 %vm346_vm0, %v9554_v13 }
  0xdb   : > { %8294 = vmatmul.mubr.msk.f32.gmra.mxu0 %vm346_vm0, %v13288_v20  ;;  %v13292_v20 = vld [vmem:[#allocation50_spill] sm:$0xff] }
  0xdc   : > { %8296 = vmatprep.mubr.msk.f32.mxu0 %vm346_vm0, %v13289_v21  ;;  %v13293_v21 = vld [vmem:[#allocation54_spill] sm:$0xff] }
  0xdd   : > { %8244 = vmatmul.mubr.msk.f32.gmra.mxu1 %vm346_vm0, %v9566_v19 }
  0xde   : > { %8246 = vmatprep.mubr.msk.f32.mxu1 %vm346_vm0, %v9601_v55 }
  0xdf   : > { %8297 = vmatmul.mubr.msk.f32.gmra.mxu0 %vm346_vm0, %v13290_v53  ;;  %v10333_v53 = vld [vmem:[#allocation2 + $0x180] sm:$0xff] }
  0xe0   : > { %8299 = vmatprep.mubr.msk.f32.mxu0 %vm346_vm0, %v13291_v30  ;;  %v13294_v30 = vld [vmem:[#allocation55_spill] sm:$0xff] }
  0xe1   : > { %8247 = vmatmul.mubr.msk.f32.gmra.mxu1 %vm346_vm0, %v9603_v61 }
  0xe2   : > { %8249 = vmatprep.mubr.msk.f32.mxu1 %vm346_vm0, %v9703_v60 }
  0xe3   : > { %8300 = vmatmul.mubr.msk.f32.gmra.mxu0 %vm346_vm0, %v13292_v20  ;;  %v13295_v20 = vld [vmem:[#allocation58_spill] sm:$0xff] }
  0xe4   : > { %8302 = vmatprep.mubr.msk.f32.mxu0 %vm346_vm0, %v13293_v21  ;;  %v2069_v21 = vrot.slane %v10333_v53, 1 }
  0xe5   : > { %8250 = vmatmul.mubr.msk.f32.gmra.mxu1 %vm346_vm0, %v9749_v40 }
  0xe6   : > { %8252 = vmatprep.mubr.msk.f32.mxu1 %vm346_vm0, %v9793_v62 }
  0xe7   : > { %8303 = vmatmul.mubr.msk.f32.gmra.mxu0 %vm346_vm0, %v13294_v30  ;;  %v10359_v30 = vsel %vm738_vm3, %v2069_v21, %v2070_v35 }
  0xe8   : > { %8305 = vmatprep.mubr.msk.f32.mxu0 %vm346_vm0, %v13295_v20  ;;  %v2072_v20 = vrot.slane %v10347_v3, 1  ;;  %13297 = vst [vmem:[#allocation60_spill] sm:$0xff] %v10359_v30 }
  0xe9   : > { %8253 = vmatmul.mubr.msk.f32.gmra.mxu1 %vm346_vm0, %v9802_v2 }
  0xea   : > { %8255 = vmatprep.mubr.msk.f32.mxu1 %vm346_vm0, %v9847_v0 }
  0xeb   : > { %8306 = vmatmul.mubr.msk.f32.gmra.mxu0 %vm346_vm0, %v13296_v49  ;;  %v10368_v49 = vsel %vm738_vm3, %v2070_v35, %v2072_v20  ;;  %v13299_v35 = vld [vmem:[#allocation63_spill] sm:$0xff] }
  0xec   : > { %8308 = vmatprep.mubr.msk.f32.mxu0 %vm346_vm0, %v9912_v24  ;;  %13298 = vst [vmem:[#allocation20_spill] sm:$0xff] %v10368_v49 }
  0xed   : > { %8256 = vmatmul.mubr.msk.f32.gmra.mxu1 %vm346_vm0, %v9851_v6 }
  0xee   : > { %8258 = vmatprep.mubr.msk.f32.mxu1 %vm346_vm0, %v13270_v15 }
  0xef   : > { %8309 = vmatmul.mubr.msk.f32.gmra.mxu0 %vm346_vm0, %v9915_v59 }
  0xf0   : > { %8311 = vmatprep.mubr.msk.f32.mxu0 %vm346_vm0, %v10359_v30 }
  0xf1   : > { %8259 = vmatmul.mubr.msk.f32.gmra.mxu1 %vm346_vm0, %v9891_v47 }
  0xf2   : > { %8261 = vmatprep.mubr.msk.f32.mxu1 %vm346_vm0, %v10333_v53 }
  0xf3   : > { %8312 = vmatmul.mubr.msk.f32.gmra.mxu0 %vm346_vm0, %v10368_v49 }
  0xf4   : > { %8366 = vmatprep.mubr.msk.f32.mxu0 %vm346_vm0, %v9550_v8  ;;  %v13300_v8 = vld [vmem:[#allocation64_spill] sm:$0xff] }
  0xf5   : > { %8262 = vmatmul.mubr.msk.f32.gmra.mxu1 %vm346_vm0, %v10335_v1 }
  0xf6   : > { %8316 = vmatprep.mubr.msk.f32.mxu1 %vm346_vm0, %v9934_v25  ;;  %v13304_v25 = vld [vmem:[#allocation69_spill] sm:$0xff] }
  0xf7   : > { %8367 = vmatmul.mubr.msk.f32.vlgmr.msra.gmra.mxu0 %vm346_vm0, %v9552_v9  ;;  %v13301_v9 = vld [vmem:[#allocation65_spill] sm:$0xff] }
  0xf8   : > { %8465 = vmatpush3.msra.mxu0 %v10236_v57  ;;  %8369 = vmatprep.mubr.msk.f32.mxu0 %vm346_vm0, %v9587_v36  ;;  %v13306_v57 = vld [vmem:[#allocation70_spill] sm:$0xff] }
  0xf9   : > { %8317 = vmatmul.mubr.msk.f32.vlgmr.msra.gmra.mxu1 %vm346_vm0, %v13299_v35  ;;  %v13308_v35 = vld [vmem:[#allocation72_spill] sm:$0xff] }
  0xfa   : > { %8415 = vmatpush3.msra.mxu1 %v10228_v44  ;;  %8319 = vmatprep.mubr.msk.f32.mxu1 %vm346_vm0, %v9958_v16 }
  0xfb   : > { %8370 = vmatmul.mubr.msk.f32.gmra.mxu0 %vm346_vm0, %v9589_v37  ;;  %v10427_v36 = vpop.f32.mrf.mxu0  ;;  %v9026_v37 = vld [vmem:[#allocation2 + $0xc8] sm:$0xff] }
  0xfc   : > { %8372 = vmatprep.mubr.msk.f32.mxu0 %vm346_vm0, %v9653_v12  ;;  %v9025_v12 = vld [vmem:[#allocation2 + $0xc0] sm:$0xff] }
  0xfd   : > { %8320 = vmatmul.mubr.msk.f32.gmra.mxu1 %vm346_vm0, %v13300_v8 }
  0xfe   : > { %8322 = vmatprep.mubr.msk.f32.mxu1 %vm346_vm0, %v13301_v9 }
  0xff   : > { %8373 = vmatmul.mubr.msk.f32.gmra.mxu0 %vm346_vm0, %v9660_v26 }
 0x100   : > { %8375 = vmatprep.mubr.msk.f32.mxu0 %vm346_vm0, %v9753_v33  ;;  %v13302_v33 = vld [vmem:[#allocation68_spill] sm:$0xff] }
 0x101   : > { %8323 = vmatmul.mubr.msk.f32.gmra.mxu1 %vm346_vm0, %v9994_v4 }
 0x102   : > { %8325 = vmatprep.mubr.msk.f32.mxu1 %vm346_vm0, %v10001_v43 }
 0x103   : > { %8376 = vmatmul.mubr.msk.f32.gmra.mxu0 %vm346_vm0, %v9766_v29 }
 0x104   : > { %8378 = vmatprep.mubr.msk.f32.mxu0 %vm346_vm0, %v9833_v42 }
 0x105   : > { %8326 = vmatmul.mubr.msk.f32.gmra.mxu1 %vm346_vm0, %v10021_v5 }
 0x106   : > { %8328 = vmatprep.mubr.msk.f32.mxu1 %vm346_vm0, %v10032_v32 }
 0x107   : > { %8379 = vmatmul.mubr.msk.f32.gmra.mxu0 %vm346_vm0, %v9835_v54 }
 0x108   : > { %8381 = vmatprep.mubr.msk.f32.mxu0 %vm346_vm0, %v9864_v7  ;;  %v10436_v7 = vpop.f32.mrf.mxu0 }
 0x109   : > { %8329 = vmatmul.mubr.msk.f32.gmra.mxu1 %vm346_vm0, %v10043_v56 }
 0x10a   : > { %8331 = vmatprep.mubr.msk.f32.mxu1 %vm346_vm0, %v10049_v23  ;;  %v10448_v26 = vpop.f32.mrf.mxu0 }
 0x10b   : > { %8382 = vmatmul.mubr.msk.f32.gmra.mxu0 %vm346_vm0, %v9882_v18  ;;  %v10442_v18 = vpop.f32.mrf.mxu1 }
 0x10c   : > { %8384 = vmatprep.mubr.msk.f32.mxu0 %vm346_vm0, %v9025_v12  ;;  %v10454_v29 = vpop.f32.mrf.mxu0 }
 0x10d   : > { %8332 = vmatmul.mubr.msk.f32.gmra.mxu1 %vm346_vm0, %v10060_v51 }
 0x10e   : > { %8334 = vmatprep.mubr.msk.f32.mxu1 %vm346_vm0, %v10066_v45  ;;  %v10468_v42 = vpop.f32.mrf.mxu0 }
 0x10f   : > { %8385 = vmatmul.mubr.msk.f32.gmra.mxu0 %vm346_vm0, %v9026_v37 }
 0x110   : > { %8387 = vmatprep.mubr.msk.f32.mxu0 %vm346_vm0, %v9490_v38  ;;  %v10452_v38 = vpop.f32.mrf.mxu1 }
 0x111   : > { %8335 = vmatmul.mubr.msk.f32.gmra.mxu1 %vm346_vm0, %v10077_v46 }
 0x112   : > { %8337 = vmatprep.mubr.msk.f32.mxu1 %vm346_vm0, %v10083_v58 }
 0x113   : > { %8388 = vmatmul.mubr.msk.f32.gmra.mxu0 %vm346_vm0, %v9507_v48  ;;  %v10458_v48 = vpop.f32.mrf.mxu1 }
 0x114   : > { %8390 = vmatprep.mubr.msk.f32.mxu0 %vm346_vm0, %v9554_v13 }
 0x115   : > { %8338 = vmatmul.mubr.msk.f32.gmra.mxu1 %vm346_vm0, %v10094_v22  ;;  %v10466_v13 = vpop.f32.mrf.mxu1 }
 0x116   : > { %8340 = vmatprep.mubr.msk.f32.mxu1 %vm346_vm0, %v10100_v41  ;;  %13303 = vst [vmem:[#allocation22_spill] sm:$0xff] %v10466_v13 }
 0x117   : > { %8391 = vmatmul.mubr.msk.f32.gmra.mxu0 %vm346_vm0, %v9566_v19  ;;  %v10472_v54 = vpop.f32.mrf.mxu1  ;;  %v10474_v19 = vpop.f32.mrf.mxu0 }
 0x118   : > { %8393 = vmatprep.mubr.msk.f32.mxu0 %vm346_vm0, %v9601_v55 }
 0x119   : > { %8341 = vmatmul.mubr.msk.f32.gmra.mxu1 %vm346_vm0, %v13302_v33  ;;  %v10482_v55 = vpop.f32.mrf.mxu1  ;;  %v10484_v44 = vpop.f32.mrf.mxu0 }
 0x11a   : > { %8343 = vmatprep.mubr.msk.f32.mxu1 %vm346_vm0, %v10117_v39  ;;  %13305 = vst [vmem:[#allocation27_spill] sm:$0xff] %v10482_v55 }
 0x11b   : > { %8394 = vmatmul.mubr.msk.f32.gmra.mxu0 %vm346_vm0, %v9603_v61  ;;  %v10488_v61 = vpop.f32.mrf.mxu0  ;;  %v10494_v20 = vpop.f32.mrf.mxu1 }
 0x11c   : > { %8396 = vmatprep.mubr.msk.f32.mxu0 %vm346_vm0, %v9703_v60  ;;  %v13307_v60 = vld [vmem:[#allocation71_spill] sm:$0xff] }
 0x11d   : > { %8344 = vmatmul.mubr.msk.f32.gmra.mxu1 %vm346_vm0, %v13304_v25  ;;  %v10498_v21 = vpop.f32.mrf.mxu0 }
 0x11e   : > { %8346 = vmatprep.mubr.msk.f32.mxu1 %vm346_vm0, %v10134_v14 }
 0x11f   : > { %8397 = vmatmul.mubr.msk.f32.gmra.mxu0 %vm346_vm0, %v9749_v40  ;;  %v10504_v40 = vpop.f32.mrf.mxu1 }
 0x120   : > { %8399 = vmatprep.mubr.msk.f32.mxu0 %vm346_vm0, %v9793_v62  ;;  %13309 = vst [vmem:[#allocation29_spill] sm:$0xff] %v10504_v40  ;;  %v10510_v62 = vpop.f32.mrf.mxu0  ;;  %v2338_v40 = vrot.slane %v10335_v1, 2 }
 0x121   : > { %8347 = vmatmul.mubr.msk.f32.gmra.mxu1 %vm346_vm0, %v13306_v57 }
 0x122   : > { %8349 = vmatprep.mubr.msk.f32.mxu1 %vm346_vm0, %v13307_v60 }
 0x123   : > { %8400 = vmatmul.mubr.msk.f32.gmra.mxu0 %vm346_vm0, %v9802_v2  ;;  %v10514_v12 = vpop.f32.mrf.mxu1 }
 0x124   : > { %8402 = vmatprep.mubr.msk.f32.mxu0 %vm346_vm0, %v9847_v0  ;;  %v10522_v2 = vpop.f32.mrf.mxu0  ;;  %v2337_v0 = vrot.slane %v10333_v53, 2 }
 0x125   : > { %8350 = vmatmul.mubr.msk.f32.gmra.mxu1 %vm346_vm0, %v13308_v35  ;;  %v10525_v37 = vpop.f32.mrf.mxu1 }
 0x126   : > { %8352 = vmatprep.mubr.msk.f32.mxu1 %vm346_vm0, %v10168_v63  ;;  %13310 = vst [vmem:[#allocation31_spill] sm:$0xff] %v10525_v37  ;;  %v2340_v37 = vrot.slane %v10347_v3, 2  ;;  %v10548_v49 = vsel %vm1399_vm4, %v2337_v0, %v2338_v40  ;;  %v10560_v3 = vld [vmem:[#allocation2 + $0x1a0] sm:$0xff] }
 0x127   : > { %8403 = vmatmul.mubr.msk.f32.gmra.mxu0 %vm346_vm0, %v9851_v6  ;;  %v10530_v6 = vpop.f32.mrf.mxu0  ;;  %13313 = vst [vmem:[#allocation64_spill] sm:$0xff] %v10548_v49 }
 0x128   : > { %8405 = vmatprep.mubr.msk.f32.mxu0 %vm346_vm0, %v13270_v15  ;;  %v10540_v15 = vld [vmem:[#allocation2 + $0x198] sm:$0xff]  ;;  %v10565_v0 = vsel %vm1399_vm4, %v2338_v40, %v2340_v37 }
 0x129   : > { %8353 = vmatmul.mubr.msk.f32.gmra.mxu1 %vm346_vm0, %v10179_v50  ;;  %13315 = vst [vmem:[#allocation68_spill] sm:$0xff] %v10565_v0 }
 0x12a   : > { %8355 = vmatprep.mubr.msk.f32.mxu1 %vm346_vm0, %v10185_v27  ;;  %v10532_v55 = vpop.f32.mrf.mxu1 }
 0x12b   : > { %8406 = vmatmul.mubr.msk.f32.gmra.mxu0 %vm346_vm0, %v9891_v47  ;;  %13311 = vst [vmem:[#allocation36_spill] sm:$0xff] %v10532_v55  ;;  %v10545_v47 = vpop.f32.mrf.mxu0 }
 0x12c   : > { %8408 = vmatprep.mubr.msk.f32.mxu0 %vm346_vm0, %v10333_v53  ;;  %v10543_v13 = vpop.f32.mrf.mxu1 }
 0x12d   : > { %8356 = vmatmul.mubr.msk.f32.gmra.mxu1 %vm346_vm0, %v10196_v17  ;;  %13312 = vst [vmem:[#allocation63_spill] sm:$0xff] %v10543_v13  ;;  %v10556_v53 = vpop.f32.mrf.mxu0 }
 0x12e   : > { %8358 = vmatprep.mubr.msk.f32.mxu1 %vm346_vm0, %v10202_v28  ;;  %v10552_v30 = vpop.f32.mrf.mxu1 }
 0x12f   : > { %8409 = vmatmul.mubr.msk.f32.gmra.mxu0 %vm346_vm0, %v10335_v1  ;;  %13314 = vst [vmem:[#allocation65_spill] sm:$0xff] %v10552_v30 }
 0x130   : > { %8411 = vmatprep.mubr.msk.f32.mxu0 %vm346_vm0, %v10540_v15  ;;  %v10567_v13 = vpop.f32.mrf.mxu1 }
 0x131   : > { %8359 = vmatmul.mubr.msk.f32.gmra.mxu1 %vm346_vm0, %v10211_v10  ;;  %13316 = vst [vmem:[#allocation69_spill] sm:$0xff] %v10567_v13 }
 0x132   : > { %8361 = vmatprep.mubr.msk.f32.mxu1 %vm346_vm0, %v10548_v49 }
 0x133   : > { %v10569_v1 = vpop.f32.mrf.mxu0  ;;  %8412 = vmatmul.mubr.msk.f32.gmra.mxu0 %vm346_vm0, %v10560_v3 }
 0x134   : > { %8466 = vmatprep.mubr.msk.f32.mxu0 %vm346_vm0, %v9958_v16 }
 0x135   : > { %v10573_v30 = vpop.f32.mrf.mxu1  ;;  %8362 = vmatmul.mubr.msk.f32.gmra.mxu1 %vm346_vm0, %v10565_v0  ;;  %v10579_v55 = vpop.f32.mrf.mxu0 }
 0x136   : > { %13317 = vst [vmem:[#allocation70_spill] sm:$0xff] %v10573_v30  ;;  %8416 = vmatprep.mubr.msk.f32.mxu1 %vm346_vm0, %v13273_v31 }
 0x137   : > { %v10583_v40 = vpop.f32.mrf.mxu1  ;;  %v8168_v37 = vpop.f32.mrf.mxu0  ;;  %8467 = vmatmul.mubr.msk.f32.vlgmr.msra.gmra.mxu0 %vm346_vm0, %v13300_v8 }
 0x138   : > { %13318 = vst [vmem:[#allocation71_spill] sm:$0xff] %v10583_v40  ;;  %8469 = vmatprep.mubr.msk.f32.mxu0 %vm346_vm0, %v13301_v9 }
 0x139   : > { %v8118_v13 = vpop.f32.mrf.mxu1  ;;  %8417 = vmatmul.mubr.msk.f32.vlgmr.msra.gmra.mxu1 %vm346_vm0, %v13274_v52  ;;  %v1612_v30 = vpop.f32.mrf.mxu0 }
 0x13a   : > { %v1246_v16 = vadd.f32 %v8118_v13, %v10427_v36  ;;  %8419 = vmatprep.mubr.msk.f32.mxu1 %vm346_vm0, %v13275_v34  ;;  %v13319_v36 = vld [vmem:[#allocation40_spill] sm:$0xff] }
 0x13b   : > { %v1240_v31 = vpop.f32.mrf.mxu1  ;;  %v8171_v49 = vpop.f32.mrf.mxu0  ;;  %8470 = vmatmul.mubr.msk.f32.gmra.mxu0 %vm346_vm0, %v9994_v4 }
 0x13c   : > { %v10594_v0 = vadd.f32 %v8168_v37, %v1246_v16  ;;  %v1241_v40 = vadd.f32 %v1240_v31, %v10436_v7  ;;  %8472 = vmatprep.mubr.msk.f32.mxu0 %vm346_vm0, %v10001_v43  ;;  %v13320_v16 = vld [vmem:[#allocation41_spill] sm:$0xff] }
 0x13d   : > { %v8121_v8 = vpop.f32.mrf.mxu1  ;;  %8420 = vmatmul.mubr.msk.f32.gmra.mxu1 %vm346_vm0, %v13276_v11  ;;  %v1622_v9 = vpop.f32.mrf.mxu0 }
 0x13e   : > { %v10603_v52 = vadd.f32 %v1612_v30, %v1241_v40  ;;  %v1256_v34 = vadd.f32 %v8121_v8, %v10448_v26  ;;  %8422 = vmatprep.mubr.msk.f32.mxu1 %vm346_vm0, %v13319_v36  ;;  %v13323_v36 = vld [vmem:[#allocation56_spill] sm:$0xff] }
 0x13f   : > { %v1250_v7 = vpop.f32.mrf.mxu1  ;;  %v8174_v37 = vpop.f32.mrf.mxu0  ;;  %8473 = vmatmul.mubr.msk.f32.gmra.mxu0 %vm346_vm0, %v10021_v5 }
 0x140   : > { %v10608_v13 = vadd.f32 %v8171_v49, %v1256_v34  ;;  %v1251_v4 = vadd.f32 %v1250_v7, %v10454_v29  ;;  %8475 = vmatprep.mubr.msk.f32.mxu0 %vm346_vm0, %v10032_v32  ;;  %v13321_v49 = vld [vmem:[#allocation52_spill] sm:$0xff]  ;;  %v13322_v34 = vld [vmem:[#allocation53_spill] sm:$0xff] }
 0x141   : > { %v8124_v11 = vpop.f32.mrf.mxu1  ;;  %8423 = vmatmul.mubr.msk.f32.gmra.mxu1 %vm346_vm0, %v13320_v16  ;;  %v1632_v26 = vpop.f32.mrf.mxu0 }
 0x142   : > { %v10617_v43 = vadd.f32 %v1622_v9, %v1251_v4  ;;  %v1266_v30 = vadd.f32 %v8124_v11, %v10468_v42  ;;  %8425 = vmatprep.mubr.msk.f32.mxu1 %vm346_vm0, %v13321_v49  ;;  %v13324_v11 = vld [vmem:[#allocation57_spill] sm:$0xff] }
 0x143   : > { %v1260_v29 = vpop.f32.mrf.mxu1  ;;  %v8177_v31 = vpop.f32.mrf.mxu0  ;;  %8476 = vmatmul.mubr.msk.f32.gmra.mxu0 %vm346_vm0, %v10043_v56 }
 0x144   : > { %v10622_v40 = vadd.f32 %v8174_v37, %v1266_v30  ;;  %v1261_v5 = vadd.f32 %v1260_v29, %v10474_v19  ;;  %8478 = vmatprep.mubr.msk.f32.mxu0 %vm346_vm0, %v10049_v23  ;;  %v13325_v30 = vld [vmem:[#allocation61_spill] sm:$0xff] }
 0x145   : > { %v8127_v8 = vpop.f32.mrf.mxu1  ;;  %8426 = vmatmul.mubr.msk.f32.gmra.mxu1 %vm346_vm0, %v13322_v34  ;;  %v1642_v9 = vpop.f32.mrf.mxu0 }
 0x146   : > { %v10631_v32 = vadd.f32 %v1632_v26, %v1261_v5  ;;  %v1276_v42 = vadd.f32 %v8127_v8, %v10484_v44  ;;  %8428 = vmatprep.mubr.msk.f32.mxu1 %vm346_vm0, %v13323_v36  ;;  %v13326_v5 = vld [vmem:[#allocation62_spill] sm:$0xff]  ;;  %v13328_v36 = vld [vmem:[#allocation19_spill] sm:$0xff] }
 0x147   : > { %v1270_v19 = vpop.f32.mrf.mxu1  ;;  %v8180_v4 = vpop.f32.mrf.mxu0  ;;  %8479 = vmatmul.mubr.msk.f32.gmra.mxu0 %vm346_vm0, %v10060_v51  ;;  %v13327_v8 = vld [vmem:[#allocation18_spill] sm:$0xff] }
 0x148   : > { %v10636_v7 = vadd.f32 %v8177_v31, %v1276_v42  ;;  %v1271_v56 = vadd.f32 %v1270_v19, %v10488_v61  ;;  %8481 = vmatprep.mubr.msk.f32.mxu0 %vm346_vm0, %v10066_v45 }
 0x149   : > { %v8130_v37 = vpop.f32.mrf.mxu1  ;;  %8429 = vmatmul.mubr.msk.f32.gmra.mxu1 %vm346_vm0, %v13324_v11  ;;  %v1652_v16 = vpop.f32.mrf.mxu0 }
 0x14a   : > { %v10645_v23 = vadd.f32 %v1642_v9, %v1271_v56  ;;  %v1286_v44 = vadd.f32 %v8130_v37, %v10498_v21  ;;  %8431 = vmatprep.mubr.msk.f32.mxu1 %vm346_vm0, %v13325_v30  ;;  %v13329_v56 = vld [vmem:[#allocation25_spill] sm:$0xff] }
 0x14b   : > { %v1280_v61 = vpop.f32.mrf.mxu1  ;;  %v8183_v49 = vpop.f32.mrf.mxu0  ;;  %8482 = vmatmul.mubr.msk.f32.gmra.mxu0 %vm346_vm0, %v10077_v46 }
 0x14c   : > { %v10650_v26 = vadd.f32 %v8180_v4, %v1286_v44  ;;  %v1281_v51 = vadd.f32 %v1280_v61, %v10510_v62  ;;  %8484 = vmatprep.mubr.msk.f32.mxu0 %vm346_vm0, %v10083_v58  ;;  %v7104_v58 = vld [vmem:[%s13023_s6 + $0x8] sm:$0xff]  ;;  %v13330_v44 = vld [vmem:[#allocation26_spill] sm:$0xff] }
 0x14d   : > { %v8133_v29 = vpop.f32.mrf.mxu1  ;;  %8432 = vmatmul.mubr.msk.f32.gmra.mxu1 %vm346_vm0, %v13326_v5  ;;  %v1662_v31 = vpop.f32.mrf.mxu0  ;;  %8514 = vmatprep.subr.mxu1 %v7104_v58 }
 0x14e   : > { %v10659_v45 = vadd.f32 %v1652_v16, %v1281_v51  ;;  %v1296_v21 = vadd.f32 %v8133_v29, %v10522_v2  ;;  %8434 = vmatprep.mubr.msk.f32.mxu1 %vm346_vm0, %v13327_v8  ;;  %8515 = vmatpush3.msra.mxu1 %v7104_v58  ;;  %v13331_v51 = vld [vmem:[#allocation28_spill] sm:$0xff]  ;;  %v13334_v58 = vld [vmem:[#allocation37_spill] sm:$0xff] }
 0x14f   : > { %v1290_v62 = vpop.f32.mrf.mxu1  ;;  %v8186_v42 = vpop.f32.mrf.mxu0  ;;  %8485 = vmatmul.mubr.msk.f32.gmra.mxu0 %vm346_vm0, %v10094_v22  ;;  %v3603_v22 = vld [vmem:[%s13023_s6] sm:$0xff] }
 0x150   : > { %v10664_v34 = vadd.f32 %v8183_v49, %v1296_v21  ;;  %v1291_v46 = vadd.f32 %v1290_v62, %v10530_v6  ;;  %8487 = vmatprep.mubr.msk.f32.mxu0 %vm346_vm0, %v10100_v41  ;;  %8564 = vmatprep.subr.mxu0 %v3603_v22  ;;  %v13333_v8 = vld [vmem:[#allocation32_spill] sm:$0xff] }
 0x151   : > { %v8136_v9 = vpop.f32.mrf.mxu1  ;;  %8435 = vmatmul.mubr.msk.f32.gmra.mxu1 %vm346_vm0, %v13328_v36  ;;  %v1672_v6 = vpop.f32.mrf.mxu0  ;;  %8565 = vmatpush3.msra.mxu0 %v3603_v22  ;;  %v13335_v36 = vld [vmem:[#allocation49_spill] sm:$0xff]  ;;  %v13337_v22 = vld [vmem:[#allocation54_spill] sm:$0xff] }
 0x152   : > { %v10676_v2 = vadd.f32 %v1662_v31, %v1291_v46  ;;  %v1306_v19 = vadd.f32 %v8136_v9, %v10545_v47  ;;  %8437 = vmatprep.mubr.msk.f32.mxu1 %vm346_vm0, %v13329_v56  ;;  %v13336_v56 = vld [vmem:[#allocation50_spill] sm:$0xff] }
 0x153   : > { %v1300_v4 = vpop.f32.mrf.mxu1  ;;  %v8189_v11 = vpop.f32.mrf.mxu0  ;;  %8488 = vmatmul.mubr.msk.f32.gmra.mxu0 %vm346_vm0, %v13302_v33 }
 0x154   : > { %v10684_v37 = vadd.f32 %v8186_v42, %v1306_v19  ;;  %v1301_v41 = vadd.f32 %v1300_v4, %v10556_v53  ;;  %8490 = vmatprep.mubr.msk.f32.mxu0 %vm346_vm0, %v10117_v39  ;;  %v13332_v39 = vld [vmem:[#allocation30_spill] sm:$0xff] }
 0x155   : > { %v8139_v47 = vpop.f32.mrf.mxu1  ;;  %8438 = vmatmul.mubr.msk.f32.gmra.mxu1 %vm346_vm0, %v13330_v44  ;;  %v1682_v61 = vpop.f32.mrf.mxu0  ;;  %v13339_v44 = vld [vmem:[#allocation58_spill] sm:$0xff] }
 0x156   : > { %v10693_v16 = vadd.f32 %v1672_v6, %v1301_v41  ;;  %v1316_v30 = vadd.f32 %v8139_v47, %v10569_v1  ;;  %8440 = vmatprep.mubr.msk.f32.mxu1 %vm346_vm0, %v13331_v51  ;;  %v13338_v47 = vld [vmem:[#allocation55_spill] sm:$0xff] }
 0x157   : > { %v1310_v53 = vpop.f32.mrf.mxu1  ;;  %v8192_v29 = vpop.f32.mrf.mxu0  ;;  %8491 = vmatmul.mubr.msk.f32.gmra.mxu0 %vm346_vm0, %v13304_v25 }
 0x158   : > { %v10698_v49 = vadd.f32 %v8189_v11, %v1316_v30  ;;  %v1311_v33 = vadd.f32 %v1310_v53, %v10579_v55  ;;  %8493 = vmatprep.mubr.msk.f32.mxu0 %vm346_vm0, %v10134_v14  ;;  %v13340_v53 = vld [vmem:[#allocation59_spill] sm:$0xff] }
 0x159   : > { %v8142_v5 = vpop.f32.mrf.mxu1  ;;  %8441 = vmatmul.mubr.msk.f32.gmra.mxu1 %vm346_vm0, %v13332_v39  ;;  %v1692_v31 = vpop.f32.mrf.mxu0 }
 0x15a   : > { %v10707_v1 = vadd.f32 %v1682_v61, %v1311_v33  ;;  %v1326_v21 = vadd.f32 %v8142_v5, %v10442_v18  ;;  %8443 = vmatprep.mubr.msk.f32.mxu1 %vm346_vm0, %v13333_v8  ;;  %v2872_v5 = vrot.slane %v10560_v3, 1 }
 0x15b   : > { %v1320_v55 = vpop.f32.mrf.mxu1  ;;  %v8195_v46 = vpop.f32.mrf.mxu0  ;;  %8494 = vmatmul.mubr.msk.f32.gmra.mxu0 %vm346_vm0, %v13306_v57 }
 0x15c   : > { %v10712_v62 = vadd.f32 %v8192_v29, %v1326_v21  ;;  %v1321_v25 = vadd.f32 %v1320_v55, %v10452_v38  ;;  %8496 = vmatprep.mubr.msk.f32.mxu0 %vm346_vm0, %v13307_v60  ;;  %v688_v21 = vld [vmem:[#allocation2 + $0x1a8] sm:$0x3] }
 0x15d   : > { %v8145_v42 = vpop.f32.mrf.mxu1  ;;  %8444 = vmatmul.mubr.msk.f32.gmra.mxu1 %vm346_vm0, %v13334_v58  ;;  %v10724_v9 = vpop.f32.mrf.mxu0 }
 0x15e   : > { %v10721_v14 = vadd.f32 %v1692_v31, %v1321_v25  ;;  %v1336_v18 = vadd.f32 %v8145_v42, %v10458_v48  ;;  %8446 = vmatprep.mubr.msk.f32.mxu1 %vm346_vm0, %v13335_v36  ;;  %v13343_v25 = vld [vmem:[#allocation60_spill] sm:$0xff] }
 0x15f   : > { %v10728_v38 = vpop.f32.mrf.mxu1  ;;  %v8198_v57 = vpop.f32.mrf.mxu0  ;;  %8497 = vmatmul.mubr.msk.f32.gmra.mxu0 %vm346_vm0, %v13308_v35  ;;  %v13344_v36 = vld [vmem:[#allocation68_spill] sm:$0xff] }
 0x160   : > { %v10730_v19 = vadd.f32 %v8195_v46, %v1336_v18  ;;  %8499 = vmatprep.mubr.msk.f32.mxu0 %vm346_vm0, %v10168_v63  ;;  %v2874_v46 = vrot.slane %v688_v21, 1 }
 0x161   : > { %v8148_v6 = vpop.f32.mrf.mxu1  ;;  %8447 = vmatmul.mubr.msk.f32.gmra.mxu1 %vm346_vm0, %v13336_v56  ;;  %v10739_v60 = vpop.f32.mrf.mxu0 }
 0x162   : > { %v1346_v48 = vadd.f32 %v8148_v6, %v10472_v54  ;;  %8449 = vmatprep.mubr.msk.f32.mxu1 %vm346_vm0, %v13337_v22  ;;  %v13345_v6 = vld [vmem:[#allocation20_spill] sm:$0xff] }
 0x163   : > { %v10743_v4 = vpop.f32.mrf.mxu1  ;;  %v8201_v11 = vpop.f32.mrf.mxu0  ;;  %8500 = vmatmul.mubr.msk.f32.gmra.mxu0 %vm346_vm0, %v10179_v50 }
 0x164   : > { %v10745_v41 = vadd.f32 %v8198_v57, %v1346_v48  ;;  %8502 = vmatprep.mubr.msk.f32.mxu0 %vm346_vm0, %v10185_v27  ;;  %v3139_v27 = vrot.slane %v10540_v15, 2  ;;  %v13346_v48 = vld [vmem:[#allocation65_spill] sm:$0xff] }
 0x165   : > { %v8151_v35 = vpop.f32.mrf.mxu1  ;;  %8450 = vmatmul.mubr.msk.f32.gmra.mxu1 %vm346_vm0, %v13338_v47  ;;  %v10754_v54 = vpop.f32.mrf.mxu0 }
 0x166   : > { %v1356_v63 = vadd.f32 %v8151_v35, %v10494_v20  ;;  %8452 = vmatprep.mubr.msk.f32.mxu1 %vm346_vm0, %v13339_v44  ;;  %v3140_v20 = vrot.slane %v10560_v3, 2  ;;  %v2875_v35 = vsel %vm738_vm3, %v2872_v5, %v2874_v46 }
 0x167   : > { %v10758_v30 = vpop.f32.mrf.mxu1  ;;  %v8204_v51 = vpop.f32.mrf.mxu0  ;;  %8503 = vmatmul.mubr.msk.f32.gmra.mxu0 %vm346_vm0, %v10196_v17  ;;  %v2871_v17 = vrot.slane %v10540_v15, 1  ;;  %v13342_v15 = vld [vmem:[#allocation36_spill] sm:$0xff] }
 0x168   : > { %v10760_v61 = vadd.f32 %v8201_v11, %v1356_v63  ;;  %8505 = vmatprep.mubr.msk.f32.mxu0 %vm346_vm0, %v10202_v28  ;;  %v3141_v42 = vsel %vm1399_vm4, %v3139_v27, %v3140_v20 }
 0x169   : > { %v8154_v50 = vpop.f32.mrf.mxu1  ;;  %8453 = vmatmul.mubr.msk.f32.gmra.mxu1 %vm346_vm0, %v13340_v53  ;;  %v10771_v29 = vpop.f32.mrf.mxu0 }
 0x16a   : > { %v1366_v33 = vadd.f32 %v8154_v50, %v10514_v12  ;;  %8455 = vmatprep.mubr.msk.f32.mxu1 %vm346_vm0, %v9912_v24  ;;  %v13341_v12 = vld [vmem:[#allocation64_spill] sm:$0xff]  ;;  %v3142_v24 = vrot.slane %v688_v21, 2  ;;  %v13347_v50 = vld [vmem:[#allocation70_spill] sm:$0xff] }
 0x16b   : > { %v10777_v39 = vpop.f32.mrf.mxu1  ;;  %v8207_v28 = vpop.f32.mrf.mxu0  ;;  %8506 = vmatmul.mubr.msk.f32.gmra.mxu0 %vm346_vm0, %v10211_v10  ;;  %v2873_v10 = vsel %vm738_vm3, %v2871_v17, %v2872_v5 }
 0x16c   : > { %v10779_v31 = vadd.f32 %v8204_v51, %v1366_v33  ;;  %8508 = vmatprep.mubr.msk.f32.mxu0 %vm346_vm0, %v13341_v12  ;;  %v3143_v56 = vsel %vm1399_vm4, %v3140_v20, %v3142_v24 }
 0x16d   : > { %v8157_v8 = vpop.f32.mrf.mxu1  ;;  %8456 = vmatmul.mubr.msk.f32.gmra.mxu1 %vm346_vm0, %v9915_v59  ;;  %v10788_v3 = vpop.f32.mrf.mxu0 }
 0x16e   : > { %v1376_v55 = vadd.f32 %v8157_v8, %v13342_v15  ;;  %8458 = vmatprep.mubr.msk.f32.mxu1 %vm346_vm0, %v13343_v25 }
 0x16f   : > { %v10793_v58 = vpop.f32.mrf.mxu1  ;;  %v8210_v59 = vpop.f32.mrf.mxu0  ;;  %8509 = vmatmul.mubr.msk.f32.gmra.mxu0 %vm346_vm0, %v13344_v36 }
 0x170   : > { %v10796_v18 = vadd.f32 %v8207_v28, %v1376_v55  ;;  %8511 = vmatprep.mubr.msk.f32.mxu0 %vm346_vm0, %v3141_v42 }
 0x171   : > { %v8160_v57 = vpop.f32.mrf.mxu1  ;;  %8459 = vmatmul.mubr.msk.f32.gmra.mxu1 %vm346_vm0, %v13345_v6  ;;  %v10805_v11 = vpop.f32.mrf.mxu0 }
 0x172   : > { %v1386_v22 = vadd.f32 %v8160_v57, %v13346_v48  ;;  %8461 = vmatprep.mubr.msk.f32.mxu1 %vm346_vm0, %v2873_v10 }
 0x173   : > { %v10809_v47 = vpop.f32.mrf.mxu1  ;;  %v8213_v44 = vpop.f32.mrf.mxu0  ;;  %8512 = vmatmul.mubr.msk.f32.gmra.mxu0 %vm346_vm0, %v3143_v56 }
 0x174   : > { %v10811_v63 = vadd.f32 %v8210_v59, %v1386_v22 }
 0x175   : > { %v8163_v51 = vpop.f32.mrf.mxu1  ;;  %8462 = vmatmul.mubr.msk.f32.gmra.mxu1 %vm346_vm0, %v2875_v35  ;;  %v10816_v27 = vpop.f32.mrf.mxu0 }
 0x176   : > { %v1396_v53 = vadd.f32 %v8163_v51, %v13347_v50  ;;  %v3549_v50 = vld [vmem:[#allocation3] sm:$0xff] }
 0x177   : > { %v10818_v20 = vpop.f32.mrf.mxu1  ;;  %v8268_v17 = vpop.f32.mrf.mxu0  ;;  %8566 = vmatprep.mubr.msk.f32.mxu0 %vm346_vm0, %v3549_v50 }
 0x178   : > { %v10820_v33 = vadd.f32 %v8213_v44, %v1396_v53  ;;  %v3550_v53 = vld [vmem:[#allocation3 + $0x8] sm:$0xff] }
 0x179   : > { %v8218_v5 = vpop.f32.mrf.mxu1  ;;  %v10823_v28 = vpop.f32.mrf.mxu0  ;;  %8567 = vmatmul.mubr.msk.f32.vlgmr.msra.gmra.mxu0 %vm346_vm0, %v3550_v53 }
 0x17a   : > { %v2037_v21 = vadd.f32 %v8218_v5, %v10594_v0  ;;  %v3653_v5 = vrot.slane %v3550_v53, 1 }
 0x17b   : > { %v10825_v8 = vpop.f32.mrf.mxu1  ;;  %v8271_v24 = vpop.f32.mrf.mxu0 }
 0x17c   : > { %v10827_v12 = vadd.f32 %v8268_v17, %v2037_v21  ;;  %v3652_v17 = vrot.slane %v3549_v50, 1  ;;  %v3551_v21 = vld [vmem:[#allocation3 + $0x10] sm:$0x3] }
 0x17d   : > { %v8221_v15 = vpop.f32.mrf.mxu1  ;;  %v10830_v25 = vpop.f32.mrf.mxu0 }
 0x17e   : > { %v2039_v55 = vadd.f32 %v8221_v15, %v10608_v13 }
 0x17f   : > { %v10832_v46 = vpop.f32.mrf.mxu1  ;;  %v8274_v10 = vpop.f32.mrf.mxu0 }
 0x180   : > { %v10834_v42 = vadd.f32 %v8271_v24, %v2039_v55 }
 0x181   : > { %v8224_v59 = vpop.f32.mrf.mxu1  ;;  %v10837_v36 = vpop.f32.mrf.mxu0 }
 0x182   : > { %13348 = vst [vmem:[#allocation72_spill] sm:$0xff] %v10834_v42  ;;  %v2041_v0 = vadd.f32 %v8224_v59, %v10622_v40 }
 0x183   : > { %v10839_v57 = vpop.f32.mrf.mxu1  ;;  %v8277_v56 = vpop.f32.mrf.mxu0 }
 0x184   : > { %v10841_v6 = vadd.f32 %v8274_v10, %v2041_v0  ;;  %v3654_v10 = vsel %vm738_vm3, %v3652_v17, %v3653_v5 }
 0x185   : > { %v8227_v48 = vpop.f32.mrf.mxu1  ;;  %v10844_v22 = vpop.f32.mrf.mxu0  ;;  %8516 = vmatprep.mubr.msk.f32.mxu1 %vm346_vm0, %v3654_v10 }
 0x186   : > { %13349 = vst [vmem:[#allocation40_spill] sm:$0xff] %v10841_v6  ;;  %v2043_v13 = vadd.f32 %v8227_v48, %v10636_v7  ;;  %v3655_v7 = vrot.slane %v3551_v21, 1 }
 0x187   : > { %v10846_v35 = vpop.f32.mrf.mxu1  ;;  %v8280_v51 = vpop.f32.mrf.mxu0 }
 0x188   : > { %v10848_v44 = vadd.f32 %v8277_v56, %v2043_v13  ;;  %v3656_v56 = vsel %vm738_vm3, %v3653_v5, %v3655_v7 }
 0x189   : > { %v8230_v40 = vpop.f32.mrf.mxu1  ;;  %v10852_v15 = vpop.f32.mrf.mxu0  ;;  %8517 = vmatmul.mubr.msk.f32.vlgmr.msra.gmra.mxu1 %vm346_vm0, %v3656_v56 }
 0x18a   : > { %13350 = vst [vmem:[#allocation41_spill] sm:$0xff] %v10848_v44  ;;  %v2045_v24 = vadd.f32 %v8230_v40, %v10650_v26 }
 0x18b   : > { %v10855_v55 = vpop.f32.mrf.mxu1  ;;  %v8283_v0 = vpop.f32.mrf.mxu0 }
 0x18c   : > { %v10858_v59 = vadd.f32 %v8280_v51, %v2045_v24 }
 0x18d   : > { %v8233_v48 = vpop.f32.mrf.mxu1  ;;  %v10864_v13 = vpop.f32.mrf.mxu0 }
 0x18e   : > { %13351 = vst [vmem:[#allocation52_spill] sm:$0xff] %v10858_v59  ;;  %v2047_v26 = vadd.f32 %v8233_v48, %v10664_v34 }
 0x18f   : > { %v10866_v50 = vpop.f32.mrf.mxu1  ;;  %v8286_v40 = vpop.f32.mrf.mxu0 }
 0x190   : > { %v10868_v53 = vadd.f32 %v8283_v0, %v2047_v26 }
 0x191   : > { %v8236_v17 = vpop.f32.mrf.mxu1  ;;  %v10871_v21 = vpop.f32.mrf.mxu0 }
 0x192   : > { %13352 = vst [vmem:[#allocation53_spill] sm:$0xff] %v10868_v53  ;;  %v2049_v51 = vadd.f32 %v8236_v17, %v10684_v37  ;;  %v7169_v37 = vld [vmem:[%s13023_s6 + $0x10] sm:$0xff] }
 0x193   : > { %v10873_v24 = vpop.f32.mrf.mxu1  ;;  %v8289_v7 = vpop.f32.mrf.mxu0  ;;  %8614 = vmatprep.subr.mxu1 %v7169_v37 }
 0x194   : > { %v10875_v5 = vadd.f32 %v8286_v40, %v2049_v51  ;;  %8615 = vmatpush3.msra.mxu1 %v7169_v37 }
 0x195   : > { %v8239_v10 = vpop.f32.mrf.mxu1  ;;  %v10878_v56 = vpop.f32.mrf.mxu0 }
 0x196   : > { %13353 = vst [vmem:[#allocation56_spill] sm:$0xff] %v10875_v5  ;;  %v2051_v34 = vadd.f32 %v8239_v10, %v10698_v49  ;;  %v7202_v49 = vld [vmem:[%s13023_s6 + $0x18] sm:$0xff] }
 0x197   : > { %v10880_v48 = vpop.f32.mrf.mxu1  ;;  %v8292_v26 = vpop.f32.mrf.mxu0  ;;  %8664 = vmatprep.subr.mxu0 %v7202_v49 }
 0x198   : > { %v10882_v0 = vadd.f32 %v8289_v7, %v2051_v34  ;;  %8665 = vmatpush3.msra.mxu0 %v7202_v49 }
 0x199   : > { %v8242_v17 = vpop.f32.mrf.mxu1  ;;  %v10888_v51 = vpop.f32.mrf.mxu0 }
 0x19a   : > { %13354 = vst [vmem:[#allocation57_spill] sm:$0xff] %v10882_v0  ;;  %v2053_v40 = vadd.f32 %v8242_v17, %v10712_v62 }
 0x19b   : > { %v10893_v10 = vpop.f32.mrf.mxu1  ;;  %v8295_v34 = vpop.f32.mrf.mxu0 }
 0x19c   : > { %v10895_v7 = vadd.f32 %v8292_v26, %v2053_v40 }
 0x19d   : > { %v8245_v0 = vpop.f32.mrf.mxu1  ;;  %v10898_v53 = vpop.f32.mrf.mxu0 }
 0x19e   : > { %13355 = vst [vmem:[#allocation61_spill] sm:$0xff] %v10895_v7  ;;  %v2055_v5 = vadd.f32 %v8245_v0, %v10730_v19  ;;  %13356 = vst [vmem:[#allocation62_spill] sm:$0xff] %v10898_v53 }
 0x19f   : > { %v10900_v62 = vpop.f32.mrf.mxu1  ;;  %v8298_v37 = vpop.f32.mrf.mxu0 }
 0x1a0   : > { %v10902_v17 = vadd.f32 %v8295_v34, %v2055_v5 }
 0x1a1   : > { %v8248_v59 = vpop.f32.mrf.mxu1  ;;  %v10905_v6 = vpop.f32.mrf.mxu0 }
 0x1a2   : > { %13357 = vst [vmem:[#allocation18_spill] sm:$0xff] %v10902_v17  ;;  %v2057_v44 = vadd.f32 %v8248_v59, %v10745_v41  ;;  %13358 = vst [vmem:[#allocation19_spill] sm:$0xff] %v10905_v6 }
 0x1a3   : > { %v10907_v42 = vpop.f32.mrf.mxu1  ;;  %v8301_v40 = vpop.f32.mrf.mxu0 }
 0x1a4   : > { %v10909_v26 = vadd.f32 %v8298_v37, %v2057_v44 }
 0x1a5   : > { %v8251_v49 = vpop.f32.mrf.mxu1  ;;  %v10912_v0 = vpop.f32.mrf.mxu0 }
 0x1a6   : > { %13359 = vst [vmem:[#allocation25_spill] sm:$0xff] %v10909_v26  ;;  %v2059_v19 = vadd.f32 %v8251_v49, %v10760_v61  ;;  %13360 = vst [vmem:[#allocation26_spill] sm:$0xff] %v10912_v0 }
 0x1a7   : > { %v10914_v7 = vpop.f32.mrf.mxu1  ;;  %v8304_v34 = vpop.f32.mrf.mxu0 }
 0x1a8   : > { %v10916_v5 = vadd.f32 %v8301_v40, %v2059_v19 }
 0x1a9   : > { %v8254_v17 = vpop.f32.mrf.mxu1  ;;  %v10919_v59 = vpop.f32.mrf.mxu0 }
 0x1aa   : > { %13361 = vst [vmem:[#allocation28_spill] sm:$0xff] %v10916_v5  ;;  %v2061_v41 = vadd.f32 %v8254_v17, %v10779_v31  ;;  %13362 = vst [vmem:[#allocation30_spill] sm:$0xff] %v10919_v59 }
 0x1ab   : > { %v10921_v6 = vpop.f32.mrf.mxu1  ;;  %v8307_v37 = vpop.f32.mrf.mxu0 }
 0x1ac   : > { %v10923_v44 = vadd.f32 %v8304_v34, %v2061_v41 }
 0x1ad   : > { %v8257_v26 = vpop.f32.mrf.mxu1  ;;  %v10926_v49 = vpop.f32.mrf.mxu0 }
 0x1ae   : > { %13363 = vst [vmem:[#allocation32_spill] sm:$0xff] %v10923_v44  ;;  %v2063_v61 = vadd.f32 %v8257_v26, %v10796_v18  ;;  %13364 = vst [vmem:[#allocation37_spill] sm:$0xff] %v10926_v49 }
 0x1af   : > { %v10928_v0 = vpop.f32.mrf.mxu1  ;;  %v8310_v19 = vpop.f32.mrf.mxu0 }
 0x1b0   : > { %v10930_v40 = vadd.f32 %v8307_v37, %v2063_v61 }
 0x1b1   : > { %v8260_v5 = vpop.f32.mrf.mxu1  ;;  %v10933_v17 = vpop.f32.mrf.mxu0 }
 0x1b2   : > { %13365 = vst [vmem:[#allocation49_spill] sm:$0xff] %v10930_v40  ;;  %v2065_v31 = vadd.f32 %v8260_v5, %v10811_v63  ;;  %13366 = vst [vmem:[#allocation50_spill] sm:$0xff] %v10933_v17 }
 0x1b3   : > { %v10935_v59 = vpop.f32.mrf.mxu1  ;;  %v8313_v41 = vpop.f32.mrf.mxu0 }
 0x1b4   : > { %v10937_v34 = vadd.f32 %v8310_v19, %v2065_v31 }
 0x1b5   : > { %v8263_v44 = vpop.f32.mrf.mxu1  ;;  %v10940_v26 = vpop.f32.mrf.mxu0 }
 0x1b6   : > { %13367 = vst [vmem:[#allocation54_spill] sm:$0xff] %v10937_v34  ;;  %v2067_v18 = vadd.f32 %v8263_v44, %v10820_v33  ;;  %13368 = vst [vmem:[#allocation55_spill] sm:$0xff] %v10940_v26 }
 0x1b7   : > { %v10942_v49 = vpop.f32.mrf.mxu1  ;;  %v10946_v61 = vpop.f32.mrf.mxu0 }
 0x1b8   : > { %v10944_v37 = vadd.f32 %v8313_v41, %v2067_v18  ;;  %13370 = vst [vmem:[#allocation59_spill] sm:$0xff] %v10946_v61 }
 0x1b9   : > { %v10948_v40 = vpop.f32.mrf.mxu1  ;;  %v10950_v63 = vpop.f32.mrf.mxu0 }
 0x1ba   : > { %13369 = vst [vmem:[#allocation58_spill] sm:$0xff] %v10944_v37  ;;  %13371 = vst [vmem:[#allocation64_spill] sm:$0xff] %v10950_v63 }
 0x1bb   : > { %v10952_v5 = vpop.f32.mrf.mxu1  ;;  %v10954_v19 = vpop.f32.mrf.mxu0 }
 0x1bc   : > { %13372 = vst [vmem:[#allocation36_spill] sm:$0xff] %v10952_v5  ;;  %13373 = vst [vmem:[#allocation60_spill] sm:$0xff] %v10954_v19  ;;  %v13422_v5 = vld [vmem:[#allocation63_spill] sm:$0xff] }
 0x1bd   : > { %v10956_v31 = vpop.f32.mrf.mxu1  ;;  %v10958_v34 = vpop.f32.mrf.mxu0 }
 0x1be   : > { %13374 = vst [vmem:[#allocation68_spill] sm:$0xff] %v10956_v31  ;;  %13375 = vst [vmem:[#allocation20_spill] sm:$0xff] %v10958_v34  ;;  %v13420_v31 = vld [vmem:[#allocation29_spill] sm:$0xff] }
 0x1bf   : > { %v10960_v33 = vpop.f32.mrf.mxu1  ;;  %v10962_v44 = vpop.f32.mrf.mxu0 }
 0x1c0   : > { %13376 = vst [vmem:[#allocation65_spill] sm:$0xff] %v10960_v33  ;;  %13377 = vst [vmem:[#allocation70_spill] sm:$0xff] %v10962_v44 }
 0x1c1   : > { %v10964_v41 = vpop.f32.mrf.mxu1  ;;  %v10966_v18 = vpop.f32.mrf.mxu0 }
 0x1c2   : > { %13378 = vst [vmem:[#allocation73_spill] sm:$0xff] %v10964_v41  ;;  %13379 = vst [vmem:[#allocation74_spill] sm:$0xff] %v10966_v18 }
 0x1c3   : > { %v10968_v37 = vpop.f32.mrf.mxu1  ;;  %v10970_v61 = vpop.f32.mrf.mxu0 }
 0x1c4   : > { %13380 = vst [vmem:[#allocation75_spill] sm:$0xff] %v10968_v37  ;;  %13381 = vst [vmem:[#allocation76_spill] sm:$0xff] %v10970_v61  ;;  %v7235_v61 = vld [vmem:[%s13023_s6 + $0x20] sm:$0xff] }
 0x1c5   : > { %v10972_v63 = vpop.f32.mrf.mxu1  ;;  %v10974_v26 = vpop.f32.mrf.mxu0  ;;  %8714 = vmatprep.subr.mxu1 %v7235_v61 }
 0x1c6   : > { %13382 = vst [vmem:[#allocation77_spill] sm:$0xff] %v10972_v63  ;;  %13383 = vst [vmem:[#allocation78_spill] sm:$0xff] %v10974_v26 }
 0x1c7   : > { %v10976_v19 = vpop.f32.mrf.mxu1  ;;  %v10978_v17 = vpop.f32.mrf.mxu0 }
 0x1c8   : > { %13384 = vst [vmem:[#allocation79_spill] sm:$0xff] %v10976_v19  ;;  %13385 = vst [vmem:[#allocation80_spill] sm:$0xff] %v10978_v17 }
 0x1c9   : > { %v10980_v34 = vpop.f32.mrf.mxu1  ;;  %v10982_v33 = vpop.f32.mrf.mxu0 }
 0x1ca   : > { %13386 = vst [vmem:[#allocation81_spill] sm:$0xff] %v10980_v34  ;;  %13387 = vst [vmem:[#allocation82_spill] sm:$0xff] %v10982_v33  ;;  %v7268_v33 = vld [vmem:[%s13023_s6 + $0x28] sm:$0xff] }
 0x1cb   : > { %v10984_v44 = vpop.f32.mrf.mxu1  ;;  %v10986_v41 = vpop.f32.mrf.mxu0  ;;  %8764 = vmatprep.subr.mxu0 %v7268_v33 }
 0x1cc   : > { %13388 = vst [vmem:[#allocation83_spill] sm:$0xff] %v10984_v44  ;;  %13389 = vst [vmem:[#allocation84_spill] sm:$0xff] %v10986_v41 }
 0x1cd   : > { %v10988_v18 = vpop.f32.mrf.mxu1  ;;  %v10993_v63 = vpop.f32.mrf.mxu0 }
 0x1ce   : > { %13390 = vst [vmem:[#allocation85_spill] sm:$0xff] %v10988_v18  ;;  %13391 = vst [vmem:[#allocation86_spill] sm:$0xff] %v10993_v63 }
 0x1cf   : > { %v10995_v26 = vpop.f32.mrf.mxu1  ;;  %v10997_v17 = vpop.f32.mrf.mxu0 }
 0x1d0   : > { %13392 = vst [vmem:[#allocation87_spill] sm:$0xff] %v10995_v26  ;;  %13393 = vst [vmem:[#allocation88_spill] sm:$0xff] %v10997_v17 }
 0x1d1   : > { %v10999_v34 = vpop.f32.mrf.mxu1  ;;  %v11004_v41 = vpop.f32.mrf.mxu0 }
 0x1d2   : > { %13394 = vst [vmem:[#allocation89_spill] sm:$0xff] %v10999_v34  ;;  %13395 = vst [vmem:[#allocation90_spill] sm:$0xff] %v11004_v41 }
 0x1d3   : > { %v11006_v18 = vpop.f32.mrf.mxu1  ;;  %v11008_v44 = vpop.f32.mrf.mxu0 }
 0x1d4   : > { %13396 = vst [vmem:[#allocation91_spill] sm:$0xff] %v11006_v18  ;;  %13397 = vst [vmem:[#allocation92_spill] sm:$0xff] %v11008_v44 }
 0x1d5   : > { %v11010_v19 = vpop.f32.mrf.mxu1  ;;  %v11012_v61 = vpop.f32.mrf.mxu0 }
 0x1d6   : > { %13398 = vst [vmem:[#allocation93_spill] sm:$0xff] %v11010_v19  ;;  %13399 = vst [vmem:[#allocation94_spill] sm:$0xff] %v11012_v61 }
 0x1d7   : > { %v11014_v63 = vpop.f32.mrf.mxu1  ;;  %v11016_v17 = vpop.f32.mrf.mxu0 }
 0x1d8   : > { %13400 = vst [vmem:[#allocation95_spill] sm:$0xff] %v11014_v63  ;;  %13401 = vst [vmem:[#allocation96_spill] sm:$0xff] %v11016_v17 }
 0x1d9   : > { %v11018_v34 = vpop.f32.mrf.mxu1  ;;  %v11020_v26 = vpop.f32.mrf.mxu0 }
 0x1da   : > { %13402 = vst [vmem:[#allocation97_spill] sm:$0xff] %v11018_v34  ;;  %13403 = vst [vmem:[#allocation98_spill] sm:$0xff] %v11020_v26 }
 0x1db   : > { %v11022_v37 = vpop.f32.mrf.mxu1  ;;  %v11024_v41 = vpop.f32.mrf.mxu0 }
 0x1dc   : > { %13404 = vst [vmem:[#allocation99_spill] sm:$0xff] %v11022_v37  ;;  %13405 = vst [vmem:[#allocation100_spill] sm:$0xff] %v11024_v41 }
 0x1dd   : > { %v11026_v33 = vpop.f32.mrf.mxu1  ;;  %v11028_v18 = vpop.f32.mrf.mxu0 }
 0x1de   : > { %13406 = vst [vmem:[#allocation101_spill] sm:$0xff] %v11026_v33  ;;  %13407 = vst [vmem:[#allocation102_spill] sm:$0xff] %v11028_v18  ;;  %v13418_v18 = vld [vmem:[#allocation22_spill] sm:$0xff] }
 0x1df   : > { %v11030_v44 = vpop.f32.mrf.mxu1  ;;  %v11032_v19 = vpop.f32.mrf.mxu0 }
 0x1e0   : > { %13408 = vst [vmem:[#allocation103_spill] sm:$0xff] %v11030_v44  ;;  %13409 = vst [vmem:[#allocation104_spill] sm:$0xff] %v11032_v19  ;;  %v1331_v44 = vadd.f32 %v10728_v38, %v13418_v18  ;;  %v13419_v19 = vld [vmem:[#allocation27_spill] sm:$0xff] }
 0x1e1   : > { %v11034_v61 = vpop.f32.mrf.mxu1  ;;  %v11036_v63 = vpop.f32.mrf.mxu0  ;;  %v13424_v18 = vld [vmem:[#allocation71_spill] sm:$0xff] }
 0x1e2   : > { %13410 = vst [vmem:[#allocation105_spill] sm:$0xff] %v11034_v61  ;;  %13411 = vst [vmem:[#allocation106_spill] sm:$0xff] %v11036_v63  ;;  %v1341_v61 = vadd.f32 %v10743_v4, %v13419_v19  ;;  %v1351_v63 = vadd.f32 %v10758_v30, %v13420_v31  ;;  %v1391_v4 = vadd.f32 %v10818_v20, %v13424_v18 }
 0x1e3   : > { %v11038_v17 = vpop.f32.mrf.mxu1  ;;  %v11040_v34 = vpop.f32.mrf.mxu0  ;;  %v2036_v30 = vadd.f32 %v10825_v8, %v10603_v52  ;;  %v2040_v52 = vadd.f32 %v10839_v57, %v10631_v32  ;;  %v2042_v8 = vadd.f32 %v10846_v35, %v10645_v23  ;;  %v2050_v23 = vadd.f32 %v10880_v48, %v10707_v1 }
 0x1e4   : > { %13412 = vst [vmem:[#allocation107_spill] sm:$0xff] %v11038_v17  ;;  %13413 = vst [vmem:[#allocation108_spill] sm:$0xff] %v11040_v34  ;;  %v13421_v34 = vld [vmem:[#allocation31_spill] sm:$0xff]  ;;  %v1801_v32 = vadd.f32 %v10816_v27, %v1391_v4 }
 0x1e5   : > { %v11042_v26 = vpop.f32.mrf.mxu1  ;;  %v11044_v37 = vpop.f32.mrf.mxu0  ;;  %v2309_v27 = vadd.f32 %v10837_v36, %v2040_v52  ;;  %v2319_v36 = vadd.f32 %v10878_v56, %v2050_v23  ;;  %v13438_v52 = vld [vmem:[#allocation41_spill] sm:$0xff]  ;;  %v13442_v23 = vld [vmem:[#allocation79_spill] sm:$0xff] }
 0x1e6   : > { %13414 = vst [vmem:[#allocation109_spill] sm:$0xff] %v11042_v26  ;;  %13415 = vst [vmem:[#allocation110_spill] sm:$0xff] %v11044_v37  ;;  %v1361_v26 = vadd.f32 %v10777_v39, %v13421_v34  ;;  %v1371_v37 = vadd.f32 %v10793_v58, %v13422_v5  ;;  %v1789_v39 = vadd.f32 %v10724_v9, %v1331_v44  ;;  %v13432_v44 = vld [vmem:[#allocation68_spill] sm:$0xff] }
 0x1e7   : > { %v11046_v41 = vpop.f32.mrf.mxu1  ;;  %v11048_v33 = vpop.f32.mrf.mxu0  ;;  %v1791_v34 = vadd.f32 %v10739_v60, %v1341_v61  ;;  %v1793_v58 = vadd.f32 %v10754_v54, %v1351_v63  ;;  %v2038_v5 = vadd.f32 %v10832_v46, %v10617_v43  ;;  %v2044_v54 = vadd.f32 %v10855_v55, %v10659_v45  ;;  %v13430_v63 = vld [vmem:[#allocation37_spill] sm:$0xff] }
 0x1e8   : > { %13416 = vst [vmem:[#allocation111_spill] sm:$0xff] %v11046_v41  ;;  %13417 = vst [vmem:[#allocation112_spill] sm:$0xff] %v11048_v33  ;;  %v13423_v33 = vld [vmem:[#allocation69_spill] sm:$0xff]  ;;  %v1795_v31 = vadd.f32 %v10771_v29, %v1361_v26  ;;  %v1797_v20 = vadd.f32 %v10788_v3, %v1371_v37  ;;  %v2046_v43 = vadd.f32 %v10866_v50, %v10676_v2  ;;  %v13428_v26 = vld [vmem:[#allocation36_spill] sm:$0xff] }
 0x1e9   : > { %v11056_v17 = vpop.f32.mrf.mxu1  ;;  %v11062_v41 = vpop.f32.mrf.mxu0  ;;  %v1381_v53 = vadd.f32 %v10809_v47, %v13423_v33  ;;  %v2048_v29 = vadd.f32 %v10873_v24, %v10693_v16  ;;  %v2305_v46 = vadd.f32 %v10823_v28, %v2036_v30  ;;  %v2307_v45 = vadd.f32 %v10830_v25, %v2038_v5  ;;  %v13433_v33 = vld [vmem:[#allocation65_spill] sm:$0xff]  ;;  %v13434_v30 = vld [vmem:[#allocation50_spill] sm:$0xff] }
 0x1ea   : > { %v2054_v2 = vadd.f32 %v10900_v62, %v1789_v39  ;;  %v2056_v16 = vadd.f32 %v10907_v42, %v1791_v34  ;;  %v2058_v35 = vadd.f32 %v10914_v7, %v1793_v58  ;;  %v2311_v28 = vadd.f32 %v10844_v22, %v2042_v8  ;;  %v13435_v34 = vld [vmem:[#allocation40_spill] sm:$0xff]  ;;  %v13436_v58 = vld [vmem:[#allocation73_spill] sm:$0xff] }
 0x1eb   : > { %v11066_v38 = vpop.f32.mrf.mxu1  ;;  %v11072_v19 = vpop.f32.mrf.mxu0  ;;  %v1799_v60 = vadd.f32 %v10805_v11, %v1381_v53  ;;  %v2052_v11 = vadd.f32 %v10893_v10, %v10721_v14  ;;  %v2060_v1 = vadd.f32 %v10921_v6, %v1795_v31  ;;  %v2062_v14 = vadd.f32 %v10928_v0, %v1797_v20  ;;  %v13427_v0 = vld [vmem:[#allocation26_spill] sm:$0xff]  ;;  %v13437_v31 = vld [vmem:[#allocation75_spill] sm:$0xff]  ;;  %v13439_v8 = vld [vmem:[#allocation77_spill] sm:$0xff] }
 0x1ec   : > { %v2313_v25 = vadd.f32 %v10852_v15, %v2044_v54  ;;  %v2315_v53 = vadd.f32 %v10864_v13, %v2046_v43  ;;  %v2317_v42 = vadd.f32 %v10871_v21, %v2048_v29  ;;  %v2066_v6 = vadd.f32 %v10942_v49, %v1801_v32  ;;  %v13425_v15 = vld [vmem:[#allocation62_spill] sm:$0xff]  ;;  %v13426_v13 = vld [vmem:[#allocation19_spill] sm:$0xff] }
 0x1ed   : > { %v11079_v47 = vpop.f32.mrf.mxu1  ;;  %v11087_v9 = vpop.f32.mrf.mxu0  ;;  %v2064_v24 = vadd.f32 %v10935_v59, %v1799_v60  ;;  %v2321_v22 = vadd.f32 %v10888_v51, %v2052_v11  ;;  %v2574_v10 = vadd.f32 %v10948_v40, %v10827_v12  ;;  %v11132_v62 = vadd.f32 %v13425_v15, %v2054_v2  ;;  %v13429_v51 = vld [vmem:[#allocation30_spill] sm:$0xff]  ;;  %v13431_v40 = vld [vmem:[#allocation72_spill] sm:$0xff]  ;;  %v13440_v43 = vld [vmem:[#allocation55_spill] sm:$0xff] }
 0x1ee   : > { %v11135_v21 = vadd.f32 %v13426_v13, %v2056_v16  ;;  %v11138_v59 = vadd.f32 %v13427_v0, %v2058_v35  ;;  %v2573_v56 = vadd.f32 %v13428_v26, %v2305_v46  ;;  %v11144_v49 = vadd.f32 %v13429_v51, %v2060_v1  ;;  %v13441_v32 = vld [vmem:[#allocation59_spill] sm:$0xff]  ;;  %v13444_v2 = vld [vmem:[#allocation81_spill] sm:$0xff]  ;;  %v13445_v1 = vld [vmem:[#allocation64_spill] sm:$0xff] }
 0x1ef   : > { %v11096_v3 = vpop.f32.mrf.mxu1  ;;  %v11104_v57 = vpop.f32.mrf.mxu0  ;;  %v11147_v12 = vadd.f32 %v13430_v63, %v2062_v14  ;;  %v2576_v61 = vadd.f32 %v13432_v44, %v13431_v40  ;;  %v2575_v18 = vadd.f32 %v13433_v33, %v2307_v45  ;;  %v11155_v39 = vadd.f32 %v13434_v30, %v2064_v24  ;;  %v13443_v45 = vld [vmem:[#allocation52_spill] sm:$0xff]  ;;  %v13446_v24 = vld [vmem:[#allocation83_spill] sm:$0xff]  ;;  %v13447_v15 = vld [vmem:[#allocation53_spill] sm:$0xff] }
 0x1f0   : > { %v2578_v5 = vadd.f32 %v13436_v58, %v13435_v34  ;;  %v2577_v20 = vadd.f32 %v13437_v31, %v2309_v27  ;;  %v2580_v60 = vadd.f32 %v13439_v8, %v13438_v52  ;;  %v11165_v29 = vadd.f32 %v13440_v43, %v2066_v6  ;;  %v13448_v13 = vld [vmem:[#allocation85_spill] sm:$0xff]  ;;  %v13449_v26 = vld [vmem:[#allocation87_spill] sm:$0xff]  ;;  %v13450_v6 = vld [vmem:[#allocation60_spill] sm:$0xff] }
 0x1f1   : > { %v11110_v55 = vpop.f32.mrf.mxu1  ;;  %v11116_v50 = vpop.f32.mrf.mxu0  ;;  %v2839_v46 = vadd.f32 %v13441_v32, %v2574_v10  ;;  %v2579_v11 = vadd.f32 %v13442_v23, %v2311_v28  ;;  %v2582_v16 = vadd.f32 %v13444_v2, %v13443_v45  ;;  %v2838_v14 = vadd.f32 %v13445_v1, %v2573_v56  ;;  %v13451_v44 = vld [vmem:[#allocation20_spill] sm:$0xff]  ;;  %v13453_v28 = vld [vmem:[#allocation89_spill] sm:$0xff]  ;;  %v13454_v31 = vld [vmem:[#allocation70_spill] sm:$0xff] }
 0x1f2   : > { %v2581_v27 = vadd.f32 %v13446_v24, %v2313_v25  ;;  %v2584_v0 = vadd.f32 %v13448_v13, %v13447_v15  ;;  %v2583_v51 = vadd.f32 %v13449_v26, %v2315_v53  ;;  %v2841_v40 = vadd.f32 %v13450_v6, %v2576_v61  ;;  %v13452_v33 = vld [vmem:[#allocation56_spill] sm:$0xff]  ;;  %v13455_v56 = vld [vmem:[#allocation74_spill] sm:$0xff]  ;;  %v13457_v32 = vld [vmem:[#allocation91_spill] sm:$0xff] }
 0x1f3   : > { %v11122_v48 = vpop.f32.mrf.mxu1  ;;  %v11129_v7 = vpop.f32.mrf.mxu0  ;;  %v2840_v10 = vadd.f32 %v13451_v44, %v2575_v18  ;;  %v2586_v30 = vadd.f32 %v13453_v28, %v13452_v33  ;;  %v2843_v52 = vadd.f32 %v13454_v31, %v2578_v5  ;;  %v2842_v8 = vadd.f32 %v13455_v56, %v2577_v20  ;;  %v13456_v25 = vld [vmem:[#allocation76_spill] sm:$0xff]  ;;  %v13458_v18 = vld [vmem:[#allocation78_spill] sm:$0xff]  ;;  %v13464_v6 = vld [vmem:[#allocation93_spill] sm:$0xff] }
 0x1f4   : > { %v2845_v43 = vadd.f32 %v13456_v25, %v2580_v60  ;;  %v2585_v23 = vadd.f32 %v13457_v32, %v2317_v42  ;;  %v11187_v53 = vld [vmem:[%s13021_s4] ss:$0 sm:$0xff]  ;;  %v11190_v45 = vadd.f32 %v13458_v18, %v2579_v11  ;;  %v13460_v20 = vld [vmem:[#allocation82_spill] sm:$0xff]  ;;  %v13467_v31 = vld [vmem:[#allocation95_spill] sm:$0xff] }
 0x1f5   : > { %v11141_v37 = vpop.f32.mrf.mxu1  ;;  %v11152_v4 = vpop.f32.mrf.mxu0  ;;  %v13459_v2 = vld [vmem:[#allocation80_spill] sm:$0xff]  ;;  %v11196_v15 = vadd.f32 %v13460_v20, %v2581_v27  ;;  %v13462_v13 = vld [vmem:[#allocation86_spill] sm:$0xff]  ;;  %v2587_v56 = vadd.f32 %v13467_v31, %v2319_v36  ;;  %v13468_v25 = vld [vmem:[#allocation61_spill] sm:$0xff] }
 0x1f6   : > { %v13461_v60 = vld [vmem:[#allocation84_spill] sm:$0xff]  ;;  %v11202_v26 = vadd.f32 %v13462_v13, %v2583_v51  ;;  %v13469_v32 = vld [vmem:[#allocation97_spill] sm:$0xff]  ;;  %v13470_v18 = vld [vmem:[#allocation99_spill] sm:$0xff] }
 0x1f7   : > { %v11162_v54 = vpop.f32.mrf.mxu1  ;;  %v8468_v35 = vpop.f32.mrf.mxu0  ;;  %v11199_v42 = vadd.f32 %v13461_v60, %v2584_v0  ;;  %v11209_v11 = vld [vmem:[%s13022_s5] ss:$0 sm:$0xff]  ;;  %v13474_v36 = vld [vmem:[#allocation103_spill] sm:$0xff] }
 0x1f9   : > { %v8418_v63 = vpop.f32.mrf.mxu1  ;;  %v3216_v58 = vpop.f32.mrf.mxu0 }
 0x1fa   : > { %v3108_v34 = vadd.f32 %v8418_v63, %v2839_v46  ;;  %v11193_v46 = vadd.f32 %v13459_v2, %v2582_v16  ;;  %v13463_v63 = vld [vmem:[#allocation57_spill] sm:$0xff]  ;;  %v2589_v2 = vadd.f32 %v13470_v18, %v2321_v22 }
 0x1fb   : > { %v2948_v61 = vpop.f32.mrf.mxu1  ;;  %v8471_v24 = vpop.f32.mrf.mxu0  ;;  %v2588_v44 = vadd.f32 %v13464_v6, %v13463_v63  ;;  %v13473_v63 = vld [vmem:[#allocation101_spill] sm:$0xff] }
 0x1fc   : > { %v3376_v1 = vadd.f32 %v8468_v35, %v3108_v34  ;;  %v3107_v5 = vadd.f32 %v2948_v61, %v2838_v14  ;;  %v13465_v35 = vld [vmem:[#allocation88_spill] sm:$0xff]  ;;  %v13466_v34 = vld [vmem:[#allocation90_spill] sm:$0xff]  ;;  %v2590_v61 = vadd.f32 %v13469_v32, %v13468_v25 }
 0x1fd   : > { %v8421_v16 = vpop.f32.mrf.mxu1  ;;  %v11212_v14 = vadd.f32 %v13465_v35, %v2586_v30  ;;  %v3226_v28 = vpop.f32.mrf.mxu0  ;;  %v11216_v51 = vadd.f32 %v13466_v34, %v2585_v23  ;;  %v13472_v23 = vld [vmem:[#allocation18_spill] sm:$0xff]  ;;  %v13475_v35 = vld [vmem:[#allocation25_spill] sm:$0xff]  ;;  %v13478_v32 = vld [vmem:[#allocation96_spill] sm:$0xff] }
 0x1fe   : > { %v3415_v27 = vmul.f32 %v11187_v53, %v3376_v1  ;;  %v3375_v33 = vadd.f32 %v3216_v58, %v3107_v5  ;;  %v3110_v0 = vadd.f32 %v8421_v16, %v2841_v40  ;;  %v13471_v40 = vld [vmem:[#allocation92_spill] sm:$0xff]  ;;  %v2592_v6 = vadd.f32 %v13473_v63, %v13472_v23  ;;  %v13476_v34 = vld [vmem:[#allocation105_spill] sm:$0xff] }
 0x1ff   : > { %v2958_v20 = vpop.f32.mrf.mxu1  ;;  %v8474_v58 = vpop.f32.mrf.mxu0  ;;  %v11225_v5 = vadd.f32 %v13471_v40, %v2588_v44  ;;  %v2591_v16 = vadd.f32 %v13474_v36, %v11132_v62  ;;  %v2594_v22 = vadd.f32 %v13476_v34, %v13475_v35  ;;  %v11239_v18 = vadd.f32 %v13478_v32, %v2590_v61  ;;  %v13480_v63 = vld [vmem:[#allocation100_spill] sm:$0xff]  ;;  %v13481_v36 = vld [vmem:[#allocation102_spill] sm:$0xff]  ;;  %v13485_v32 = vld [vmem:[#allocation109_spill] sm:$0xff] }
 0x200   : > { %v3454_v60 = vadd.f32 %v11209_v11, %v3415_v27  ;;  %v3414_v30 = vmul.f32 %v11187_v53, %v3375_v33  ;;  %v3378_v13 = vadd.f32 %v8471_v24, %v3110_v0  ;;  %v3109_v1 = vadd.f32 %v2958_v20, %v2840_v10  ;;  %v13477_v0 = vld [vmem:[#allocation94_spill] sm:$0xff]  ;;  %v13482_v35 = vld [vmem:[#allocation104_spill] sm:$0xff] }
 0x201   : > { %v8424_v31 = vpop.f32.mrf.mxu1  ;;  %v3236_v33 = vpop.f32.mrf.mxu0  ;;  %v11236_v44 = vadd.f32 %v13477_v0, %v2587_v56  ;;  %v13479_v20 = vld [vmem:[#allocation98_spill] sm:$0xff]  ;;  %v11248_v56 = vadd.f32 %v13480_v63, %v2592_v6  ;;  %v11251_v61 = vadd.f32 %v13481_v36, %v2591_v16  ;;  %v13484_v0 = vld [vmem:[#allocation28_spill] sm:$0xff]  ;;  %v13488_v63 = vld [vmem:[#allocation49_spill] sm:$0xff] }
 0x202   : > { %v3486_v25 = vmax.f32 %v3454_v60, 0.0  ;;  %v3453_v27 = vadd.f32 %v11209_v11, %v3414_v30  ;;  %v3417_v24 = vmul.f32 %v11187_v53, %v3378_v13  ;;  %v3377_v10 = vadd.f32 %v3226_v28, %v3109_v1 }
 0x203   : > { %v11242_v40 = vadd.f32 %v13479_v20, %v2589_v2  ;;  %v3112_v62 = vadd.f32 %v8424_v31, %v2843_v52  ;;  %v2968_v23 = vpop.f32.mrf.mxu1  ;;  %v8477_v1 = vpop.f32.mrf.mxu0  ;;  %v11254_v2 = vadd.f32 %v13482_v35, %v2594_v22  ;;  %v2596_v16 = vadd.f32 %v13485_v32, %v13484_v0  ;;  %v13486_v20 = vld [vmem:[#allocation111_spill] sm:$0xff] }
 0x204   : > { %3518 = vst.msk [vmem:[#allocation3 + $0x21] sm:$0xff] %vm346_vm0, %v3486_v25  ;;  %v3485_v60 = vmax.f32 %v3453_v27, 0.0  ;;  %v3456_v30 = vadd.f32 %v11209_v11, %v3417_v24  ;;  %v3416_v13 = vmul.f32 %v11187_v53, %v3377_v10  ;;  %v3111_v28 = vadd.f32 %v2968_v23, %v2842_v8  ;;  %v13483_v10 = vld [vmem:[#allocation107_spill] sm:$0xff] }
 0x205   : > { %v3380_v52 = vadd.f32 %v8474_v58, %v3112_v62  ;;  %v8427_v34 = vpop.f32.mrf.mxu1  ;;  %v3246_v8 = vpop.f32.mrf.mxu0  ;;  %v2593_v6 = vadd.f32 %v13483_v10, %v11135_v21  ;;  %v2595_v22 = vadd.f32 %v13486_v20, %v11138_v59  ;;  %v2600_v59 = vadd.f32 %v11079_v47, %v13488_v63  ;;  %v13491_v47 = vld [vmem:[#allocation110_spill] sm:$0xff] }
 0x206   : > { %3517 = vst.msk [vmem:[#allocation3 + $0x19] sm:$0xff] %vm346_vm0, %v3485_v60  ;;  %v3488_v31 = vmax.f32 %v3456_v30, 0.0  ;;  %v3455_v25 = vadd.f32 %v11209_v11, %v3416_v13  ;;  %v3379_v27 = vadd.f32 %v3236_v33, %v3111_v28  ;;  %v3114_v24 = vadd.f32 %v8427_v34, %v2845_v43  ;;  %v13487_v13 = vld [vmem:[#allocation32_spill] sm:$0xff] }
 0x207   : > { %v3419_v58 = vmul.f32 %v11187_v53, %v3380_v52  ;;  %v2978_v62 = vpop.f32.mrf.mxu1  ;;  %v8480_v30 = vpop.f32.mrf.mxu0  ;;  %v2598_v21 = vadd.f32 %v11056_v17, %v13487_v13  ;;  %v2597_v28 = vadd.f32 %v11066_v38, %v11144_v49  ;;  %v13489_v17 = vld [vmem:[#allocation106_spill] sm:$0xff]  ;;  %v13490_v38 = vld [vmem:[#allocation108_spill] sm:$0xff] }
 0x208   : > { %3520 = vst.msk [vmem:[#allocation3 + $0x39] sm:$0xff] %vm346_vm0, %v3488_v31  ;;  %v3487_v23 = vmax.f32 %v3455_v25, 0.0  ;;  %v3418_v60 = vmul.f32 %v11187_v53, %v3379_v27  ;;  %v3382_v33 = vadd.f32 %v8477_v1, %v3114_v24  ;;  %v3113_v43 = vadd.f32 %v2978_v62, %v11190_v45  ;;  %v13492_v62 = vld [vmem:[#allocation112_spill] sm:$0xff] }
 0x209   : > { %v3458_v36 = vadd.f32 %v11209_v11, %v3419_v58  ;;  %v8430_v35 = vpop.f32.mrf.mxu1  ;;  %v3256_v31 = vpop.f32.mrf.mxu0  ;;  %v11280_v25 = vadd.f32 %v13489_v17, %v2593_v6  ;;  %v11283_v49 = vadd.f32 %v13490_v38, %v2596_v16  ;;  %v11286_v27 = vadd.f32 %v13491_v47, %v2595_v22 }
 0x20a   : > { %3519 = vst.msk [vmem:[#allocation3 + $0x31] sm:$0xff] %vm346_vm0, %v3487_v23  ;;  %v3457_v52 = vadd.f32 %v11209_v11, %v3418_v60  ;;  %v3421_v1 = vmul.f32 %v11187_v53, %v3382_v33  ;;  %v3381_v45 = vadd.f32 %v3246_v8, %v3113_v43  ;;  %v3116_v34 = vadd.f32 %v8430_v35, %v11193_v46 }
 0x20b   : > { %v3490_v24 = vmax.f32 %v3458_v36, 0.0  ;;  %v2988_v10 = vpop.f32.mrf.mxu1  ;;  %v8483_v58 = vpop.f32.mrf.mxu0  ;;  %v11290_v46 = vld [vmem:[#allocation3 + $0x28] sm:$0x3]  ;;  %v11293_v6 = vadd.f32 %v13492_v62, %v2598_v21  ;;  %v11296_v16 = vadd.f32 %v11062_v41, %v2597_v28  ;;  %v11299_v22 = vadd.f32 %v11072_v19, %v2600_v59 }
 0x20c   : > { %v3489_v0 = vmax.f32 %v3457_v52, 0.0  ;;  %v3460_v32 = vadd.f32 %v11209_v11, %v3421_v1  ;;  %v3420_v20 = vmul.f32 %v11187_v53, %v3381_v45  ;;  %v3384_v8 = vadd.f32 %v8480_v30, %v3116_v34 }
 0x20d   : > { %3522 = vst.msk [vmem:[#allocation3 + $0x51] sm:$0xff] %vm346_vm0, %v3490_v24  ;;  %v3115_v23 = vadd.f32 %v2988_v10, %v11196_v15  ;;  %v8433_v60 = vpop.f32.mrf.mxu1  ;;  %v11303_v33 = vld [vmem:[#allocation3 + $0x18] sm:$0xff]  ;;  %v11305_v43 = vld [vmem:[#allocation3 + $0x20] sm:$0xff]  ;;  %v3266_v19 = vpop.f32.mrf.mxu0  ;;  %v3660_v36 = vrot.slane %v11290_v46, 1 }
 0x20e   : > { %3521 = vst.msk [vmem:[#allocation3 + $0x49] sm:$0xff] %vm346_vm0, %v3489_v0  ;;  %v3492_v30 = vmax.f32 %v3460_v32, 0.0  ;;  %v3459_v13 = vadd.f32 %v11209_v11, %v3420_v20  ;;  %v3423_v41 = vmul.f32 %v11187_v53, %v3384_v8  ;;  %v3118_v21 = vadd.f32 %v8433_v60, %v11199_v42  ;;  %8569 = vmatprep.mubr.msk.f32.mxu0 %vm346_vm0, %v11303_v33 }
 0x20f   : > { %v3383_v28 = vadd.f32 %v3256_v31, %v3115_v23  ;;  %v3657_v15 = vrot.slane %v11303_v33, 1  ;;  %v2998_v63 = vpop.f32.mrf.mxu1  ;;  %8570 = vmatmul.mubr.msk.f32.gmra.mxu0 %vm346_vm0, %v11305_v43  ;;  %v3658_v59 = vrot.slane %v11305_v43, 1  ;;  %v8486_v45 = vpop.f32.mrf.mxu0  ;;  %v11321_v34 = vld [vmem:[#allocation3 + $0x40] sm:$0x3]  ;;  %v2599_v31 = vadd.f32 %v11096_v3, %v11147_v12 }
 0x210   : > { %3524 = vst.msk [vmem:[#allocation3 + $0x69] sm:$0xff] %vm346_vm0, %v3492_v30  ;;  %v3491_v35 = vmax.f32 %v3459_v13, 0.0  ;;  %v3462_v42 = vadd.f32 %v11209_v11, %v3423_v41  ;;  %v3386_v52 = vadd.f32 %v8483_v58, %v3118_v21  ;;  %v3117_v1 = vadd.f32 %v2998_v63, %v11202_v26 }
 0x211   : > { %v3422_v17 = vmul.f32 %v11187_v53, %v3383_v28  ;;  %v8436_v38 = vpop.f32.mrf.mxu1  ;;  %v11327_v47 = vsel %vm738_vm3, %v3657_v15, %v3658_v59  ;;  %v11330_v24 = vsel %vm738_vm3, %v3658_v59, %v3660_v36  ;;  %v11332_v10 = vld [vmem:[#allocation3 + $0x30] sm:$0xff]  ;;  %v11334_v0 = vld [vmem:[#allocation3 + $0x38] sm:$0xff]  ;;  %v3276_v12 = vpop.f32.mrf.mxu0  ;;  %v3665_v23 = vrot.slane %v11321_v34, 1 }
 0x212   : > { %3523 = vst.msk [vmem:[#allocation3 + $0x61] sm:$0xff] %vm346_vm0, %v3491_v35  ;;  %v3494_v26 = vmax.f32 %v3462_v42, 0.0  ;;  %v3425_v32 = vmul.f32 %v11187_v53, %v3386_v52  ;;  %v3385_v20 = vadd.f32 %v3266_v19, %v3117_v1  ;;  %v3120_v3 = vadd.f32 %v8436_v38, %v11212_v14  ;;  %8519 = vmatprep.mubr.msk.f32.mxu1 %vm346_vm0, %v11327_v47 }
 0x213   : > { %8572 = vmatprep.mubr.msk.f32.mxu0 %vm346_vm0, %v11332_v10  ;;  %v3461_v8 = vadd.f32 %v11209_v11, %v3422_v17  ;;  %8520 = vmatmul.mubr.msk.f32.gmra.mxu1 %vm346_vm0, %v11330_v24  ;;  %v3008_v58 = vpop.f32.mrf.mxu1  ;;  %v3662_v62 = vrot.slane %v11332_v10, 1  ;;  %v3663_v14 = vrot.slane %v11334_v0, 1  ;;  %v8489_v21 = vpop.f32.mrf.mxu0  ;;  %v11358_v28 = vadd.f32 %v11087_v9, %v2599_v31 }
 0x214   : > { %8573 = vmatmul.mubr.msk.f32.gmra.mxu0 %vm346_vm0, %v11334_v0  ;;  %3526 = vst.msk [vmem:[#allocation3 + $0x81] sm:$0xff] %vm346_vm0, %v3494_v26  ;;  %v3464_v60 = vadd.f32 %v11209_v11, %v3425_v32  ;;  %v3424_v30 = vmul.f32 %v11187_v53, %v3385_v20  ;;  %v3388_v13 = vadd.f32 %v8486_v45, %v3120_v3  ;;  %v11355_v19 = vld [vmem:[#allocation3 + $0x58] sm:$0x3] }
 0x215   : > { %v3119_v41 = vadd.f32 %v3008_v58, %v11216_v51  ;;  %v3493_v15 = vmax.f32 %v3461_v8, 0.0  ;;  %v8439_v63 = vpop.f32.mrf.mxu1  ;;  %v11361_v59 = vsel %vm738_vm3, %v3662_v62, %v3663_v14  ;;  %v11364_v36 = vsel %vm738_vm3, %v3663_v14, %v3665_v23  ;;  %v11366_v35 = vld [vmem:[#allocation3 + $0x48] sm:$0xff]  ;;  %v11368_v42 = vld [vmem:[#allocation3 + $0x50] sm:$0xff]  ;;  %v3286_v9 = vpop.f32.mrf.mxu0  ;;  %v13493_v62 = vld [vmem:[#allocation54_spill] sm:$0xff] }
 0x216   : > { %v3496_v52 = vmax.f32 %v3464_v60, 0.0  ;;  %v3463_v51 = vadd.f32 %v11209_v11, %v3424_v30  ;;  %v3427_v1 = vmul.f32 %v11187_v53, %v3388_v13  ;;  %8522 = vmatprep.mubr.msk.f32.mxu1 %vm346_vm0, %v11361_v59  ;;  %8575 = vmatprep.mubr.msk.f32.mxu0 %vm346_vm0, %v11366_v35  ;;  %v3122_v31 = vadd.f32 %v8439_v63, %v11225_v5 }
 0x217   : > { %v3387_v45 = vadd.f32 %v3276_v12, %v3119_v41  ;;  %3525 = vst.msk [vmem:[#allocation3 + $0x79] sm:$0xff] %vm346_vm0, %v3493_v15  ;;  %8523 = vmatmul.mubr.msk.f32.gmra.mxu1 %vm346_vm0, %v11364_v36  ;;  %v3018_v17 = vpop.f32.mrf.mxu1  ;;  %v3667_v38 = vrot.slane %v11366_v35, 1  ;;  %v3668_v26 = vrot.slane %v11368_v42, 1  ;;  %v3670_v32 = vrot.slane %v11355_v19, 1  ;;  %v8492_v8 = vpop.f32.mrf.mxu0  ;;  %v11389_v58 = vld [vmem:[#allocation3 + $0x70] sm:$0x3] }
 0x218   : > { %8576 = vmatmul.mubr.msk.f32.gmra.mxu0 %vm346_vm0, %v11368_v42  ;;  %3528 = vst.msk [vmem:[#allocation3 + $0x99] sm:$0xff] %vm346_vm0, %v3496_v52  ;;  %v3495_v20 = vmax.f32 %v3463_v51, 0.0  ;;  %v3466_v3 = vadd.f32 %v11209_v11, %v3427_v1  ;;  %v3121_v12 = vadd.f32 %v3018_v17, %v11236_v44  ;;  %v2602_v14 = vadd.f32 %v11110_v55, %v13493_v62 }
 0x219   : > { %v3426_v5 = vmul.f32 %v11187_v53, %v3387_v45  ;;  %v3390_v23 = vadd.f32 %v8489_v21, %v3122_v31  ;;  %v8442_v60 = vpop.f32.mrf.mxu1  ;;  %v11394_v30 = vsel %vm738_vm3, %v3667_v38, %v3668_v26  ;;  %v11397_v13 = vsel %vm738_vm3, %v3668_v26, %v3670_v32  ;;  %v11399_v41 = vld [vmem:[#allocation3 + $0x60] sm:$0xff]  ;;  %v11401_v15 = vld [vmem:[#allocation3 + $0x68] sm:$0xff]  ;;  %v3296_v21 = vpop.f32.mrf.mxu0 }
 0x21a   : > { %3527 = vst.msk [vmem:[#allocation3 + $0x91] sm:$0xff] %vm346_vm0, %v3495_v20  ;;  %v3498_v44 = vmax.f32 %v3466_v3, 0.0  ;;  %v3389_v52 = vadd.f32 %v3286_v9, %v3121_v12  ;;  %v3124_v55 = vadd.f32 %v8442_v60, %v11239_v18  ;;  %8525 = vmatprep.mubr.msk.f32.mxu1 %vm346_vm0, %v11394_v30  ;;  %8578 = vmatprep.mubr.msk.f32.mxu0 %vm346_vm0, %v11399_v41  ;;  %v3672_v45 = vrot.slane %v11399_v41, 1 }
 0x21b   : > { %v3465_v63 = vadd.f32 %v11209_v11, %v3426_v5  ;;  %v3429_v51 = vmul.f32 %v11187_v53, %v3390_v23  ;;  %8526 = vmatmul.mubr.msk.f32.gmra.mxu1 %vm346_vm0, %v11397_v13  ;;  %v3028_v1 = vpop.f32.mrf.mxu1  ;;  %v3673_v18 = vrot.slane %v11401_v15, 1  ;;  %v3675_v9 = vrot.slane %v11389_v58, 1  ;;  %v8495_v32 = vpop.f32.mrf.mxu0  ;;  %v11421_v20 = vld [vmem:[#allocation3 + $0x88] sm:$0x3] }
 0x21c   : > { %8579 = vmatmul.mubr.msk.f32.gmra.mxu0 %vm346_vm0, %v11401_v15  ;;  %3530 = vst.msk [vmem:[#allocation3 + $0xb1] sm:$0xff] %vm346_vm0, %v3498_v44  ;;  %v3428_v17 = vmul.f32 %v11187_v53, %v3389_v52  ;;  %v3392_v38 = vadd.f32 %v8492_v8, %v3124_v55  ;;  %v3123_v26 = vadd.f32 %v3028_v1, %v11242_v40 }
 0x21d   : > { %v3497_v31 = vmax.f32 %v3465_v63, 0.0  ;;  %v11424_v3 = vadd.f32 %v11104_v57, %v2602_v14  ;;  %v3468_v5 = vadd.f32 %v11209_v11, %v3429_v51  ;;  %v8445_v12 = vpop.f32.mrf.mxu1  ;;  %v11428_v62 = vsel %vm738_vm3, %v3672_v45, %v3673_v18  ;;  %v3306_v14 = vpop.f32.mrf.mxu0 }
 0x21e   : > { %v11431_v23 = vsel %vm738_vm3, %v3673_v18, %v3675_v9  ;;  %v3467_v8 = vadd.f32 %v11209_v11, %v3428_v17  ;;  %v3431_v40 = vmul.f32 %v11187_v53, %v3392_v38  ;;  %v3391_v60 = vadd.f32 %v3296_v21, %v3123_v26  ;;  %8528 = vmatprep.mubr.msk.f32.mxu1 %vm346_vm0, %v11428_v62  ;;  %v11439_v57 = vld [vmem:[#allocation3 + $0x78] sm:$0xff]  ;;  %v11441_v63 = vld [vmem:[#allocation3 + $0x80] sm:$0xff] }
 0x21f   : > { %13494 = vst [vmem:[#allocation22_spill] sm:$0xff] %v11431_v23  ;;  %3529 = vst.msk [vmem:[#allocation3 + $0xa9] sm:$0xff] %vm346_vm0, %v3497_v31  ;;  %v3126_v44 = vadd.f32 %v8445_v12, %v11248_v56  ;;  %v3500_v52 = vmax.f32 %v3468_v5, 0.0  ;;  %8529 = vmatmul.mubr.msk.f32.gmra.mxu1 %vm346_vm0, %v11431_v23  ;;  %8581 = vmatprep.mubr.msk.f32.mxu0 %vm346_vm0, %v11439_v57  ;;  %v3038_v55 = vpop.f32.mrf.mxu1  ;;  %v3677_v21 = vrot.slane %v11439_v57, 1  ;;  %v3678_v56 = vrot.slane %v11441_v63, 1  ;;  %v8498_v31 = vpop.f32.mrf.mxu0 }
 0x220   : > { %v3680_v51 = vrot.slane %v11421_v20, 1  ;;  %v3499_v1 = vmax.f32 %v3467_v8, 0.0  ;;  %v3470_v45 = vadd.f32 %v11209_v11, %v3431_v40  ;;  %v3430_v18 = vmul.f32 %v11187_v53, %v3391_v60  ;;  %8582 = vmatmul.mubr.msk.f32.gmra.mxu0 %vm346_vm0, %v11441_v63  ;;  %v11454_v17 = vld [vmem:[#allocation3 + $0xa0] sm:$0x3] }
 0x221   : > { %v3394_v9 = vadd.f32 %v8495_v32, %v3126_v44  ;;  %v2601_v38 = vadd.f32 %v11122_v48, %v11155_v39  ;;  %3532 = vst.msk [vmem:[#allocation3 + $0xc9] sm:$0xff] %vm346_vm0, %v3500_v52  ;;  %v3125_v26 = vadd.f32 %v3038_v55, %v11251_v61  ;;  %v8448_v5 = vpop.f32.mrf.mxu1  ;;  %v11461_v12 = vsel %vm738_vm3, %v3677_v21, %v3678_v56  ;;  %v11466_v32 = vld [vmem:[#allocation3 + $0x90] sm:$0xff]  ;;  %v11468_v40 = vld [vmem:[#allocation3 + $0x98] sm:$0xff]  ;;  %v3316_v44 = vpop.f32.mrf.mxu0 }
 0x222   : > { %13495 = vst [vmem:[#allocation27_spill] sm:$0xff] %v11461_v12  ;;  %v11464_v8 = vsel %vm738_vm3, %v3678_v56, %v3680_v51  ;;  %3531 = vst.msk [vmem:[#allocation3 + $0xc1] sm:$0xff] %vm346_vm0, %v3499_v1  ;;  %v3502_v60 = vmax.f32 %v3470_v45, 0.0  ;;  %v3469_v48 = vadd.f32 %v11209_v11, %v3430_v18  ;;  %v3128_v61 = vadd.f32 %v8448_v5, %v11254_v2 }
 0x223   : > { %13496 = vst [vmem:[#allocation29_spill] sm:$0xff] %v11464_v8  ;;  %v3433_v39 = vmul.f32 %v11187_v53, %v3394_v9  ;;  %8531 = vmatprep.mubr.msk.f32.mxu1 %vm346_vm0, %v11461_v12  ;;  %8584 = vmatprep.mubr.msk.f32.mxu0 %vm346_vm0, %v11466_v32  ;;  %v3393_v52 = vadd.f32 %v3306_v14, %v3125_v26  ;;  %v3048_v55 = vpop.f32.mrf.mxu1  ;;  %v3682_v21 = vrot.slane %v11466_v32, 1  ;;  %v3683_v56 = vrot.slane %v11468_v40, 1  ;;  %v8501_v14 = vpop.f32.mrf.mxu0  ;;  %v11488_v9 = vld [vmem:[#allocation3 + $0xb8] sm:$0x3] }
 0x224   : > { %8532 = vmatmul.mubr.msk.f32.gmra.mxu1 %vm346_vm0, %v11464_v8  ;;  %v3685_v51 = vrot.slane %v11454_v17, 1  ;;  %3534 = vst.msk [vmem:[#allocation3 + $0xe1] sm:$0xff] %vm346_vm0, %v3502_v60  ;;  %v3501_v2 = vmax.f32 %v3469_v48, 0.0  ;;  %v3396_v45 = vadd.f32 %v8498_v31, %v3128_v61  ;;  %v3127_v18 = vadd.f32 %v3048_v55, %v11280_v25  ;;  %8585 = vmatmul.mubr.msk.f32.gmra.mxu0 %vm346_vm0, %v11468_v40 }
 0x225   : > { %v3472_v1 = vadd.f32 %v11209_v11, %v3433_v39  ;;  %v11491_v26 = vadd.f32 %v11116_v50, %v2601_v38  ;;  %v3432_v5 = vmul.f32 %v11187_v53, %v3393_v52  ;;  %v8451_v8 = vpop.f32.mrf.mxu1  ;;  %v11495_v60 = vsel %vm738_vm3, %v3682_v21, %v3683_v56  ;;  %v3326_v52 = vpop.f32.mrf.mxu0 }
 0x226   : > { %13497 = vst [vmem:[#allocation31_spill] sm:$0xff] %v11495_v60  ;;  %v11498_v48 = vsel %vm738_vm3, %v3683_v56, %v3685_v51  ;;  %v11500_v31 = vld [vmem:[#allocation3 + $0xa8] sm:$0xff]  ;;  %v11502_v25 = vld [vmem:[#allocation3 + $0xb0] sm:$0xff]  ;;  %3533 = vst.msk [vmem:[#allocation3 + $0xd9] sm:$0xff] %vm346_vm0, %v3501_v2  ;;  %v3435_v61 = vmul.f32 %v11187_v53, %v3396_v45  ;;  %v3395_v50 = vadd.f32 %v3316_v44, %v3127_v18  ;;  %8534 = vmatprep.mubr.msk.f32.mxu1 %vm346_vm0, %v11495_v60 }
 0x227   : > { %13498 = vst [vmem:[#allocation63_spill] sm:$0xff] %v11498_v48  ;;  %v3504_v39 = vmax.f32 %v3472_v1, 0.0  ;;  %v3130_v38 = vadd.f32 %v8451_v8, %v11283_v49  ;;  %8587 = vmatprep.mubr.msk.f32.mxu0 %vm346_vm0, %v11500_v31  ;;  %v3471_v55 = vadd.f32 %v11209_v11, %v3432_v5  ;;  %v3058_v21 = vpop.f32.mrf.mxu1  ;;  %v3687_v56 = vrot.slane %v11500_v31, 1  ;;  %v8504_v45 = vpop.f32.mrf.mxu0  ;;  %v13499_v5 = vld [vmem:[#allocation58_spill] sm:$0xff] }
 0x228   : > { %8535 = vmatmul.mubr.msk.f32.gmra.mxu1 %vm346_vm0, %v11498_v48  ;;  %v3688_v51 = vrot.slane %v11502_v25, 1  ;;  %v3690_v44 = vrot.slane %v11488_v9, 1  ;;  %v3474_v49 = vadd.f32 %v11209_v11, %v3435_v61  ;;  %v3434_v8 = vmul.f32 %v11187_v53, %v3395_v50  ;;  %8588 = vmatmul.mubr.msk.f32.gmra.mxu0 %vm346_vm0, %v11502_v25  ;;  %v11523_v18 = vld [vmem:[#allocation3 + $0xd0] sm:$0x3] }
 0x229   : > { %3536 = vst.msk [vmem:[#allocation3 + $0xf9] sm:$0xff] %vm346_vm0, %v3504_v39  ;;  %v3398_v2 = vadd.f32 %v8501_v14, %v3130_v38  ;;  %v3129_v1 = vadd.f32 %v3058_v21, %v11286_v27  ;;  %v2604_v48 = vadd.f32 %v11141_v37, %v13499_v5  ;;  %v3503_v60 = vmax.f32 %v3471_v55, 0.0  ;;  %v8454_v12 = vpop.f32.mrf.mxu1  ;;  %v11533_v14 = vld [vmem:[#allocation3 + $0xc0] sm:$0xff]  ;;  %v11535_v27 = vld [vmem:[#allocation3 + $0xc8] sm:$0xff]  ;;  %v3336_v37 = vpop.f32.mrf.mxu0 }
 0x22a   : > { %v11528_v39 = vsel %vm738_vm3, %v3687_v56, %v3688_v51  ;;  %v11531_v61 = vsel %vm738_vm3, %v3688_v51, %v3690_v44  ;;  %v3506_v50 = vmax.f32 %v3474_v49, 0.0  ;;  %v3473_v38 = vadd.f32 %v11209_v11, %v3434_v8  ;;  %8590 = vmatprep.mubr.msk.f32.mxu0 %vm346_vm0, %v11533_v14 }
 0x22b   : > { %13500 = vst [vmem:[#allocation69_spill] sm:$0xff] %v11528_v39  ;;  %13501 = vst [vmem:[#allocation71_spill] sm:$0xff] %v11531_v61  ;;  %v3437_v21 = vmul.f32 %v11187_v53, %v3398_v2  ;;  %v3397_v23 = vadd.f32 %v3326_v52, %v3129_v1  ;;  %8537 = vmatprep.mubr.msk.f32.mxu1 %vm346_vm0, %v11528_v39  ;;  %v3132_v55 = vadd.f32 %v8454_v12, %v11293_v6  ;;  %v3068_v56 = vpop.f32.mrf.mxu1  ;;  %v8507_v6 = vpop.f32.mrf.mxu0  ;;  %v11556_v12 = vld [vmem:[#allocation3 + $0xe8] sm:$0x3] }
 0x22c   : > { %3535 = vst.msk [vmem:[#allocation3 + $0xf1] sm:$0xff] %vm346_vm0, %v3503_v60  ;;  %8538 = vmatmul.mubr.msk.f32.gmra.mxu1 %vm346_vm0, %v11531_v61  ;;  %v3692_v51 = vrot.slane %v11533_v14, 1  ;;  %v3693_v44 = vrot.slane %v11535_v27, 1  ;;  %v3695_v52 = vrot.slane %v11523_v18, 1  ;;  %3538 = vst.msk [vmem:[#allocation3 + $0x111] sm:$0xff] %vm346_vm0, %v3506_v50  ;;  %v3505_v49 = vmax.f32 %v3473_v38, 0.0  ;;  %8591 = vmatmul.mubr.msk.f32.gmra.mxu0 %vm346_vm0, %v11535_v27 }
 0x22d   : > { %v3476_v8 = vadd.f32 %v11209_v11, %v3437_v21  ;;  %v3436_v2 = vmul.f32 %v11187_v53, %v3397_v23  ;;  %v3131_v60 = vadd.f32 %v3068_v56, %v11296_v16  ;;  %v11559_v1 = vadd.f32 %v11129_v7, %v2604_v48  ;;  %v8457_v61 = vpop.f32.mrf.mxu1  ;;  %v11567_v23 = vld [vmem:[#allocation3 + $0xd8] sm:$0xff]  ;;  %v11569_v16 = vld [vmem:[#allocation3 + $0xe0] sm:$0xff]  ;;  %v3346_v48 = vpop.f32.mrf.mxu0 }
 0x22e   : > { %v3400_v5 = vadd.f32 %v8504_v45, %v3132_v55  ;;  %v11562_v50 = vsel %vm738_vm3, %v3692_v51, %v3693_v44  ;;  %v11565_v38 = vsel %vm738_vm3, %v3693_v44, %v3695_v52  ;;  %3537 = vst.msk [vmem:[#allocation3 + $0x109] sm:$0xff] %vm346_vm0, %v3505_v49  ;;  %v3134_v7 = vadd.f32 %v8457_v61, %v11299_v22 }
 0x22f   : > { %13502 = vst [vmem:[#allocation62_spill] sm:$0xff] %v11565_v38  ;;  %v3508_v21 = vmax.f32 %v3476_v8, 0.0  ;;  %v3475_v56 = vadd.f32 %v11209_v11, %v3436_v2  ;;  %v3399_v39 = vadd.f32 %v3336_v37, %v3131_v60  ;;  %8540 = vmatprep.mubr.msk.f32.mxu1 %vm346_vm0, %v11562_v50  ;;  %8593 = vmatprep.mubr.msk.f32.mxu0 %vm346_vm0, %v11567_v23  ;;  %v3078_v55 = vpop.f32.mrf.mxu1  ;;  %v3697_v51 = vrot.slane %v11567_v23, 1  ;;  %v8510_v8 = vpop.f32.mrf.mxu0 }
 0x230   : > { %v3439_v45 = vmul.f32 %v11187_v53, %v3400_v5  ;;  %8541 = vmatmul.mubr.msk.f32.gmra.mxu1 %vm346_vm0, %v11565_v38  ;;  %v3698_v44 = vrot.slane %v11569_v16, 1  ;;  %v3700_v37 = vrot.slane %v11556_v12, 1  ;;  %v3402_v52 = vadd.f32 %v8507_v6, %v3134_v7  ;;  %8594 = vmatmul.mubr.msk.f32.gmra.mxu0 %vm346_vm0, %v11569_v16  ;;  %v11589_v2 = vld [vmem:[#allocation3 + $0x100] sm:$0x3] }
 0x231   : > { %3540 = vst.msk [vmem:[#allocation3 + $0x129] sm:$0xff] %vm346_vm0, %v3508_v21  ;;  %v3507_v22 = vmax.f32 %v3475_v56, 0.0  ;;  %v3438_v61 = vmul.f32 %v11187_v53, %v3399_v39  ;;  %v3133_v49 = vadd.f32 %v3078_v55, %v11358_v28  ;;  %v2603_v60 = vadd.f32 %v11162_v54, %v11165_v29  ;;  %v8460_v38 = vpop.f32.mrf.mxu1  ;;  %v3356_v29 = vpop.f32.mrf.mxu0 }
 0x232   : > { %v3478_v5 = vadd.f32 %v11209_v11, %v3439_v45  ;;  %v11595_v21 = vsel %vm738_vm3, %v3697_v51, %v3698_v44  ;;  %v11598_v39 = vsel %vm738_vm3, %v3698_v44, %v3700_v37  ;;  %v3441_v6 = vmul.f32 %v11187_v53, %v3402_v52 }
 0x233   : > { %13503 = vst [vmem:[#allocation19_spill] sm:$0xff] %v11595_v21  ;;  %13504 = vst [vmem:[#allocation26_spill] sm:$0xff] %v11598_v39  ;;  %v3477_v28 = vadd.f32 %v11209_v11, %v3438_v61  ;;  %v3401_v56 = vadd.f32 %v3346_v48, %v3133_v49  ;;  %v3136_v7 = vadd.f32 %v8460_v38, %v11424_v3  ;;  %8543 = vmatprep.mubr.msk.f32.mxu1 %vm346_vm0, %v11595_v21  ;;  %v11606_v54 = vld [vmem:[#allocation3 + $0xf0] sm:$0xff]  ;;  %v11608_v45 = vld [vmem:[#allocation3 + $0xf8] sm:$0xff]  ;;  %v3088_v51 = vpop.f32.mrf.mxu1  ;;  %v8513_v52 = vpop.f32.mrf.mxu0 }
 0x234   : > { %3539 = vst.msk [vmem:[#allocation3 + $0x121] sm:$0xff] %vm346_vm0, %v3507_v22  ;;  %v3510_v55 = vmax.f32 %v3478_v5, 0.0  ;;  %8544 = vmatmul.mubr.msk.f32.gmra.mxu1 %vm346_vm0, %v11598_v39  ;;  %8596 = vmatprep.mubr.msk.f32.mxu0 %vm346_vm0, %v11606_v54  ;;  %v3702_v48 = vrot.slane %v11606_v54, 1  ;;  %v3703_v3 = vrot.slane %v11608_v45, 1  ;;  %v3705_v38 = vrot.slane %v11589_v2, 1 }
 0x235   : > { %v3509_v44 = vmax.f32 %v3477_v28, 0.0  ;;  %v3480_v37 = vadd.f32 %v11209_v11, %v3441_v6  ;;  %v3440_v22 = vmul.f32 %v11187_v53, %v3401_v56  ;;  %v3404_v61 = vadd.f32 %v8510_v8, %v3136_v7  ;;  %8597 = vmatmul.mubr.msk.f32.gmra.mxu0 %vm346_vm0, %v11608_v45  ;;  %v11621_v49 = vld [vmem:[#allocation3 + $0x118] sm:$0x3]  ;;  %v8463_v21 = vpop.f32.mrf.mxu1  ;;  %v11632_v8 = vld [vmem:[#allocation3 + $0x108] sm:$0xff]  ;;  %v11634_v56 = vld [vmem:[#allocation3 + $0x110] sm:$0xff] }
 0x236   : > { %v2868_v5 = vadd.f32 %v11152_v4, %v2603_v60  ;;  %3542 = vst.msk [vmem:[#allocation3 + $0x141] sm:$0xff] %vm346_vm0, %v3510_v55  ;;  %v3135_v39 = vadd.f32 %v3088_v51, %v11491_v26  ;;  %v11627_v28 = vsel %vm738_vm3, %v3702_v48, %v3703_v3  ;;  %v11630_v6 = vsel %vm738_vm3, %v3703_v3, %v3705_v38  ;;  %v3366_v48 = vpop.f32.mrf.mxu0 }
 0x237   : > { %13505 = vst [vmem:[#allocation36_spill] sm:$0xff] %v11627_v28  ;;  %13506 = vst [vmem:[#allocation30_spill] sm:$0xff] %v11630_v6  ;;  %v3512_v7 = vmax.f32 %v3480_v37, 0.0  ;;  %v3479_v4 = vadd.f32 %v11209_v11, %v3440_v22  ;;  %v3443_v60 = vmul.f32 %v11187_v53, %v3404_v61  ;;  %v3138_v26 = vadd.f32 %v8463_v21, %v11559_v1  ;;  %v3098_v51 = vpop.f32.mrf.mxu1 }
 0x238   : > { %3541 = vst.msk [vmem:[#allocation3 + $0x139] sm:$0xff] %vm346_vm0, %v3509_v44  ;;  %8546 = vmatprep.mubr.msk.f32.mxu1 %vm346_vm0, %v11627_v28  ;;  %8599 = vmatprep.mubr.msk.f32.mxu0 %vm346_vm0, %v11632_v8  ;;  %v3403_v55 = vadd.f32 %v3356_v29, %v3135_v39  ;;  %v3707_v3 = vrot.slane %v11632_v8, 1  ;;  %v3708_v38 = vrot.slane %v11634_v56, 1  ;;  %v3710_v44 = vrot.slane %v11621_v49, 1  ;;  %v11653_v39 = vld [vmem:[#allocation3 + $0x130] sm:$0x3] }
 0x239   : > { %8547 = vmatmul.mubr.msk.f32.gmra.mxu1 %vm346_vm0, %v11630_v6  ;;  %3544 = vst.msk [vmem:[#allocation3 + $0x159] sm:$0xff] %vm346_vm0, %v3512_v7  ;;  %v3511_v1 = vmax.f32 %v3479_v4, 0.0  ;;  %v3482_v21 = vadd.f32 %v11209_v11, %v3443_v60  ;;  %v3137_v37 = vadd.f32 %v3098_v51, %v2868_v5  ;;  %v3406_v22 = vadd.f32 %v8513_v52, %v3138_v26 }
 0x23a   : > { %8600 = vmatmul.mubr.msk.f32.gmra.mxu0 %vm346_vm0, %v11634_v56  ;;  %v3442_v29 = vmul.f32 %v11187_v53, %v3403_v55  ;;  %v11657_v61 = vsel %vm738_vm3, %v3707_v3, %v3708_v38  ;;  %v11660_v6 = vsel %vm738_vm3, %v3708_v38, %v3710_v44  ;;  %v3715_v51 = vrot.slane %v11653_v39, 1 }
 0x23b   : > { %13507 = vst [vmem:[#allocation37_spill] sm:$0xff] %v11657_v61  ;;  %13508 = vst [vmem:[#allocation72_spill] sm:$0xff] %v11660_v6  ;;  %v11662_v28 = vld [vmem:[#allocation3 + $0x120] sm:$0xff]  ;;  %v11664_v7 = vld [vmem:[#allocation3 + $0x128] sm:$0xff]  ;;  %v3514_v52 = vmax.f32 %v3482_v21, 0.0  ;;  %v3445_v5 = vmul.f32 %v11187_v53, %v3406_v22  ;;  %v3405_v4 = vadd.f32 %v3366_v48, %v3137_v37  ;;  %8549 = vmatprep.mubr.msk.f32.mxu1 %vm346_vm0, %v11657_v61  ;;  %v4317_v61 = vrot.slane %v11303_v33, 2 }
 0x23c   : > { %3543 = vst.msk [vmem:[#allocation3 + $0x151] sm:$0xff] %vm346_vm0, %v3511_v1  ;;  %8602 = vmatprep.mubr.msk.f32.mxu0 %vm346_vm0, %v11662_v28  ;;  %v3712_v60 = vrot.slane %v11662_v28, 1  ;;  %v3481_v26 = vadd.f32 %v11209_v11, %v3442_v29  ;;  %v3713_v55 = vrot.slane %v11664_v7, 1 }
 0x23d   : > { %8550 = vmatmul.mubr.msk.f32.gmra.mxu1 %vm346_vm0, %v11660_v6  ;;  %3546 = vst.msk [vmem:[#allocation3 + $0x171] sm:$0xff] %vm346_vm0, %v3514_v52  ;;  %v3484_v48 = vadd.f32 %v11209_v11, %v3445_v5  ;;  %v3444_v3 = vmul.f32 %v11187_v53, %v3405_v4  ;;  %v11683_v38 = vld [vmem:[#allocation3 + $0x148] sm:$0x3] }
 0x23e   : > { %8603 = vmatmul.mubr.msk.f32.gmra.mxu0 %vm346_vm0, %v11664_v7  ;;  %v3513_v44 = vmax.f32 %v3481_v26, 0.0  ;;  %v11686_v1 = vsel %vm738_vm3, %v3712_v60, %v3713_v55  ;;  %v11689_v21 = vsel %vm738_vm3, %v3713_v55, %v3715_v51  ;;  %v3720_v29 = vrot.slane %v11683_v38, 1 }
 0x23f   : > { %13509 = vst [vmem:[#allocation68_spill] sm:$0xff] %v11686_v1  ;;  %13510 = vst [vmem:[#allocation65_spill] sm:$0xff] %v11689_v21  ;;  %v11691_v37 = vld [vmem:[#allocation3 + $0x138] sm:$0xff]  ;;  %v11693_v22 = vld [vmem:[#allocation3 + $0x140] sm:$0xff]  ;;  %v3516_v52 = vmax.f32 %v3484_v48, 0.0  ;;  %v3483_v53 = vadd.f32 %v11209_v11, %v3444_v3  ;;  %8552 = vmatprep.mubr.msk.f32.mxu1 %vm346_vm0, %v11686_v1 }
 0x240   : > { %13511 = vst [vmem:[#allocation50_spill] sm:$0xff] %v11691_v37  ;;  %8605 = vmatprep.mubr.msk.f32.mxu0 %vm346_vm0, %v11691_v37  ;;  %v3717_v5 = vrot.slane %v11691_v37, 1  ;;  %v3718_v4 = vrot.slane %v11693_v22, 1  ;;  %3545 = vst.msk [vmem:[#allocation3 + $0x169] sm:$0xff] %vm346_vm0, %v3513_v44  ;;  %v11706_v60 = vld [vmem:[#allocation3 + $0x160] sm:$0x3] }
 0x241   : > { %8553 = vmatmul.mubr.msk.f32.gmra.mxu1 %vm346_vm0, %v11689_v21  ;;  %3548 = vst.msk [vmem:[#allocation3 + $0x189] sm:$0xff] %vm346_vm0, %v3516_v52  ;;  %v3515_v11 = vmax.f32 %v3483_v53, 0.0  ;;  %v3725_v52 = vrot.slane %v11706_v60, 1 }
 0x242   : > { %8606 = vmatmul.mubr.msk.f32.gmra.mxu0 %vm346_vm0, %v11693_v22  ;;  %v11712_v26 = vsel %vm738_vm3, %v3717_v5, %v3718_v4  ;;  %v11715_v55 = vsel %vm738_vm3, %v3718_v4, %v3720_v29  ;;  %v9027_v4 = vld [vmem:[#allocation3] sm:$0xff] }
 0x243   : > { %13512 = vst [vmem:[#allocation40_spill] sm:$0xff] %v11712_v26  ;;  %13513 = vst [vmem:[#allocation73_spill] sm:$0xff] %v11715_v55  ;;  %8555 = vmatprep.mubr.msk.f32.mxu1 %vm346_vm0, %v11712_v26  ;;  %v11719_v51 = vld [vmem:[#allocation3 + $0x150] sm:$0xff]  ;;  %v11721_v48 = vld [vmem:[#allocation3 + $0x158] sm:$0xff] }
 0x244   : > { %13514 = vst [vmem:[#allocation75_spill] sm:$0xff] %v11719_v51  ;;  %3547 = vst.msk [vmem:[#allocation3 + $0x181] sm:$0xff] %vm346_vm0, %v3515_v11  ;;  %8608 = vmatprep.mubr.msk.f32.mxu0 %vm346_vm0, %v11719_v51  ;;  %v3722_v3 = vrot.slane %v11719_v51, 1  ;;  %v3723_v44 = vrot.slane %v11721_v48, 1  ;;  %v11739_v5 = vld [vmem:[#allocation3 + $0x178] sm:$0x3] }
 0x245   : > { %8556 = vmatmul.mubr.msk.f32.gmra.mxu1 %vm346_vm0, %v11715_v55  ;;  %v4312_v11 = vrot.slane %v9027_v4, 2  ;;  %v9028_v26 = vld [vmem:[#allocation3 + $0x8] sm:$0xff] }
 0x246   : > { %8609 = vmatmul.mubr.msk.f32.gmra.mxu0 %vm346_vm0, %v11721_v48  ;;  %v11734_v29 = vsel %vm738_vm3, %v3722_v3, %v3723_v44  ;;  %v11737_v53 = vsel %vm738_vm3, %v3723_v44, %v3725_v52  ;;  %v4313_v21 = vrot.slane %v9028_v26, 2  ;;  %v3730_v52 = vrot.slane %v11739_v5, 1  ;;  %v9029_v26 = vld [vmem:[#allocation3 + $0x10] sm:$0x3] }
 0x247   : > { %13515 = vst [vmem:[#allocation41_spill] sm:$0xff] %v11734_v29  ;;  %13516 = vst [vmem:[#allocation77_spill] sm:$0xff] %v11737_v53  ;;  %8558 = vmatprep.mubr.msk.f32.mxu1 %vm346_vm0, %v11734_v29  ;;  %v11743_v1 = vld [vmem:[#allocation3 + $0x168] sm:$0xff]  ;;  %v11745_v55 = vld [vmem:[#allocation3 + $0x170] sm:$0xff]  ;;  %v4315_v4 = vrot.slane %v9029_v26, 2  ;;  %v4318_v26 = vrot.slane %v11305_v43, 2 }
 0x248   : > { %13517 = vst [vmem:[#allocation55_spill] sm:$0xff] %v11745_v55  ;;  %8611 = vmatprep.mubr.msk.f32.mxu0 %vm346_vm0, %v11743_v1  ;;  %v3727_v3 = vrot.slane %v11743_v1, 1  ;;  %v3728_v44 = vrot.slane %v11745_v55, 1  ;;  %v4314_v6 = vsel %vm1399_vm4, %v4312_v11, %v4313_v21 }
 0x249   : > { %8559 = vmatmul.mubr.msk.f32.gmra.mxu1 %vm346_vm0, %v11737_v53  ;;  %v4316_v11 = vsel %vm1399_vm4, %v4313_v21, %v4315_v4  ;;  %v4323_v21 = vrot.slane %v11334_v0, 2  ;;  %v4320_v4 = vrot.slane %v11290_v46, 2 }
 0x24a   : > { %8612 = vmatmul.mubr.msk.f32.gmra.mxu0 %vm346_vm0, %v11745_v55  ;;  %v11759_v29 = vsel %vm738_vm3, %v3727_v3, %v3728_v44  ;;  %v11762_v53 = vsel %vm738_vm3, %v3728_v44, %v3730_v52  ;;  %v11774_v3 = vld [vmem:[%s13023_s6 + $0x38] sm:$0xff]  ;;  %v11788_v44 = vld [vmem:[%s13023_s6 + $0x30] sm:$0xff]  ;;  %v9031_v52 = vld [vmem:[%s13023_s6 + $0x20] sm:$0xff] }
 0x24b   : > { %8666 = vmatprep.mubr.msk.f32.mxu0 %vm346_vm0, %v11303_v33  ;;  %13518 = vst [vmem:[#allocation59_spill] sm:$0xff] %v11762_v53  ;;  %8561 = vmatprep.mubr.msk.f32.mxu1 %vm346_vm0, %v11759_v29  ;;  %v9030_v33 = vld [vmem:[%s13023_s6 + $0x28] sm:$0xff] }
 0x24d   : > { %8562 = vmatmul.mubr.msk.f32.gmra.mxu1 %vm346_vm0, %v11762_v53  ;;  %v4325_v53 = vrot.slane %v11321_v34, 2  ;;  %v4330_v34 = vrot.slane %v11355_v19, 2  ;;  %v4335_v19 = vrot.slane %v11389_v58, 2  ;;  %v4340_v58 = vrot.slane %v11421_v20, 2 }
 0x24e   : > { %8667 = vmatmul.mubr.msk.f32.vlgmr.msra.gmra.mxu0 %vm346_vm0, %v11305_v43  ;;  %8616 = vmatprep.mubr.msk.f32.mxu1 %vm346_vm0, %v4314_v6  ;;  %v11793_v43 = vsel %vm1399_vm4, %v4317_v61, %v4318_v26  ;;  %v4322_v6 = vrot.slane %v11332_v10, 2  ;;  %v8568_v61 = vpop.f32.mrf.mxu0  ;;  %v4345_v20 = vrot.slane %v11454_v17, 2  ;;  %v4350_v17 = vrot.slane %v11488_v9, 2 }
 0x24f   : > { %8669 = vmatprep.mubr.msk.f32.mxu0 %vm346_vm0, %v11332_v10  ;;  %8765 = vmatpush3.msra.mxu0 %v9030_v33  ;;  %v11809_v10 = vsel %vm1399_vm4, %v4318_v26, %v4320_v4  ;;  %v11828_v26 = vsel %vm1399_vm4, %v4323_v21, %v4325_v53  ;;  %v4333_v4 = vrot.slane %v11401_v15, 2  ;;  %v4337_v53 = vrot.slane %v11439_v57, 2 }
 0x250   : > { %8864 = vmatprep.subr.mxu0 %v11774_v3  ;;  %v11816_v46 = vsel %vm1399_vm4, %v4322_v6, %v4323_v21  ;;  %v4332_v6 = vrot.slane %v11399_v41, 2  ;;  %v4338_v21 = vrot.slane %v11441_v63, 2  ;;  %v4355_v9 = vrot.slane %v11523_v18, 2 }
 0x251   : > { %8617 = vmatmul.mubr.msk.f32.vlgmr.msra.gmra.mxu1 %vm346_vm0, %v4316_v11  ;;  %v8518_v11 = vpop.f32.mrf.mxu1  ;;  %v4360_v18 = vrot.slane %v11556_v12, 2  ;;  %v4365_v12 = vrot.slane %v11589_v2, 2  ;;  %v4370_v2 = vrot.slane %v11621_v49, 2  ;;  %v4375_v49 = vrot.slane %v11653_v39, 2 }
 0x252   : > { %8715 = vmatpush3.msra.mxu1 %v9031_v52  ;;  %8619 = vmatprep.mubr.msk.f32.mxu1 %vm346_vm0, %v11793_v43  ;;  %v11811_v33 = vadd.f32 %v8568_v61, %v8518_v11  ;;  %v4328_v52 = vrot.slane %v11368_v42, 2  ;;  %v4342_v61 = vrot.slane %v11466_v32, 2  ;;  %v4343_v11 = vrot.slane %v11468_v40, 2 }
 0x253   : > { %8670 = vmatmul.mubr.msk.f32.gmra.mxu0 %vm346_vm0, %v11334_v0  ;;  %8814 = vmatprep.subr.mxu1 %v11788_v44  ;;  %v4327_v0 = vrot.slane %v11366_v35, 2  ;;  %v4380_v39 = vrot.slane %v11683_v38, 2  ;;  %v4385_v38 = vrot.slane %v11706_v60, 2  ;;  %v12043_v60 = vld [vmem:[#allocation3 + $0x188] sm:$0xff] }
 0x254   : > { %8672 = vmatprep.mubr.msk.f32.mxu0 %vm346_vm0, %v11366_v35  ;;  %13519 = vst [vmem:[#allocation79_spill] sm:$0xff] %v11811_v33  ;;  %v4378_v33 = vrot.slane %v11693_v22, 2 }
 0x255   : > { %8620 = vmatmul.mubr.msk.f32.gmra.mxu1 %vm346_vm0, %v11809_v10  ;;  %v11833_v35 = vsel %vm1399_vm4, %v4327_v0, %v4328_v52  ;;  %v11884_v0 = vsel %vm1399_vm4, %v4342_v61, %v4343_v11  ;;  %v4357_v61 = vrot.slane %v11567_v23, 2 }
 0x256   : > { %8622 = vmatprep.mubr.msk.f32.mxu1 %vm346_vm0, %v11816_v46  ;;  %13522 = vst [vmem:[#allocation64_spill] sm:$0xff] %v11884_v0 }
 0x257   : > { %8673 = vmatmul.mubr.msk.f32.gmra.mxu0 %vm346_vm0, %v11368_v42  ;;  %v11845_v42 = vsel %vm1399_vm4, %v4328_v52, %v4330_v34  ;;  %v4347_v52 = vrot.slane %v11500_v31, 2  ;;  %v4352_v34 = vrot.slane %v11533_v14, 2 }
 0x258   : > { %8675 = vmatprep.mubr.msk.f32.mxu0 %vm346_vm0, %v11399_v41  ;;  %v11850_v41 = vsel %vm1399_vm4, %v4332_v6, %v4333_v4  ;;  %v4348_v6 = vrot.slane %v11502_v25, 2 }
 0x259   : > { %8623 = vmatmul.mubr.msk.f32.gmra.mxu1 %vm346_vm0, %v11828_v26 }
 0x25a   : > { %8625 = vmatprep.mubr.msk.f32.mxu1 %vm346_vm0, %v11833_v35 }
 0x25b   : > { %8676 = vmatmul.mubr.msk.f32.gmra.mxu0 %vm346_vm0, %v11401_v15  ;;  %v11862_v15 = vsel %vm1399_vm4, %v4333_v4, %v4335_v19  ;;  %v11901_v4 = vsel %vm1399_vm4, %v4347_v52, %v4348_v6 }
 0x25c   : > { %8678 = vmatprep.mubr.msk.f32.mxu0 %vm346_vm0, %v11439_v57  ;;  %v11867_v57 = vsel %vm1399_vm4, %v4337_v53, %v4338_v21  ;;  %13524 = vst [vmem:[#allocation53_spill] sm:$0xff] %v11901_v4  ;;  %v4353_v53 = vrot.slane %v11535_v27, 2 }
 0x25d   : > { %8626 = vmatmul.mubr.msk.f32.gmra.mxu1 %vm346_vm0, %v11845_v42  ;;  %13520 = vst [vmem:[#allocation52_spill] sm:$0xff] %v11867_v57 }
 0x25e   : > { %8628 = vmatprep.mubr.msk.f32.mxu1 %vm346_vm0, %v11850_v41  ;;  %v11918_v19 = vsel %vm1399_vm4, %v4352_v34, %v4353_v53 }
 0x25f   : > { %8679 = vmatmul.mubr.msk.f32.gmra.mxu0 %vm346_vm0, %v11441_v63  ;;  %v11879_v63 = vsel %vm1399_vm4, %v4338_v21, %v4340_v58  ;;  %v11913_v21 = vsel %vm1399_vm4, %v4348_v6, %v4350_v17  ;;  %13526 = vst [vmem:[#allocation87_spill] sm:$0xff] %v11918_v19  ;;  %v11930_v58 = vsel %vm1399_vm4, %v4353_v53, %v4355_v9  ;;  %v4362_v6 = vrot.slane %v11606_v54, 2 }
 0x260   : > { %8681 = vmatprep.mubr.msk.f32.mxu0 %vm346_vm0, %v11466_v32  ;;  %13521 = vst [vmem:[#allocation81_spill] sm:$0xff] %v11879_v63  ;;  %13525 = vst [vmem:[#allocation85_spill] sm:$0xff] %v11913_v21  ;;  %v4367_v17 = vrot.slane %v11632_v8, 2 }
 0x261   : > { %8629 = vmatmul.mubr.msk.f32.gmra.mxu1 %vm346_vm0, %v11862_v15  ;;  %13527 = vst [vmem:[#allocation60_spill] sm:$0xff] %v11930_v58 }
 0x262   : > { %8631 = vmatprep.mubr.msk.f32.mxu1 %vm346_vm0, %v11867_v57 }
 0x263   : > { %8682 = vmatmul.mubr.msk.f32.gmra.mxu0 %vm346_vm0, %v11468_v40  ;;  %v11896_v40 = vsel %vm1399_vm4, %v4343_v11, %v4345_v20  ;;  %v4358_v11 = vrot.slane %v11569_v16, 2  ;;  %v4363_v20 = vrot.slane %v11608_v45, 2 }
 0x264   : > { %8684 = vmatprep.mubr.msk.f32.mxu0 %vm346_vm0, %v11500_v31  ;;  %13523 = vst [vmem:[#allocation83_spill] sm:$0xff] %v11896_v40 }
 0x265   : > { %8632 = vmatmul.mubr.msk.f32.gmra.mxu1 %vm346_vm0, %v11879_v63  ;;  %v11935_v52 = vsel %vm1399_vm4, %v4357_v61, %v4358_v11  ;;  %v11947_v34 = vsel %vm1399_vm4, %v4358_v11, %v4360_v18  ;;  %v11952_v53 = vsel %vm1399_vm4, %v4362_v6, %v4363_v20  ;;  %v4368_v61 = vrot.slane %v11634_v56, 2 }
 0x266   : > { %8634 = vmatprep.mubr.msk.f32.mxu1 %vm346_vm0, %v11884_v0  ;;  %13528 = vst [vmem:[#allocation20_spill] sm:$0xff] %v11935_v52  ;;  %13529 = vst [vmem:[#allocation56_spill] sm:$0xff] %v11947_v34  ;;  %v11964_v11 = vsel %vm1399_vm4, %v4363_v20, %v4365_v12  ;;  %v4372_v6 = vrot.slane %v11662_v28, 2  ;;  %v4373_v18 = vrot.slane %v11664_v7, 2  ;;  %v4377_v12 = vrot.slane %v11691_v37, 2 }
 0x267   : > { %8685 = vmatmul.mubr.msk.f32.gmra.mxu0 %vm346_vm0, %v11502_v25  ;;  %13530 = vst [vmem:[#allocation89_spill] sm:$0xff] %v11952_v53  ;;  %13531 = vst [vmem:[#allocation70_spill] sm:$0xff] %v11964_v11  ;;  %v11969_v9 = vsel %vm1399_vm4, %v4367_v17, %v4368_v61  ;;  %v11981_v20 = vsel %vm1399_vm4, %v4368_v61, %v4370_v2  ;;  %v4382_v2 = vrot.slane %v11719_v51, 2 }
 0x268   : > { %8687 = vmatprep.mubr.msk.f32.mxu0 %vm346_vm0, %v11533_v14  ;;  %13532 = vst [vmem:[#allocation74_spill] sm:$0xff] %v11969_v9  ;;  %13533 = vst [vmem:[#allocation76_spill] sm:$0xff] %v11981_v20  ;;  %v11986_v17 = vsel %vm1399_vm4, %v4372_v6, %v4373_v18  ;;  %v11998_v61 = vsel %vm1399_vm4, %v4373_v18, %v4375_v49  ;;  %v12003_v6 = vsel %vm1399_vm4, %v4377_v12, %v4378_v33 }
 0x269   : > { %8635 = vmatmul.mubr.msk.f32.gmra.mxu1 %vm346_vm0, %v11896_v40  ;;  %13534 = vst [vmem:[#allocation91_spill] sm:$0xff] %v11986_v17  ;;  %13535 = vst [vmem:[#allocation78_spill] sm:$0xff] %v11998_v61  ;;  %v12015_v18 = vsel %vm1399_vm4, %v4378_v33, %v4380_v39  ;;  %v4387_v49 = vrot.slane %v11743_v1, 2  ;;  %v12029_v33 = vld [vmem:[#allocation3 + $0x180] sm:$0xff] }
 0x26a   : > { %8637 = vmatprep.mubr.msk.f32.mxu1 %vm346_vm0, %v11901_v4  ;;  %13536 = vst [vmem:[#allocation80_spill] sm:$0xff] %v12003_v6  ;;  %13537 = vst [vmem:[#allocation82_spill] sm:$0xff] %v12015_v18 }
 0x26b   : > { %8688 = vmatmul.mubr.msk.f32.gmra.mxu0 %vm346_vm0, %v11535_v27 }
 0x26c   : > { %8690 = vmatprep.mubr.msk.f32.mxu0 %vm346_vm0, %v11567_v23 }
 0x26d   : > { %8638 = vmatmul.mubr.msk.f32.gmra.mxu1 %vm346_vm0, %v11913_v21 }
 0x26e   : > { %8640 = vmatprep.mubr.msk.f32.mxu1 %vm346_vm0, %v11918_v19 }
 0x26f   : > { %8691 = vmatmul.mubr.msk.f32.gmra.mxu0 %vm346_vm0, %v11569_v16 }
 0x270   : > { %8693 = vmatprep.mubr.msk.f32.mxu0 %vm346_vm0, %v11606_v54 }
 0x271   : > { %8641 = vmatmul.mubr.msk.f32.gmra.mxu1 %vm346_vm0, %v11930_v58 }
 0x272   : > { %8643 = vmatprep.mubr.msk.f32.mxu1 %vm346_vm0, %v11935_v52 }
 0x273   : > { %8694 = vmatmul.mubr.msk.f32.gmra.mxu0 %vm346_vm0, %v11608_v45 }
 0x274   : > { %8696 = vmatprep.mubr.msk.f32.mxu0 %vm346_vm0, %v11632_v8 }
 0x275   : > { %8644 = vmatmul.mubr.msk.f32.gmra.mxu1 %vm346_vm0, %v11947_v34 }
 0x276   : > { %8646 = vmatprep.mubr.msk.f32.mxu1 %vm346_vm0, %v11952_v53 }
 0x277   : > { %8697 = vmatmul.mubr.msk.f32.gmra.mxu0 %vm346_vm0, %v11634_v56 }
 0x278   : > { %8699 = vmatprep.mubr.msk.f32.mxu0 %vm346_vm0, %v11662_v28 }
 0x279   : > { %8647 = vmatmul.mubr.msk.f32.gmra.mxu1 %vm346_vm0, %v11964_v11 }
 0x27a   : > { %8649 = vmatprep.mubr.msk.f32.mxu1 %vm346_vm0, %v11969_v9 }
 0x27b   : > { %8700 = vmatmul.mubr.msk.f32.gmra.mxu0 %vm346_vm0, %v11664_v7 }
 0x27c   : > { %8702 = vmatprep.mubr.msk.f32.mxu0 %vm346_vm0, %v11691_v37  ;;  %v4383_v37 = vrot.slane %v11721_v48, 2 }
 0x27d   : > { %8650 = vmatmul.mubr.msk.f32.gmra.mxu1 %vm346_vm0, %v11981_v20 }
 0x27e   : > { %8652 = vmatprep.mubr.msk.f32.mxu1 %vm346_vm0, %v11986_v17  ;;  %v12020_v12 = vsel %vm1399_vm4, %v4382_v2, %v4383_v37  ;;  %v12034_v2 = vsel %vm1399_vm4, %v4383_v37, %v4385_v38  ;;  %v13550_v38 = vld [vmem:[#allocation19_spill] sm:$0xff] }
 0x27f   : > { %8703 = vmatmul.mubr.msk.f32.gmra.mxu0 %vm346_vm0, %v11693_v22  ;;  %13538 = vst [vmem:[#allocation84_spill] sm:$0xff] %v12020_v12  ;;  %13539 = vst [vmem:[#allocation86_spill] sm:$0xff] %v12034_v2 }
 0x280   : > { %8705 = vmatprep.mubr.msk.f32.mxu0 %vm346_vm0, %v11719_v51  ;;  %v4388_v51 = vrot.slane %v11745_v55, 2 }
 0x281   : > { %8653 = vmatmul.mubr.msk.f32.gmra.mxu1 %vm346_vm0, %v11998_v61 }
 0x282   : > { %8655 = vmatprep.mubr.msk.f32.mxu1 %vm346_vm0, %v12003_v6  ;;  %v12039_v39 = vsel %vm1399_vm4, %v4387_v49, %v4388_v51  ;;  %v12060_v49 = vld [vmem:[%s13024_s7] sm:$0xff] }
 0x283   : > { %8706 = vmatmul.mubr.msk.f32.gmra.mxu0 %vm346_vm0, %v11721_v48  ;;  %13540 = vst [vmem:[#allocation57_spill] sm:$0xff] %v12039_v39 }
 0x284   : > { %8708 = vmatprep.mubr.msk.f32.mxu0 %vm346_vm0, %v11743_v1 }
 0x285   : > { %8656 = vmatmul.mubr.msk.f32.gmra.mxu1 %vm346_vm0, %v12015_v18 }
 0x286   : > { %8658 = vmatprep.mubr.msk.f32.mxu1 %vm346_vm0, %v12020_v12 }
 0x287   : > { %8709 = vmatmul.mubr.msk.f32.gmra.mxu0 %vm346_vm0, %v11745_v55  ;;  %v4390_v55 = vrot.slane %v11739_v5, 2  ;;  %v13545_v5 = vld [vmem:[#allocation31_spill] sm:$0xff] }
 0x288   : > { %8711 = vmatprep.mubr.msk.f32.mxu0 %vm346_vm0, %v12029_v33 }
 0x289   : > { %8659 = vmatmul.mubr.msk.f32.gmra.mxu1 %vm346_vm0, %v12034_v2  ;;  %v12051_v37 = vsel %vm1399_vm4, %v4388_v51, %v4390_v55  ;;  %v12070_v55 = vld [vmem:[%s13023_s6 + $0x40] sm:$0xff]  ;;  %v13544_v51 = vld [vmem:[#allocation29_spill] sm:$0xff] }
 0x28a   : > { %8661 = vmatprep.mubr.msk.f32.mxu1 %vm346_vm0, %v12039_v39  ;;  %13541 = vst [vmem:[#allocation93_spill] sm:$0xff] %v12051_v37 }
 0x28b   : > { %8712 = vmatmul.mubr.msk.f32.gmra.mxu0 %vm346_vm0, %v12043_v60 }
 0x28c   : > { %8766 = vmatprep.mubr.msk.f32.mxu0 %vm346_vm0, %v11793_v43  ;;  %v13548_v43 = vld [vmem:[#allocation71_spill] sm:$0xff] }
 0x28d   : > { %8662 = vmatmul.mubr.msk.f32.gmra.mxu1 %vm346_vm0, %v12051_v37 }
 0x28e   : > { %8716 = vmatprep.mubr.msk.f32.mxu1 %vm346_vm0, %v11327_v47  ;;  %v13542_v47 = vld [vmem:[#allocation22_spill] sm:$0xff] }
 0x28f   : > { %8767 = vmatmul.mubr.msk.f32.vlgmr.msra.gmra.mxu0 %vm346_vm0, %v11809_v10  ;;  %v13549_v10 = vld [vmem:[#allocation62_spill] sm:$0xff] }
 0x290   : > { %8769 = vmatprep.mubr.msk.f32.mxu0 %vm346_vm0, %v11816_v46  ;;  %8865 = vmatpush3.msra.mxu0 %v11774_v3  ;;  %v13546_v3 = vld [vmem:[#allocation63_spill] sm:$0xff] }
 0x291   : > { %8717 = vmatmul.mubr.msk.f32.vlgmr.msra.gmra.mxu1 %vm346_vm0, %v11330_v24  ;;  %8964 = vmatprep.subr.mxu0 %v12060_v49  ;;  %v13543_v24 = vld [vmem:[#allocation27_spill] sm:$0xff] }
 0x292   : > { %8815 = vmatpush3.msra.mxu1 %v11788_v44  ;;  %8719 = vmatprep.mubr.msk.f32.mxu1 %vm346_vm0, %v11361_v59  ;;  %v13547_v44 = vld [vmem:[#allocation69_spill] sm:$0xff] }
 0x293   : > { %8770 = vmatmul.mubr.msk.f32.gmra.mxu0 %vm346_vm0, %v11828_v26  ;;  %8914 = vmatprep.subr.mxu1 %v12070_v55 }
 0x294   : > { %8772 = vmatprep.mubr.msk.f32.mxu0 %vm346_vm0, %v11833_v35 }
 0x295   : > { %8720 = vmatmul.mubr.msk.f32.gmra.mxu1 %vm346_vm0, %v11364_v36 }
 0x296   : > { %8722 = vmatprep.mubr.msk.f32.mxu1 %vm346_vm0, %v11394_v30 }
 0x297   : > { %8773 = vmatmul.mubr.msk.f32.gmra.mxu0 %vm346_vm0, %v11845_v42 }
 0x298   : > { %8775 = vmatprep.mubr.msk.f32.mxu0 %vm346_vm0, %v11850_v41 }
 0x299   : > { %8723 = vmatmul.mubr.msk.f32.gmra.mxu1 %vm346_vm0, %v11397_v13 }
 0x29a   : > { %8725 = vmatprep.mubr.msk.f32.mxu1 %vm346_vm0, %v11428_v62 }
 0x29b   : > { %8776 = vmatmul.mubr.msk.f32.gmra.mxu0 %vm346_vm0, %v11862_v15 }
 0x29c   : > { %8778 = vmatprep.mubr.msk.f32.mxu0 %vm346_vm0, %v11867_v57 }
 0x29d   : > { %8726 = vmatmul.mubr.msk.f32.gmra.mxu1 %vm346_vm0, %v13542_v47 }
 0x29e   : > { %8728 = vmatprep.mubr.msk.f32.mxu1 %vm346_vm0, %v13543_v24 }
 0x29f   : > { %8779 = vmatmul.mubr.msk.f32.gmra.mxu0 %vm346_vm0, %v11879_v63 }
 0x2a0   : > { %8781 = vmatprep.mubr.msk.f32.mxu0 %vm346_vm0, %v11884_v0  ;;  %v13563_v0 = vld [vmem:[#allocation59_spill] sm:$0xff] }
 0x2a1   : > { %8729 = vmatmul.mubr.msk.f32.gmra.mxu1 %vm346_vm0, %v13544_v51 }
 0x2a2   : > { %8731 = vmatprep.mubr.msk.f32.mxu1 %vm346_vm0, %v13545_v5 }
 0x2a3   : > { %8782 = vmatmul.mubr.msk.f32.gmra.mxu0 %vm346_vm0, %v11896_v40  ;;  %v3599_v40 = vld [vmem:[#allocation3 + $0x190] sm:$0x3] }
 0x2a4   : > { %8784 = vmatprep.mubr.msk.f32.mxu0 %vm346_vm0, %v11901_v4  ;;  %v13561_v4 = vld [vmem:[#allocation77_spill] sm:$0xff] }
 0x2a5   : > { %8732 = vmatmul.mubr.msk.f32.gmra.mxu1 %vm346_vm0, %v13546_v3 }
 0x2a6   : > { %8734 = vmatprep.mubr.msk.f32.mxu1 %vm346_vm0, %v13547_v44 }
 0x2a7   : > { %8785 = vmatmul.mubr.msk.f32.gmra.mxu0 %vm346_vm0, %v11913_v21  ;;  %v13552_v21 = vld [vmem:[#allocation36_spill] sm:$0xff] }
 0x2a8   : > { %8787 = vmatprep.mubr.msk.f32.mxu0 %vm346_vm0, %v11918_v19  ;;  %v13551_v19 = vld [vmem:[#allocation26_spill] sm:$0xff] }
 0x2a9   : > { %8735 = vmatmul.mubr.msk.f32.gmra.mxu1 %vm346_vm0, %v13548_v43 }
 0x2aa   : > { %8737 = vmatprep.mubr.msk.f32.mxu1 %vm346_vm0, %v11562_v50 }
 0x2ab   : > { %8788 = vmatmul.mubr.msk.f32.gmra.mxu0 %vm346_vm0, %v11930_v58  ;;  %v13554_v58 = vld [vmem:[#allocation37_spill] sm:$0xff] }
 0x2ac   : > { %8790 = vmatprep.mubr.msk.f32.mxu0 %vm346_vm0, %v11935_v52  ;;  %v13553_v52 = vld [vmem:[#allocation30_spill] sm:$0xff] }
 0x2ad   : > { %8738 = vmatmul.mubr.msk.f32.gmra.mxu1 %vm346_vm0, %v13549_v10 }
 0x2ae   : > { %8740 = vmatprep.mubr.msk.f32.mxu1 %vm346_vm0, %v13550_v38 }
 0x2af   : > { %8791 = vmatmul.mubr.msk.f32.gmra.mxu0 %vm346_vm0, %v11947_v34  ;;  %v13556_v34 = vld [vmem:[#allocation68_spill] sm:$0xff] }
 0x2b0   : > { %8793 = vmatprep.mubr.msk.f32.mxu0 %vm346_vm0, %v11952_v53  ;;  %v13555_v53 = vld [vmem:[#allocation72_spill] sm:$0xff] }
 0x2b1   : > { %8741 = vmatmul.mubr.msk.f32.gmra.mxu1 %vm346_vm0, %v13551_v19 }
 0x2b2   : > { %8743 = vmatprep.mubr.msk.f32.mxu1 %vm346_vm0, %v13552_v21 }
 0x2b3   : > { %8794 = vmatmul.mubr.msk.f32.gmra.mxu0 %vm346_vm0, %v11964_v11  ;;  %v13558_v11 = vld [vmem:[#allocation40_spill] sm:$0xff] }
 0x2b4   : > { %8796 = vmatprep.mubr.msk.f32.mxu0 %vm346_vm0, %v11969_v9  ;;  %v13557_v9 = vld [vmem:[#allocation65_spill] sm:$0xff] }
 0x2b5   : > { %8744 = vmatmul.mubr.msk.f32.gmra.mxu1 %vm346_vm0, %v13553_v52 }
 0x2b6   : > { %8746 = vmatprep.mubr.msk.f32.mxu1 %vm346_vm0, %v13554_v58 }
 0x2b7   : > { %8797 = vmatmul.mubr.msk.f32.gmra.mxu0 %vm346_vm0, %v11981_v20  ;;  %v13560_v20 = vld [vmem:[#allocation41_spill] sm:$0xff] }
 0x2b8   : > { %8799 = vmatprep.mubr.msk.f32.mxu0 %vm346_vm0, %v11986_v17  ;;  %v13559_v17 = vld [vmem:[#allocation73_spill] sm:$0xff] }
 0x2b9   : > { %8747 = vmatmul.mubr.msk.f32.gmra.mxu1 %vm346_vm0, %v13555_v53 }
 0x2ba   : > { %8749 = vmatprep.mubr.msk.f32.mxu1 %vm346_vm0, %v13556_v34 }
 0x2bb   : > { %8800 = vmatmul.mubr.msk.f32.gmra.mxu0 %vm346_vm0, %v11998_v61  ;;  %v5250_v61 = vrot.slane %v12043_v60, 2 }
 0x2bc   : > { %8802 = vmatprep.mubr.msk.f32.mxu0 %vm346_vm0, %v12003_v6  ;;  %v5249_v6 = vrot.slane %v12029_v33, 2 }
 0x2bd   : > { %8750 = vmatmul.mubr.msk.f32.gmra.mxu1 %vm346_vm0, %v13557_v9 }
 0x2be   : > { %8752 = vmatprep.mubr.msk.f32.mxu1 %vm346_vm0, %v13558_v11 }
 0x2bf   : > { %8803 = vmatmul.mubr.msk.f32.gmra.mxu0 %vm346_vm0, %v12015_v18  ;;  %v4981_v18 = vrot.slane %v12029_v33, 1 }
 0x2c0   : > { %8805 = vmatprep.mubr.msk.f32.mxu0 %vm346_vm0, %v12020_v12  ;;  %v4982_v12 = vrot.slane %v12043_v60, 1 }
 0x2c1   : > { %8753 = vmatmul.mubr.msk.f32.gmra.mxu1 %vm346_vm0, %v13559_v17 }
 0x2c2   : > { %8755 = vmatprep.mubr.msk.f32.mxu1 %vm346_vm0, %v13560_v20  ;;  %v12197_v63 = vsel %vm738_vm3, %v4981_v18, %v4982_v12  ;;  %v12213_v18 = vpop.f32.mrf.mxu0 }
 0x2c3   : > { %8806 = vmatmul.mubr.msk.f32.gmra.mxu0 %vm346_vm0, %v12034_v2  ;;  %v12190_v2 = vsel %vm1399_vm4, %v5249_v6, %v5250_v61 }
 0x2c4   : > { %8808 = vmatprep.mubr.msk.f32.mxu0 %vm346_vm0, %v12039_v39  ;;  %13562 = vst [vmem:[#allocation88_spill] sm:$0xff] %v12190_v2  ;;  %v5252_v39 = vrot.slane %v3599_v40, 2 }
 0x2c5   : > { %8756 = vmatmul.mubr.msk.f32.gmra.mxu1 %vm346_vm0, %v13561_v4 }
 0x2c6   : > { %8758 = vmatprep.mubr.msk.f32.mxu1 %vm346_vm0, %v11759_v29  ;;  %v12202_v57 = vsel %vm1399_vm4, %v5250_v61, %v5252_v39  ;;  %v9034_v61 = vld [vmem:[#allocation3 + $0x48] sm:$0xff] }
 0x2c7   : > { %8809 = vmatmul.mubr.msk.f32.gmra.mxu0 %vm346_vm0, %v12051_v37  ;;  %v4984_v37 = vrot.slane %v3599_v40, 1 }
 0x2c8   : > { %8811 = vmatprep.mubr.msk.f32.mxu0 %vm346_vm0, %v12190_v2  ;;  %v9032_v2 = vld [vmem:[#allocation3 + $0x30] sm:$0xff] }
 0x2c9   : > { %8759 = vmatmul.mubr.msk.f32.gmra.mxu1 %vm346_vm0, %v13563_v0  ;;  %v12209_v6 = vsel %vm738_vm3, %v4982_v12, %v4984_v37  ;;  %v12224_v12 = vpop.f32.mrf.mxu1 }
 0x2ca   : > { %8761 = vmatprep.mubr.msk.f32.mxu1 %vm346_vm0, %v12197_v63 }
 0x2cb   : > { %8812 = vmatmul.mubr.msk.f32.gmra.mxu0 %vm346_vm0, %v12202_v57 }
 0x2cc   : > { %8866 = vmatprep.mubr.msk.f32.mxu0 %vm346_vm0, %v11361_v59  ;;  %v9033_v59 = vld [vmem:[#allocation3 + $0x38] sm:$0xff] }
 0x2cd   : > { %8762 = vmatmul.mubr.msk.f32.gmra.mxu1 %vm346_vm0, %v12209_v6 }
 0x2ce   : > { %8816 = vmatprep.mubr.msk.f32.mxu1 %vm346_vm0, %v9032_v2  ;;  %v9035_v2 = vld [vmem:[#allocation3 + $0x50] sm:$0xff] }
 0x2cf   : > { %8867 = vmatmul.mubr.msk.f32.vlgmr.msra.gmra.mxu0 %vm346_vm0, %v11364_v36  ;;  %v8571_v40 = vpop.f32.mrf.mxu0 }
 0x2d0   : > { %8869 = vmatprep.mubr.msk.f32.mxu0 %vm346_vm0, %v11394_v30  ;;  %8965 = vmatpush3.msra.mxu0 %v12060_v49  ;;  %v9036_v49 = vld [vmem:[#allocation3 + $0x60] sm:$0xff] }
 0x2d1   : > { %8817 = vmatmul.mubr.msk.f32.vlgmr.msra.gmra.mxu1 %vm346_vm0, %v9033_v59  ;;  %v4163_v36 = vpop.f32.mrf.mxu0 }
 0x2d2   : > { %8915 = vmatpush3.msra.mxu1 %v12070_v55  ;;  %8819 = vmatprep.mubr.msk.f32.mxu1 %vm346_vm0, %v9034_v61  ;;  %v9037_v61 = vld [vmem:[#allocation3 + $0x68] sm:$0xff] }
 0x2d3   : > { %8870 = vmatmul.mubr.msk.f32.gmra.mxu0 %vm346_vm0, %v11397_v13  ;;  %v8521_v30 = vpop.f32.mrf.mxu1 }
 0x2d4   : > { %8872 = vmatprep.mubr.msk.f32.mxu0 %vm346_vm0, %v11428_v62  ;;  %v8574_v39 = vpop.f32.mrf.mxu0  ;;  %v12231_v37 = vadd.f32 %v8571_v40, %v8521_v30  ;;  %v9038_v30 = vld [vmem:[#allocation3 + $0x78] sm:$0xff] }
 0x2d5   : > { %8820 = vmatmul.mubr.msk.f32.gmra.mxu1 %vm346_vm0, %v9035_v2  ;;  %v3874_v55 = vpop.f32.mrf.mxu1 }
 0x2d6   : > { %8822 = vmatprep.mubr.msk.f32.mxu1 %vm346_vm0, %v9036_v49  ;;  %v4173_v59 = vpop.f32.mrf.mxu0  ;;  %v12236_v13 = vadd.f32 %v4163_v36, %v3874_v55  ;;  %v9039_v55 = vld [vmem:[#allocation3 + $0x80] sm:$0xff] }
 0x2d7   : > { %8873 = vmatmul.mubr.msk.f32.gmra.mxu0 %vm346_vm0, %v13542_v47  ;;  %v8524_v62 = vpop.f32.mrf.mxu1 }
 0x2d8   : > { %8875 = vmatprep.mubr.msk.f32.mxu0 %vm346_vm0, %v13543_v24  ;;  %v8577_v2 = vpop.f32.mrf.mxu0  ;;  %v12241_v40 = vadd.f32 %v8574_v39, %v8524_v62 }
 0x2d9   : > { %8823 = vmatmul.mubr.msk.f32.gmra.mxu1 %vm346_vm0, %v9037_v61  ;;  %v3884_v47 = vpop.f32.mrf.mxu1 }
 0x2da   : > { %8825 = vmatprep.mubr.msk.f32.mxu1 %vm346_vm0, %v9038_v30  ;;  %v4183_v49 = vpop.f32.mrf.mxu0  ;;  %v12246_v36 = vadd.f32 %v4173_v59, %v3884_v47  ;;  %v9040_v30 = vld [vmem:[#allocation3 + $0x98] sm:$0xff] }
 0x2db   : > { %8876 = vmatmul.mubr.msk.f32.gmra.mxu0 %vm346_vm0, %v13544_v51  ;;  %v8527_v24 = vpop.f32.mrf.mxu1 }
 0x2dc   : > { %8878 = vmatprep.mubr.msk.f32.mxu0 %vm346_vm0, %v13545_v5  ;;  %v8580_v61 = vpop.f32.mrf.mxu0  ;;  %v12251_v39 = vadd.f32 %v8577_v2, %v8527_v24 }
 0x2dd   : > { %8826 = vmatmul.mubr.msk.f32.gmra.mxu1 %vm346_vm0, %v9039_v55  ;;  %v3894_v51 = vpop.f32.mrf.mxu1 }
 0x2de   : > { %8828 = vmatprep.mubr.msk.f32.mxu1 %vm346_vm0, %v11466_v32  ;;  %v4193_v62 = vpop.f32.mrf.mxu0  ;;  %v12257_v59 = vadd.f32 %v4183_v49, %v3894_v51 }
 0x2df   : > { %8879 = vmatmul.mubr.msk.f32.gmra.mxu0 %vm346_vm0, %v13546_v3  ;;  %v8530_v5 = vpop.f32.mrf.mxu1 }
 0x2e0   : > { %8881 = vmatprep.mubr.msk.f32.mxu0 %vm346_vm0, %v13547_v44  ;;  %v12262_v47 = vadd.f32 %v8580_v61, %v8530_v5  ;;  %v8583_v2 = vpop.f32.mrf.mxu0 }
 0x2e1   : > { %8829 = vmatmul.mubr.msk.f32.gmra.mxu1 %vm346_vm0, %v9040_v30  ;;  %v3904_v32 = vpop.f32.mrf.mxu1 }
 0x2e2   : > { %8831 = vmatprep.mubr.msk.f32.mxu1 %vm346_vm0, %v11500_v31  ;;  %v12268_v3 = vadd.f32 %v4193_v62, %v3904_v32  ;;  %v4203_v44 = vpop.f32.mrf.mxu0 }
 0x2e3   : > { %8882 = vmatmul.mubr.msk.f32.gmra.mxu0 %vm346_vm0, %v13548_v43 }
 0x2e4   : > { %8884 = vmatprep.mubr.msk.f32.mxu0 %vm346_vm0, %v11562_v50  ;;  %v8533_v49 = vpop.f32.mrf.mxu1  ;;  %v8586_v55 = vpop.f32.mrf.mxu0 }
 0x2e5   : > { %8832 = vmatmul.mubr.msk.f32.gmra.mxu1 %vm346_vm0, %v11502_v25  ;;  %v12274_v24 = vadd.f32 %v8583_v2, %v8533_v49 }
 0x2e6   : > { %8834 = vmatprep.mubr.msk.f32.mxu1 %vm346_vm0, %v11533_v14  ;;  %v3914_v31 = vpop.f32.mrf.mxu1  ;;  %v4213_v50 = vpop.f32.mrf.mxu0 }
 0x2e7   : > { %8885 = vmatmul.mubr.msk.f32.gmra.mxu0 %vm346_vm0, %v13549_v10  ;;  %v12280_v43 = vadd.f32 %v4203_v44, %v3914_v31  ;;  %v13564_v31 = vld [vmem:[#allocation50_spill] sm:$0xff] }
 0x2e8   : > { %8887 = vmatprep.mubr.msk.f32.mxu0 %vm346_vm0, %v13550_v38  ;;  %v8536_v61 = vpop.f32.mrf.mxu1  ;;  %v8589_v51 = vpop.f32.mrf.mxu0 }
 0x2e9   : > { %8835 = vmatmul.mubr.msk.f32.gmra.mxu1 %vm346_vm0, %v11535_v27  ;;  %v12286_v25 = vadd.f32 %v8586_v55, %v8536_v61 }
 0x2ea   : > { %8837 = vmatprep.mubr.msk.f32.mxu1 %vm346_vm0, %v11567_v23  ;;  %v3924_v14 = vpop.f32.mrf.mxu1  ;;  %v4223_v38 = vpop.f32.mrf.mxu0 }
 0x2eb   : > { %8888 = vmatmul.mubr.msk.f32.gmra.mxu0 %vm346_vm0, %v13551_v19  ;;  %v12292_v10 = vadd.f32 %v4213_v50, %v3924_v14  ;;  %v12350_v14 = vld [vmem:[#allocation3 + $0x198] sm:$0xff] }
 0x2ec   : > { %8890 = vmatprep.mubr.msk.f32.mxu0 %vm346_vm0, %v13552_v21  ;;  %v8539_v62 = vpop.f32.mrf.mxu1  ;;  %v8592_v5 = vpop.f32.mrf.mxu0 }
 0x2ed   : > { %8838 = vmatmul.mubr.msk.f32.gmra.mxu1 %vm346_vm0, %v11569_v16  ;;  %v12298_v27 = vadd.f32 %v8589_v51, %v8539_v62  ;;  %v13565_v51 = vld [vmem:[#allocation75_spill] sm:$0xff] }
 0x2ee   : > { %8840 = vmatprep.mubr.msk.f32.mxu1 %vm346_vm0, %v11606_v54  ;;  %v3934_v23 = vpop.f32.mrf.mxu1  ;;  %v4233_v21 = vpop.f32.mrf.mxu0 }
 0x2ef   : > { %8891 = vmatmul.mubr.msk.f32.gmra.mxu0 %vm346_vm0, %v13553_v52  ;;  %v12304_v19 = vadd.f32 %v4223_v38, %v3934_v23 }
 0x2f0   : > { %8893 = vmatprep.mubr.msk.f32.mxu0 %vm346_vm0, %v13554_v58  ;;  %v8542_v30 = vpop.f32.mrf.mxu1  ;;  %v8595_v2 = vpop.f32.mrf.mxu0 }
 0x2f1   : > { %8841 = vmatmul.mubr.msk.f32.gmra.mxu1 %vm346_vm0, %v11608_v45  ;;  %v12310_v16 = vadd.f32 %v8592_v5, %v8542_v30  ;;  %v5783_v5 = vrot.slane %v12350_v14, 1 }
 0x2f2   : > { %8843 = vmatprep.mubr.msk.f32.mxu1 %vm346_vm0, %v11632_v8  ;;  %v3944_v54 = vpop.f32.mrf.mxu1  ;;  %v4243_v58 = vpop.f32.mrf.mxu0 }
 0x2f3   : > { %8894 = vmatmul.mubr.msk.f32.gmra.mxu0 %vm346_vm0, %v13555_v53  ;;  %v12316_v52 = vadd.f32 %v4233_v21, %v3944_v54  ;;  %v12364_v21 = vld [vmem:[#allocation3 + $0x1a8] sm:$0x3] }
 0x2f4   : > { %8896 = vmatprep.mubr.msk.f32.mxu0 %vm346_vm0, %v13556_v34  ;;  %v8545_v32 = vpop.f32.mrf.mxu1  ;;  %v5786_v54 = vrot.slane %v12364_v21, 1 }
 0x2f5   : > { %8844 = vmatmul.mubr.msk.f32.gmra.mxu1 %vm346_vm0, %v11634_v56  ;;  %v12322_v45 = vadd.f32 %v8595_v2, %v8545_v32  ;;  %v8598_v44 = vpop.f32.mrf.mxu0  ;;  %v13566_v32 = vld [vmem:[#allocation55_spill] sm:$0xff] }
 0x2f6   : > { %8846 = vmatprep.mubr.msk.f32.mxu1 %vm346_vm0, %v11662_v28  ;;  %v3954_v8 = vpop.f32.mrf.mxu1 }
 0x2f7   : > { %8897 = vmatmul.mubr.msk.f32.gmra.mxu0 %vm346_vm0, %v13557_v9  ;;  %v12328_v53 = vadd.f32 %v4243_v58, %v3954_v8  ;;  %v4253_v34 = vpop.f32.mrf.mxu0 }
 0x2f8   : > { %8899 = vmatprep.mubr.msk.f32.mxu0 %vm346_vm0, %v13558_v11 }
 0x2f9   : > { %v8548_v49 = vpop.f32.mrf.mxu1  ;;  %8847 = vmatmul.mubr.msk.f32.gmra.mxu1 %vm346_vm0, %v11664_v7 }
 0x2fa   : > { %v12334_v56 = vadd.f32 %v8598_v44, %v8548_v49  ;;  %v8601_v55 = vpop.f32.mrf.mxu0  ;;  %8849 = vmatprep.mubr.msk.f32.mxu1 %vm346_vm0, %v13564_v31 }
 0x2fb   : > { %8900 = vmatmul.mubr.msk.f32.gmra.mxu0 %vm346_vm0, %v13559_v17  ;;  %v3964_v28 = vpop.f32.mrf.mxu1  ;;  %v12352_v17 = vld [vmem:[#allocation3 + $0x1a0] sm:$0xff] }
 0x2fc   : > { %v12340_v9 = vadd.f32 %v4253_v34, %v3964_v28  ;;  %8902 = vmatprep.mubr.msk.f32.mxu0 %vm346_vm0, %v13560_v20  ;;  %v4263_v11 = vpop.f32.mrf.mxu0  ;;  %v5784_v23 = vrot.slane %v12352_v17, 1 }
 0x2fd   : > { %v8551_v50 = vpop.f32.mrf.mxu1  ;;  %8850 = vmatmul.mubr.msk.f32.gmra.mxu1 %vm346_vm0, %v11693_v22 }
 0x2fe   : > { %v12346_v7 = vadd.f32 %v8601_v55, %v8551_v50  ;;  %v8604_v61 = vpop.f32.mrf.mxu0  ;;  %8852 = vmatprep.mubr.msk.f32.mxu1 %vm346_vm0, %v13565_v51  ;;  %v5785_v44 = vsel %vm738_vm3, %v5783_v5, %v5784_v23  ;;  %v5787_v49 = vsel %vm738_vm3, %v5784_v23, %v5786_v54  ;;  %v13567_v50 = vld [vmem:[#allocation6_spill] sm:$0xff] }
 0x2ff   : > { %8903 = vmatmul.mubr.msk.f32.gmra.mxu0 %vm346_vm0, %v13561_v4  ;;  %v3974_v38 = vpop.f32.mrf.mxu1  ;;  %v13569_v23 = vld [vmem:[#allocation10_spill] sm:$0xff] }
 0x300   : > { %v12356_v20 = vadd.f32 %v4263_v11, %v3974_v38  ;;  %8905 = vmatprep.mubr.msk.f32.mxu0 %vm346_vm0, %v11759_v29  ;;  %v4273_v22 = vpop.f32.mrf.mxu0 }
 0x301   : > { %v8554_v62 = vpop.f32.mrf.mxu1  ;;  %8853 = vmatmul.mubr.msk.f32.gmra.mxu1 %vm346_vm0, %v11721_v48 }
 0x302   : > { %v12366_v30 = vadd.f32 %v8604_v61, %v8554_v62  ;;  %v8607_v4 = vpop.f32.mrf.mxu0  ;;  %8855 = vmatprep.mubr.msk.f32.mxu1 %vm346_vm0, %v11743_v1 }
 0x303   : > { %8906 = vmatmul.mubr.msk.f32.gmra.mxu0 %vm346_vm0, %v13563_v0  ;;  %v3984_v29 = vpop.f32.mrf.mxu1 }
 0x304   : > { %v12372_v2 = vadd.f32 %v4273_v22, %v3984_v29  ;;  %8908 = vmatprep.mubr.msk.f32.mxu0 %vm346_vm0, %v12197_v63  ;;  %v4283_v48 = vpop.f32.mrf.mxu0  ;;  %v13568_v22 = vld [vmem:[#allocation7_spill] sm:$0xff]  ;;  %v4154_v29 = vadd.f32 %v12213_v18, %v12224_v12 }
 0x305   : > { %v8557_v58 = vpop.f32.mrf.mxu1  ;;  %8856 = vmatmul.mubr.msk.f32.gmra.mxu1 %vm346_vm0, %v13566_v32  ;;  %v13571_v32 = vld [vmem:[#allocation11_spill] sm:$0xff] }
 0x306   : > { %v12380_v8 = vadd.f32 %v8607_v4, %v8557_v58  ;;  %v8610_v1 = vpop.f32.mrf.mxu0  ;;  %8858 = vmatprep.mubr.msk.f32.mxu1 %vm346_vm0, %v12029_v33 }
 0x307   : > { %8909 = vmatmul.mubr.msk.f32.gmra.mxu0 %vm346_vm0, %v12209_v6  ;;  %v3994_v0 = vpop.f32.mrf.mxu1 }
 0x308   : > { %v12386_v63 = vadd.f32 %v4283_v48, %v3994_v0  ;;  %v4293_v34 = vpop.f32.mrf.mxu0  ;;  %8911 = vmatprep.mubr.msk.f32.mxu0 %vm346_vm0, %v5785_v44  ;;  %v13570_v48 = vld [vmem:[#allocation79_spill] sm:$0xff] }
 0x309   : > { %v8560_v55 = vpop.f32.mrf.mxu1  ;;  %8859 = vmatmul.mubr.msk.f32.gmra.mxu1 %vm346_vm0, %v12043_v60 }
 0x30a   : > { %v12392_v31 = vadd.f32 %v8610_v1, %v8560_v55  ;;  %v8613_v28 = vpop.f32.mrf.mxu0  ;;  %8861 = vmatprep.mubr.msk.f32.mxu1 %vm346_vm0, %v12350_v14  ;;  %v13572_v1 = vld [vmem:[#allocation14_spill] sm:$0xff]  ;;  %v13573_v55 = vld [vmem:[#allocation15_spill] sm:$0xff] }
 0x30b   : > { %v4004_v33 = vpop.f32.mrf.mxu1  ;;  %8912 = vmatmul.mubr.msk.f32.gmra.mxu0 %vm346_vm0, %v5787_v49 }
 0x30c   : > { %v12397_v6 = vadd.f32 %v4293_v34, %v4004_v33  ;;  %v4303_v11 = vpop.f32.mrf.mxu0  ;;  %8966 = vmatprep.mubr.msk.f32.mxu0 %vm346_vm0, %v13567_v50  ;;  %v13574_v33 = vld [vmem:[#allocation21_spill] sm:$0xff] }
 0x30d   : > { %v8563_v61 = vpop.f32.mrf.mxu1  ;;  %8862 = vmatmul.mubr.msk.f32.gmra.mxu1 %vm346_vm0, %v12352_v17 }
 0x30e   : > { %v12403_v60 = vadd.f32 %v8613_v28, %v8563_v61  ;;  %v8668_v51 = vpop.f32.mrf.mxu0  ;;  %8916 = vmatprep.mubr.msk.f32.mxu1 %vm346_vm0, %v11816_v46 }
 0x30f   : > { %v4014_v38 = vpop.f32.mrf.mxu1  ;;  %8967 = vmatmul.mubr.msk.f32.vlgmr.msra.gmra.mxu0 %vm346_vm0, %v13568_v22 }
 0x310   : > { %v12409_v62 = vadd.f32 %v4303_v11, %v4014_v38  ;;  %v4789_v5 = vpop.f32.mrf.mxu0  ;;  %8969 = vmatprep.mubr.msk.f32.mxu0 %vm346_vm0, %v13569_v23 }
 0x311   : > { %v8618_v4 = vpop.f32.mrf.mxu1  ;;  %8917 = vmatmul.mubr.msk.f32.vlgmr.msra.gmra.mxu1 %vm346_vm0, %v11828_v26 }
 0x312   : > { %v4684_v54 = vadd.f32 %v8618_v4, %v13570_v48  ;;  %8919 = vmatprep.mubr.msk.f32.mxu1 %vm346_vm0, %v11833_v35  ;;  %v13579_v48 = vld [vmem:[#allocation64_spill] sm:$0xff] }
 0x313   : > { %v8671_v46 = vpop.f32.mrf.mxu0  ;;  %v4524_v58 = vpop.f32.mrf.mxu1  ;;  %8970 = vmatmul.mubr.msk.f32.gmra.mxu0 %vm346_vm0, %v13571_v32 }
 0x314   : > { %v4683_v44 = vadd.f32 %v4524_v58, %v4154_v29  ;;  %8972 = vmatprep.mubr.msk.f32.mxu0 %vm346_vm0, %v13572_v1  ;;  %v12424_v0 = vadd.f32 %v8668_v51, %v4684_v54 }
 0x315   : > { %v4799_v26 = vpop.f32.mrf.mxu0  ;;  %v8621_v34 = vpop.f32.mrf.mxu1  ;;  %8920 = vmatmul.mubr.msk.f32.gmra.mxu1 %vm346_vm0, %v11845_v42 }
 0x316   : > { %v4686_v18 = vadd.f32 %v8621_v34, %v12231_v37  ;;  %8922 = vmatprep.mubr.msk.f32.mxu1 %vm346_vm0, %v11850_v41  ;;  %v12431_v35 = vadd.f32 %v4789_v5, %v4683_v44  ;;  %v13575_v37 = vld [vmem:[#allocation52_spill] sm:$0xff]  ;;  %v13577_v5 = vld [vmem:[#allocation34_spill] sm:$0xff] }
 0x317   : > { %v8674_v12 = vpop.f32.mrf.mxu0  ;;  %v4534_v49 = vpop.f32.mrf.mxu1  ;;  %8973 = vmatmul.mubr.msk.f32.gmra.mxu0 %vm346_vm0, %v13573_v55  ;;  %v13581_v44 = vld [vmem:[#allocation42_spill] sm:$0xff] }
 0x318   : > { %v4685_v28 = vadd.f32 %v4534_v49, %v12236_v13  ;;  %8975 = vmatprep.mubr.msk.f32.mxu0 %vm346_vm0, %v13574_v33  ;;  %v12438_v11 = vadd.f32 %v8671_v46, %v4686_v18  ;;  %v13576_v13 = vld [vmem:[#allocation23_spill] sm:$0xff] }
 0x319   : > { %v4809_v42 = vpop.f32.mrf.mxu0  ;;  %v8624_v50 = vpop.f32.mrf.mxu1  ;;  %8923 = vmatmul.mubr.msk.f32.gmra.mxu1 %vm346_vm0, %v11862_v15 }
 0x31a   : > { %v4688_v41 = vadd.f32 %v8624_v50, %v12241_v40  ;;  %8925 = vmatprep.mubr.msk.f32.mxu1 %vm346_vm0, %v13575_v37  ;;  %v12445_v61 = vadd.f32 %v4799_v26, %v4685_v28  ;;  %v13578_v40 = vld [vmem:[#allocation81_spill] sm:$0xff] }
 0x31b   : > { %v8677_v51 = vpop.f32.mrf.mxu0  ;;  %v4544_v38 = vpop.f32.mrf.mxu1  ;;  %8976 = vmatmul.mubr.msk.f32.gmra.mxu0 %vm346_vm0, %v13576_v13 }
 0x31c   : > { %v4687_v22 = vadd.f32 %v4544_v38, %v12246_v36  ;;  %8978 = vmatprep.mubr.msk.f32.mxu0 %vm346_vm0, %v13577_v5  ;;  %v12452_v23 = vadd.f32 %v8674_v12, %v4688_v41  ;;  %v13580_v36 = vld [vmem:[#allocation35_spill] sm:$0xff]  ;;  %v13583_v12 = vld [vmem:[#allocation53_spill] sm:$0xff] }
 0x31d   : > { %v4819_v15 = vpop.f32.mrf.mxu0  ;;  %v8627_v4 = vpop.f32.mrf.mxu1  ;;  %8926 = vmatmul.mubr.msk.f32.gmra.mxu1 %vm346_vm0, %v13578_v40  ;;  %v13587_v38 = vld [vmem:[#allocation87_spill] sm:$0xff] }
 0x31e   : > { %v4690_v29 = vadd.f32 %v8627_v4, %v12251_v39  ;;  %8928 = vmatprep.mubr.msk.f32.mxu1 %vm346_vm0, %v13579_v48  ;;  %v12459_v54 = vadd.f32 %v4809_v42, %v4687_v22  ;;  %v13582_v39 = vld [vmem:[#allocation83_spill] sm:$0xff]  ;;  %v13585_v42 = vld [vmem:[#allocation46_spill] sm:$0xff]  ;;  %v13589_v4 = vld [vmem:[#allocation4_spill] sm:$0xff] }
 0x31f   : > { %v8680_v46 = vpop.f32.mrf.mxu0  ;;  %v4554_v58 = vpop.f32.mrf.mxu1  ;;  %8979 = vmatmul.mubr.msk.f32.gmra.mxu0 %vm346_vm0, %v13580_v36 }
 0x320   : > { %v4689_v32 = vadd.f32 %v4554_v58, %v12257_v59  ;;  %8981 = vmatprep.mubr.msk.f32.mxu0 %vm346_vm0, %v13581_v44  ;;  %v12466_v1 = vadd.f32 %v8677_v51, %v4690_v29  ;;  %v13584_v59 = vld [vmem:[#allocation43_spill] sm:$0xff]  ;;  %v13591_v58 = vld [vmem:[#allocation20_spill] sm:$0xff] }
 0x321   : > { %v4829_v26 = vpop.f32.mrf.mxu0  ;;  %v8630_v34 = vpop.f32.mrf.mxu1  ;;  %8929 = vmatmul.mubr.msk.f32.gmra.mxu1 %vm346_vm0, %v13582_v39 }
 0x322   : > { %v4692_v18 = vadd.f32 %v8630_v34, %v12262_v47  ;;  %8931 = vmatprep.mubr.msk.f32.mxu1 %vm346_vm0, %v13583_v12  ;;  %v12473_v49 = vadd.f32 %v4819_v15, %v4689_v32  ;;  %v13586_v47 = vld [vmem:[#allocation85_spill] sm:$0xff]  ;;  %v13593_v34 = vld [vmem:[#allocation8_spill] sm:$0xff] }
 0x323   : > { %v8683_v55 = vpop.f32.mrf.mxu0  ;;  %v4564_v28 = vpop.f32.mrf.mxu1  ;;  %8982 = vmatmul.mubr.msk.f32.gmra.mxu0 %vm346_vm0, %v13584_v59 }
 0x324   : > { %v4691_v33 = vadd.f32 %v4564_v28, %v12268_v3  ;;  %8984 = vmatprep.mubr.msk.f32.mxu0 %vm346_vm0, %v13585_v42  ;;  %v12480_v50 = vadd.f32 %v8680_v46, %v4692_v18  ;;  %v13588_v3 = vld [vmem:[#allocation47_spill] sm:$0xff]  ;;  %v13595_v28 = vld [vmem:[#allocation89_spill] sm:$0xff] }
 0x325   : > { %v4839_v41 = vpop.f32.mrf.mxu0  ;;  %v8633_v37 = vpop.f32.mrf.mxu1  ;;  %8932 = vmatmul.mubr.msk.f32.gmra.mxu1 %vm346_vm0, %v13586_v47 }
 0x326   : > { %v4694_v51 = vadd.f32 %v8633_v37, %v12274_v24  ;;  %8934 = vmatprep.mubr.msk.f32.mxu1 %vm346_vm0, %v13587_v38  ;;  %v12487_v13 = vadd.f32 %v4829_v26, %v4691_v33  ;;  %v13590_v24 = vld [vmem:[#allocation60_spill] sm:$0xff] }
 0x327   : > { %v8686_v22 = vpop.f32.mrf.mxu0  ;;  %v4574_v5 = vpop.f32.mrf.mxu1  ;;  %8985 = vmatmul.mubr.msk.f32.gmra.mxu0 %vm346_vm0, %v13588_v3  ;;  %v13597_v37 = vld [vmem:[#allocation12_spill] sm:$0xff] }
 0x328   : > { %v4693_v15 = vadd.f32 %v4574_v5, %v12280_v43  ;;  %8987 = vmatprep.mubr.msk.f32.mxu0 %vm346_vm0, %v13589_v4  ;;  %v12494_v40 = vadd.f32 %v8683_v55, %v4694_v51  ;;  %v13592_v43 = vld [vmem:[#allocation5_spill] sm:$0xff]  ;;  %v13599_v5 = vld [vmem:[#allocation74_spill] sm:$0xff] }
 0x329   : > { %v4849_v29 = vpop.f32.mrf.mxu0  ;;  %v8636_v48 = vpop.f32.mrf.mxu1  ;;  %8935 = vmatmul.mubr.msk.f32.gmra.mxu1 %vm346_vm0, %v13590_v24 }
 0x32a   : > { %v4696_v46 = vadd.f32 %v8636_v48, %v12286_v25  ;;  %8937 = vmatprep.mubr.msk.f32.mxu1 %vm346_vm0, %v13591_v58  ;;  %v12501_v36 = vadd.f32 %v4839_v41, %v4693_v15  ;;  %v13594_v25 = vld [vmem:[#allocation56_spill] sm:$0xff] }
 0x32b   : > { %v8689_v32 = vpop.f32.mrf.mxu0  ;;  %v4584_v44 = vpop.f32.mrf.mxu1  ;;  %8988 = vmatmul.mubr.msk.f32.gmra.mxu0 %vm346_vm0, %v13592_v43  ;;  %v13601_v48 = vld [vmem:[#allocation16_spill] sm:$0xff] }
 0x32c   : > { %v4695_v26 = vadd.f32 %v4584_v44, %v12292_v10  ;;  %8990 = vmatprep.mubr.msk.f32.mxu0 %vm346_vm0, %v13593_v34  ;;  %v12508_v39 = vadd.f32 %v8686_v22, %v4696_v46  ;;  %v13596_v10 = vld [vmem:[#allocation9_spill] sm:$0xff]  ;;  %v13603_v44 = vld [vmem:[#allocation91_spill] sm:$0xff] }
 0x32d   : > { %v4859_v18 = vpop.f32.mrf.mxu0  ;;  %v8639_v12 = vpop.f32.mrf.mxu1  ;;  %8938 = vmatmul.mubr.msk.f32.gmra.mxu1 %vm346_vm0, %v13594_v25 }
 0x32e   : > { %v4698_v55 = vadd.f32 %v8639_v12, %v12298_v27  ;;  %8940 = vmatprep.mubr.msk.f32.mxu1 %vm346_vm0, %v13595_v28  ;;  %v12515_v59 = vadd.f32 %v4849_v29, %v4695_v26  ;;  %v13598_v27 = vld [vmem:[#allocation70_spill] sm:$0xff]  ;;  %v13605_v12 = vld [vmem:[#allocation24_spill] sm:$0xff] }
 0x32f   : > { %v8692_v33 = vpop.f32.mrf.mxu0  ;;  %v4594_v42 = vpop.f32.mrf.mxu1  ;;  %8991 = vmatmul.mubr.msk.f32.gmra.mxu0 %vm346_vm0, %v13596_v10 }
 0x330   : > { %v4697_v41 = vadd.f32 %v4594_v42, %v12304_v19  ;;  %8993 = vmatprep.mubr.msk.f32.mxu0 %vm346_vm0, %v13597_v37  ;;  %v12522_v47 = vadd.f32 %v8689_v32, %v4698_v55  ;;  %v13600_v19 = vld [vmem:[#allocation13_spill] sm:$0xff]  ;;  %v13607_v42 = vld [vmem:[#allocation80_spill] sm:$0xff] }
 0x331   : > { %v4869_v51 = vpop.f32.mrf.mxu0  ;;  %v8642_v38 = vpop.f32.mrf.mxu1  ;;  %8941 = vmatmul.mubr.msk.f32.gmra.mxu1 %vm346_vm0, %v13598_v27 }
 0x332   : > { %v4700_v22 = vadd.f32 %v8642_v38, %v12310_v16  ;;  %8943 = vmatprep.mubr.msk.f32.mxu1 %vm346_vm0, %v13599_v5  ;;  %v12529_v3 = vadd.f32 %v4859_v18, %v4697_v41  ;;  %v13602_v16 = vld [vmem:[#allocation76_spill] sm:$0xff]  ;;  %v13609_v38 = vld [vmem:[#allocation38_spill] sm:$0xff] }
 0x333   : > { %v8695_v15 = vpop.f32.mrf.mxu0  ;;  %v4604_v4 = vpop.f32.mrf.mxu1  ;;  %8994 = vmatmul.mubr.msk.f32.gmra.mxu0 %vm346_vm0, %v13600_v19 }
 0x334   : > { %v4699_v29 = vadd.f32 %v4604_v4, %v12316_v52  ;;  %8996 = vmatprep.mubr.msk.f32.mxu0 %vm346_vm0, %v13601_v48  ;;  %v12536_v24 = vadd.f32 %v8692_v33, %v4700_v22  ;;  %v13604_v52 = vld [vmem:[#allocation17_spill] sm:$0xff]  ;;  %v13611_v4 = vld [vmem:[#allocation84_spill] sm:$0xff] }
 0x335   : > { %v4879_v46 = vpop.f32.mrf.mxu0  ;;  %v8645_v58 = vpop.f32.mrf.mxu1  ;;  %8944 = vmatmul.mubr.msk.f32.gmra.mxu1 %vm346_vm0, %v13602_v16 }
 0x336   : > { %v4702_v32 = vadd.f32 %v8645_v58, %v12322_v45  ;;  %8946 = vmatprep.mubr.msk.f32.mxu1 %vm346_vm0, %v13603_v44  ;;  %v12543_v43 = vadd.f32 %v4869_v51, %v4699_v29  ;;  %v13606_v45 = vld [vmem:[#allocation78_spill] sm:$0xff]  ;;  %v13613_v58 = vld [vmem:[#allocation44_spill] sm:$0xff] }
 0x337   : > { %v8698_v26 = vpop.f32.mrf.mxu0  ;;  %v4614_v34 = vpop.f32.mrf.mxu1  ;;  %8997 = vmatmul.mubr.msk.f32.gmra.mxu0 %vm346_vm0, %v13604_v52 }
 0x338   : > { %v4701_v18 = vadd.f32 %v4614_v34, %v12328_v53  ;;  %8999 = vmatprep.mubr.msk.f32.mxu0 %vm346_vm0, %v13605_v12  ;;  %v12550_v25 = vadd.f32 %v8695_v15, %v4702_v32  ;;  %v13608_v53 = vld [vmem:[#allocation33_spill] sm:$0xff] }
 0x339   : > { %v4889_v55 = vpop.f32.mrf.mxu0  ;;  %v8648_v28 = vpop.f32.mrf.mxu1  ;;  %8947 = vmatmul.mubr.msk.f32.gmra.mxu1 %vm346_vm0, %v13606_v45  ;;  %v13615_v34 = vld [vmem:[#allocation57_spill] sm:$0xff] }
 0x33a   : > { %v4704_v33 = vadd.f32 %v8648_v28, %v12334_v56  ;;  %8949 = vmatprep.mubr.msk.f32.mxu1 %vm346_vm0, %v13607_v42  ;;  %v12557_v10 = vadd.f32 %v4879_v46, %v4701_v18  ;;  %v13610_v56 = vld [vmem:[#allocation82_spill] sm:$0xff]  ;;  %v6051_v18 = vrot.slane %v12350_v14, 2  ;;  %v6052_v28 = vrot.slane %v12352_v17, 2 }
 0x33b   : > { %v8701_v41 = vpop.f32.mrf.mxu0  ;;  %v4624_v37 = vpop.f32.mrf.mxu1  ;;  %9000 = vmatmul.mubr.msk.f32.gmra.mxu0 %vm346_vm0, %v13608_v53  ;;  %v13619_v53 = vld [vmem:[#allocation88_spill] sm:$0xff] }
 0x33c   : > { %v4703_v51 = vadd.f32 %v4624_v37, %v12340_v9  ;;  %9002 = vmatprep.mubr.msk.f32.mxu0 %vm346_vm0, %v13609_v38  ;;  %v12564_v27 = vadd.f32 %v8698_v26, %v4704_v33  ;;  %v13612_v9 = vld [vmem:[#allocation39_spill] sm:$0xff]  ;;  %v13617_v33 = vld [vmem:[#allocation48_spill] sm:$0xff]  ;;  %v13618_v37 = vld [vmem:[#allocation93_spill] sm:$0xff] }
 0x33d   : > { %v4899_v22 = vpop.f32.mrf.mxu0  ;;  %v8651_v5 = vpop.f32.mrf.mxu1  ;;  %8950 = vmatmul.mubr.msk.f32.gmra.mxu1 %vm346_vm0, %v13610_v56 }
 0x33e   : > { %v4706_v15 = vadd.f32 %v8651_v5, %v12346_v7  ;;  %8952 = vmatprep.mubr.msk.f32.mxu1 %vm346_vm0, %v13611_v4  ;;  %v12571_v19 = vadd.f32 %v4889_v55, %v4703_v51  ;;  %v13614_v7 = vld [vmem:[#allocation86_spill] sm:$0xff]  ;;  %v13616_v55 = vld [vmem:[#allocation45_spill] sm:$0xff]  ;;  %v6054_v51 = vrot.slane %v12364_v21, 2  ;;  %v6053_v5 = vsel %vm1399_vm4, %v6051_v18, %v6052_v28 }
 0x33f   : > { %v8704_v29 = vpop.f32.mrf.mxu0  ;;  %v4634_v48 = vpop.f32.mrf.mxu1  ;;  %9003 = vmatmul.mubr.msk.f32.gmra.mxu0 %vm346_vm0, %v13612_v9 }
 0x340   : > { %v4705_v46 = vadd.f32 %v4634_v48, %v12356_v20  ;;  %9005 = vmatprep.mubr.msk.f32.mxu0 %vm346_vm0, %v13613_v58  ;;  %v12578_v16 = vadd.f32 %v8701_v41, %v4706_v15  ;;  %v13621_v15 = vld [vmem:[#allocation66_spill] sm:$0xff]  ;;  %v6055_v48 = vsel %vm1399_vm4, %v6052_v28, %v6054_v51  ;;  %v13622_v58 = vld [vmem:[#allocation67_spill] sm:$0xff] }
 0x341   : > { %v4909_v32 = vpop.f32.mrf.mxu0  ;;  %v8654_v44 = vpop.f32.mrf.mxu1  ;;  %8953 = vmatmul.mubr.msk.f32.gmra.mxu1 %vm346_vm0, %v13614_v7 }
 0x342   : > { %v4708_v26 = vadd.f32 %v8654_v44, %v12366_v30  ;;  %8955 = vmatprep.mubr.msk.f32.mxu1 %vm346_vm0, %v13615_v34  ;;  %v12585_v52 = vadd.f32 %v4899_v22, %v4705_v46  ;;  %v13620_v22 = vld [vmem:[#allocation51_spill] sm:$0xff] }
 0x343   : > { %v8707_v20 = vpop.f32.mrf.mxu0  ;;  %v4644_v12 = vpop.f32.mrf.mxu1  ;;  %9006 = vmatmul.mubr.msk.f32.gmra.mxu0 %vm346_vm0, %v13616_v55 }
 0x344   : > { %v4707_v45 = vadd.f32 %v4644_v12, %v12372_v2  ;;  %9008 = vmatprep.mubr.msk.f32.mxu0 %vm346_vm0, %v13617_v33  ;;  %v12594_v30 = vadd.f32 %v8704_v29, %v4708_v26 }
 0x345   : > { %v4919_v42 = vpop.f32.mrf.mxu0  ;;  %v8657_v41 = vpop.f32.mrf.mxu1  ;;  %8956 = vmatmul.mubr.msk.f32.gmra.mxu1 %vm346_vm0, %v13618_v37 }
 0x346   : > { %v4710_v14 = vadd.f32 %v8657_v41, %v12380_v8  ;;  %8958 = vmatprep.mubr.msk.f32.mxu1 %vm346_vm0, %v13619_v53  ;;  %v12602_v17 = vadd.f32 %v4909_v32, %v4707_v45 }
 0x347   : > { %v8710_v2 = vpop.f32.mrf.mxu0  ;;  %v4654_v38 = vpop.f32.mrf.mxu1  ;;  %9009 = vmatmul.mubr.msk.f32.gmra.mxu0 %vm346_vm0, %v13620_v22 }
 0x348   : > { %v4709_v56 = vadd.f32 %v4654_v38, %v12386_v63  ;;  %9011 = vmatprep.mubr.msk.f32.mxu0 %vm346_vm0, %v13621_v15  ;;  %v12610_v8 = vadd.f32 %v8707_v20, %v4710_v14 }
 0x349   : > { %v4929_v4 = vpop.f32.mrf.mxu0  ;;  %v8660_v29 = vpop.f32.mrf.mxu1  ;;  %8959 = vmatmul.mubr.msk.f32.gmra.mxu1 %vm346_vm0, %v12202_v57 }
 0x34a   : > { %v4712_v21 = vadd.f32 %v8660_v29, %v12392_v31  ;;  %8961 = vmatprep.mubr.msk.f32.mxu1 %vm346_vm0, %v6053_v5  ;;  %v12617_v9 = vadd.f32 %v4919_v42, %v4709_v56 }
 0x34b   : > { %v8713_v46 = vpop.f32.mrf.mxu0  ;;  %v4664_v63 = vpop.f32.mrf.mxu1  ;;  %9012 = vmatmul.mubr.msk.f32.gmra.mxu0 %vm346_vm0, %v13622_v58 }
 0x34c   : > { %v4711_v32 = vadd.f32 %v4664_v63, %v12397_v6  ;;  %v12622_v44 = vadd.f32 %v8710_v2, %v4712_v21 }
 0x34d   : > { %v4939_v7 = vpop.f32.mrf.mxu0  ;;  %v8663_v26 = vpop.f32.mrf.mxu1  ;;  %8962 = vmatmul.mubr.msk.f32.gmra.mxu1 %vm346_vm0, %v6055_v48 }
 0x34e   : > { %v4714_v57 = vadd.f32 %v8663_v26, %v12403_v60  ;;  %v12626_v31 = vadd.f32 %v4929_v4, %v4711_v32 }
 0x34f   : > { %v8768_v34 = vpop.f32.mrf.mxu0  ;;  %v4674_v18 = vpop.f32.mrf.mxu1 }
 0x350   : > { %v4713_v20 = vadd.f32 %v4674_v18, %v12409_v62  ;;  %v12629_v12 = vadd.f32 %v8713_v46, %v4714_v57 }
 0x351   : > { %v5326_v55 = vpop.f32.mrf.mxu0  ;;  %v8718_v28 = vpop.f32.mrf.mxu1 }
 0x352   : > { %v5218_v6 = vadd.f32 %v8718_v28, %v12424_v0  ;;  %v12632_v45 = vadd.f32 %v4939_v7, %v4713_v20 }
 0x353   : > { %v8771_v33 = vpop.f32.mrf.mxu0  ;;  %v5058_v42 = vpop.f32.mrf.mxu1 }
 0x354   : > { %v5217_v41 = vadd.f32 %v5058_v42, %v12431_v35  ;;  %v12635_v37 = vadd.f32 %v8768_v34, %v5218_v6 }
 0x355   : > { %v5336_v60 = vpop.f32.mrf.mxu0  ;;  %v8721_v14 = vpop.f32.mrf.mxu1 }
 0x356   : > { %v5220_v53 = vadd.f32 %v8721_v14, %v12438_v11  ;;  %v12638_v51 = vadd.f32 %v5326_v55, %v5217_v41 }
 0x357   : > { %v8774_v62 = vpop.f32.mrf.mxu0  ;;  %v5068_v2 = vpop.f32.mrf.mxu1 }
 0x358   : > { %v5219_v38 = vadd.f32 %v5068_v2, %v12445_v61  ;;  %v12641_v22 = vadd.f32 %v8771_v33, %v5220_v53 }
 0x359   : > { %v5346_v0 = vpop.f32.mrf.mxu0  ;;  %v8724_v5 = vpop.f32.mrf.mxu1 }
 0x35a   : > { %v5222_v56 = vadd.f32 %v8724_v5, %v12452_v23  ;;  %v12644_v15 = vadd.f32 %v5336_v60, %v5219_v38 }
 0x35b   : > { %v8777_v35 = vpop.f32.mrf.mxu0  ;;  %v5078_v4 = vpop.f32.mrf.mxu1 }
 0x35c   : > { %v5221_v29 = vadd.f32 %v5078_v4, %v12459_v54  ;;  %v12647_v21 = vadd.f32 %v8774_v62, %v5222_v56 }
 0x35d   : > { %v5356_v11 = vpop.f32.mrf.mxu0  ;;  %v8727_v48 = vpop.f32.mrf.mxu1 }
 0x35e   : > { %v5224_v46 = vadd.f32 %v8727_v48, %v12466_v1  ;;  %v12650_v63 = vadd.f32 %v5346_v0, %v5221_v29 }
 0x35f   : > { %v8780_v61 = vpop.f32.mrf.mxu0  ;;  %v5088_v58 = vpop.f32.mrf.mxu1 }
 0x360   : > { %v5223_v32 = vadd.f32 %v5088_v58, %v12473_v49  ;;  %v12653_v7 = vadd.f32 %v8777_v35, %v5224_v46 }
 0x361   : > { %v5366_v23 = vpop.f32.mrf.mxu0  ;;  %v8730_v26 = vpop.f32.mrf.mxu1 }
 0x362   : > { %v5226_v57 = vadd.f32 %v8730_v26, %v12480_v50  ;;  %v12656_v34 = vadd.f32 %v5356_v11, %v5223_v32 }
 0x363   : > { %v8783_v54 = vpop.f32.mrf.mxu0  ;;  %v5098_v18 = vpop.f32.mrf.mxu1 }
 0x364   : > { %v5225_v20 = vadd.f32 %v5098_v18, %v12487_v13  ;;  %v12659_v55 = vadd.f32 %v8780_v61, %v5226_v57 }
 0x365   : > { %v5376_v1 = vpop.f32.mrf.mxu0  ;;  %v8733_v28 = vpop.f32.mrf.mxu1 }
 0x366   : > { %v5228_v6 = vadd.f32 %v8733_v28, %v12494_v40  ;;  %v12662_v33 = vadd.f32 %v5366_v23, %v5225_v20 }
 0x367   : > { %v8786_v49 = vpop.f32.mrf.mxu0  ;;  %v5108_v42 = vpop.f32.mrf.mxu1 }
 0x368   : > { %v5227_v41 = vadd.f32 %v5108_v42, %v12501_v36  ;;  %v12665_v60 = vadd.f32 %v8783_v54, %v5228_v6 }
 0x369   : > { %v5386_v50 = vpop.f32.mrf.mxu0  ;;  %v8736_v14 = vpop.f32.mrf.mxu1 }
 0x36a   : > { %v5230_v53 = vadd.f32 %v8736_v14, %v12508_v39  ;;  %v12668_v62 = vadd.f32 %v5376_v1, %v5227_v41 }
 0x36b   : > { %v8789_v13 = vpop.f32.mrf.mxu0  ;;  %v5118_v2 = vpop.f32.mrf.mxu1 }
 0x36c   : > { %v5229_v38 = vadd.f32 %v5118_v2, %v12515_v59  ;;  %v12671_v0 = vadd.f32 %v8786_v49, %v5230_v53 }
 0x36d   : > { %v5396_v40 = vpop.f32.mrf.mxu0  ;;  %v8739_v5 = vpop.f32.mrf.mxu1 }
 0x36e   : > { %v5232_v56 = vadd.f32 %v8739_v5, %v12522_v47  ;;  %v12674_v35 = vadd.f32 %v5386_v50, %v5229_v38 }
 0x36f   : > { %v8792_v36 = vpop.f32.mrf.mxu0  ;;  %v5128_v4 = vpop.f32.mrf.mxu1 }
 0x370   : > { %v5231_v29 = vadd.f32 %v5128_v4, %v12529_v3  ;;  %v12677_v11 = vadd.f32 %v8789_v13, %v5232_v56 }
 0x371   : > { %v5406_v39 = vpop.f32.mrf.mxu0  ;;  %v8742_v48 = vpop.f32.mrf.mxu1 }
 0x372   : > { %v5234_v46 = vadd.f32 %v8742_v48, %v12536_v24  ;;  %v12680_v61 = vadd.f32 %v5396_v40, %v5231_v29 }
 0x373   : > { %v8795_v59 = vpop.f32.mrf.mxu0  ;;  %v5138_v58 = vpop.f32.mrf.mxu1 }
 0x374   : > { %v5233_v32 = vadd.f32 %v5138_v58, %v12543_v43  ;;  %v12683_v23 = vadd.f32 %v8792_v36, %v5234_v46 }
 0x375   : > { %v5416_v47 = vpop.f32.mrf.mxu0  ;;  %v8745_v26 = vpop.f32.mrf.mxu1 }
 0x376   : > { %v5236_v57 = vadd.f32 %v8745_v26, %v12550_v25  ;;  %v12686_v54 = vadd.f32 %v5406_v39, %v5233_v32 }
 0x377   : > { %v8798_v3 = vpop.f32.mrf.mxu0  ;;  %v5148_v18 = vpop.f32.mrf.mxu1 }
 0x378   : > { %v5235_v20 = vadd.f32 %v5148_v18, %v12557_v10  ;;  %v12689_v1 = vadd.f32 %v8795_v59, %v5236_v57 }
 0x379   : > { %v5426_v24 = vpop.f32.mrf.mxu0  ;;  %v8748_v28 = vpop.f32.mrf.mxu1 }
 0x37a   : > { %13623 = vst [vmem:[#allocation90_spill] sm:$0xff] %v12689_v1  ;;  %v5238_v6 = vadd.f32 %v8748_v28, %v12564_v27  ;;  %v12692_v49 = vadd.f32 %v5416_v47, %v5235_v20 }
 0x37b   : > { %v8801_v43 = vpop.f32.mrf.mxu0  ;;  %v5158_v42 = vpop.f32.mrf.mxu1 }
 0x37c   : > { %13624 = vst [vmem:[#allocation95_spill] sm:$0xff] %v12692_v49  ;;  %v5237_v41 = vadd.f32 %v5158_v42, %v12571_v19  ;;  %v12695_v50 = vadd.f32 %v8798_v3, %v5238_v6 }
 0x37d   : > { %v5436_v25 = vpop.f32.mrf.mxu0  ;;  %v8751_v14 = vpop.f32.mrf.mxu1 }
 0x37e   : > { %13625 = vst [vmem:[#allocation61_spill] sm:$0xff] %v12695_v50  ;;  %v5240_v53 = vadd.f32 %v8751_v14, %v12578_v16  ;;  %v12698_v13 = vadd.f32 %v5426_v24, %v5237_v41 }
 0x37f   : > { %v8804_v10 = vpop.f32.mrf.mxu0  ;;  %v5168_v2 = vpop.f32.mrf.mxu1 }
 0x380   : > { %13626 = vst [vmem:[#allocation97_spill] sm:$0xff] %v12698_v13  ;;  %v5239_v38 = vadd.f32 %v5168_v2, %v12585_v52  ;;  %v12701_v40 = vadd.f32 %v8801_v43, %v5240_v53 }
 0x381   : > { %v5446_v27 = vpop.f32.mrf.mxu0  ;;  %v8754_v5 = vpop.f32.mrf.mxu1 }
 0x382   : > { %13627 = vst [vmem:[#allocation99_spill] sm:$0xff] %v12701_v40  ;;  %v5242_v56 = vadd.f32 %v8754_v5, %v12594_v30  ;;  %v12704_v36 = vadd.f32 %v5436_v25, %v5239_v38 }
 0x383   : > { %v8807_v19 = vpop.f32.mrf.mxu0  ;;  %v5178_v4 = vpop.f32.mrf.mxu1 }
 0x384   : > { %13628 = vst [vmem:[#allocation92_spill] sm:$0xff] %v12704_v36  ;;  %v5241_v29 = vadd.f32 %v5178_v4, %v12602_v17  ;;  %v12707_v39 = vadd.f32 %v8804_v10, %v5242_v56 }
 0x385   : > { %v5456_v16 = vpop.f32.mrf.mxu0  ;;  %v8757_v48 = vpop.f32.mrf.mxu1 }
 0x386   : > { %13629 = vst [vmem:[#allocation18_spill] sm:$0xff] %v12707_v39  ;;  %v5244_v46 = vadd.f32 %v8757_v48, %v12610_v8  ;;  %v12710_v59 = vadd.f32 %v5446_v27, %v5241_v29 }
 0x387   : > { %v8810_v52 = vpop.f32.mrf.mxu0  ;;  %v5188_v58 = vpop.f32.mrf.mxu1 }
 0x388   : > { %13630 = vst [vmem:[#allocation101_spill] sm:$0xff] %v12710_v59  ;;  %v5243_v32 = vadd.f32 %v5188_v58, %v12617_v9  ;;  %v12713_v47 = vadd.f32 %v8807_v19, %v5244_v46 }
 0x389   : > { %v5466_v30 = vpop.f32.mrf.mxu0  ;;  %v8760_v26 = vpop.f32.mrf.mxu1 }
 0x38a   : > { %13631 = vst [vmem:[#allocation103_spill] sm:$0xff] %v12713_v47  ;;  %v5246_v57 = vadd.f32 %v8760_v26, %v12622_v44  ;;  %v12716_v3 = vadd.f32 %v5456_v16, %v5243_v32 }
 0x38b   : > { %v8813_v17 = vpop.f32.mrf.mxu0  ;;  %v5198_v18 = vpop.f32.mrf.mxu1 }
 0x38c   : > { %13632 = vst [vmem:[#allocation25_spill] sm:$0xff] %v12716_v3  ;;  %v5245_v20 = vadd.f32 %v5198_v18, %v12626_v31  ;;  %v12719_v24 = vadd.f32 %v8810_v52, %v5246_v57 }
 0x38d   : > { %v5476_v8 = vpop.f32.mrf.mxu0  ;;  %v8763_v28 = vpop.f32.mrf.mxu1 }
 0x38e   : > { %13633 = vst [vmem:[#allocation105_spill] sm:$0xff] %v12719_v24  ;;  %v5248_v6 = vadd.f32 %v8763_v28, %v12629_v12  ;;  %v12722_v43 = vadd.f32 %v5466_v30, %v5245_v20 }
 0x38f   : > { %v12724_v9 = vpop.f32.mrf.mxu0  ;;  %v5208_v42 = vpop.f32.mrf.mxu1 }
 0x390   : > { %13634 = vst [vmem:[#allocation94_spill] sm:$0xff] %v12722_v43  ;;  %v5247_v41 = vadd.f32 %v5208_v42, %v12632_v45  ;;  %v12727_v44 = vadd.f32 %v8813_v17, %v5248_v6 }
 0x391   : > { %v12729_v25 = vpop.f32.mrf.mxu0  ;;  %v8818_v14 = vpop.f32.mrf.mxu1 }
 0x392   : > { %13635 = vst [vmem:[#allocation96_spill] sm:$0xff] %v12727_v44  ;;  %v12731_v53 = vadd.f32 %v5476_v8, %v5247_v41 }
 0x393   : > { %v12733_v31 = vpop.f32.mrf.mxu0  ;;  %v5591_v10 = vpop.f32.mrf.mxu1 }
 0x394   : > { %13636 = vst [vmem:[#allocation98_spill] sm:$0xff] %v12731_v53 }
 0x395   : > { %v12735_v2 = vpop.f32.mrf.mxu0  ;;  %v8821_v12 = vpop.f32.mrf.mxu1 }
 0x397   : > { %v12737_v38 = vpop.f32.mrf.mxu0  ;;  %v12739_v27 = vpop.f32.mrf.mxu1 }
 0x399   : > { %v12741_v5 = vpop.f32.mrf.mxu0  ;;  %v12743_v45 = vpop.f32.mrf.mxu1 }
 0x39b   : > { %v12745_v56 = vpop.f32.mrf.mxu0  ;;  %v12747_v19 = vpop.f32.mrf.mxu1 }
 0x39d   : > { %v12749_v4 = vpop.f32.mrf.mxu0  ;;  %v12751_v29 = vpop.f32.mrf.mxu1 }
 0x39f   : > { %v12753_v16 = vpop.f32.mrf.mxu0  ;;  %v12755_v48 = vpop.f32.mrf.mxu1 }
 0x3a1   : > { %v12757_v46 = vpop.f32.mrf.mxu0  ;;  %v12759_v52 = vpop.f32.mrf.mxu1 }
 0x3a3   : > { %v12761_v58 = vpop.f32.mrf.mxu0  ;;  %v12763_v32 = vpop.f32.mrf.mxu1 }
 0x3a5   : > { %v12765_v30 = vpop.f32.mrf.mxu0  ;;  %v12767_v26 = vpop.f32.mrf.mxu1 }
 0x3a7   : > { %v12769_v57 = vpop.f32.mrf.mxu0  ;;  %v12771_v17 = vpop.f32.mrf.mxu1 }
 0x3a9   : > { %v12773_v18 = vpop.f32.mrf.mxu0  ;;  %v12775_v20 = vpop.f32.mrf.mxu1 }
 0x3ab   : > { %v12777_v8 = vpop.f32.mrf.mxu0  ;;  %v12779_v28 = vpop.f32.mrf.mxu1 }
 0x3ad   : > { %v12781_v6 = vpop.f32.mrf.mxu0  ;;  %v12783_v42 = vpop.f32.mrf.mxu1 }
 0x3af   : > { %v12785_v41 = vpop.f32.mrf.mxu0  ;;  %v12787_v53 = vpop.f32.mrf.mxu1 }
 0x3b0   : > { %13637 = vst [vmem:[#allocation100_spill] sm:$0xff] %v12785_v41 }
 0x3b1   : > { %v12789_v44 = vpop.f32.mrf.mxu0  ;;  %v12791_v43 = vpop.f32.mrf.mxu1 }
 0x3b2   : > { %13638 = vst [vmem:[#allocation102_spill] sm:$0xff] %v12789_v44 }
 0x3b3   : > { %v12793_v24 = vpop.f32.mrf.mxu0  ;;  %v12795_v3 = vpop.f32.mrf.mxu1 }
 0x3b4   : > { %13639 = vst [vmem:[#allocation104_spill] sm:$0xff] %v12793_v24 }
 0x3b5   : > { %v12797_v47 = vpop.f32.mrf.mxu0  ;;  %v12799_v59 = vpop.f32.mrf.mxu1 }
 0x3b6   : > { %13640 = vst [vmem:[#allocation107_spill] sm:$0xff] %v12797_v47  ;;  %13641 = vst [vmem:[#allocation28_spill] sm:$0xff] %v12799_v59 }
 0x3b7   : > { %v12801_v39 = vpop.f32.mrf.mxu0  ;;  %v12803_v36 = vpop.f32.mrf.mxu1 }
 0x3b8   : > { %13642 = vst [vmem:[#allocation109_spill] sm:$0xff] %v12801_v39  ;;  %13643 = vst [vmem:[#allocation111_spill] sm:$0xff] %v12803_v36 }
 0x3b9   : > { %v12805_v40 = vpop.f32.mrf.mxu0  ;;  %v12807_v13 = vpop.f32.mrf.mxu1 }
 0x3ba   : > { %13644 = vst [vmem:[#allocation32_spill] sm:$0xff] %v12805_v40  ;;  %13645 = vst [vmem:[#allocation49_spill] sm:$0xff] %v12807_v13 }
 0x3bb   : > { %v12809_v50 = vpop.f32.mrf.mxu0  ;;  %v12811_v44 = vpop.f32.mrf.mxu1 }
 0x3bc   : > { %13646 = vst [vmem:[#allocation106_spill] sm:$0xff] %v12809_v50  ;;  %13647 = vst [vmem:[#allocation108_spill] sm:$0xff] %v12811_v44 }
 0x3bd   : > { %v12813_v49 = vpop.f32.mrf.mxu0  ;;  %v12815_v24 = vpop.f32.mrf.mxu1 }
 0x3be   : > { %13648 = vst [vmem:[#allocation110_spill] sm:$0xff] %v12813_v49  ;;  %13649 = vst [vmem:[#allocation112_spill] sm:$0xff] %v12815_v24 }
 0x3bf   : > { %v12817_v41 = vpop.f32.mrf.mxu0  ;;  %v12819_v47 = vpop.f32.mrf.mxu1 }
 0x3c0   : > { %13650 = vst [vmem:[#allocation54_spill] sm:$0xff] %v12817_v41  ;;  %13651 = vst [vmem:[#allocation58_spill] sm:$0xff] %v12819_v47 }
 0x3c1   : > { %v12821_v59 = vpop.f32.mrf.mxu0  ;;  %v12823_v39 = vpop.f32.mrf.mxu1 }
 0x3c2   : > { %13652 = vst [vmem:[#allocation22_spill] sm:$0xff] %v12821_v59  ;;  %13653 = vst [vmem:[#allocation27_spill] sm:$0xff] %v12823_v39 }
 0x3c3   : > { %v12825_v36 = vpop.f32.mrf.mxu0  ;;  %v12827_v40 = vpop.f32.mrf.mxu1 }
 0x3c4   : > { %13654 = vst [vmem:[#allocation29_spill] sm:$0xff] %v12825_v36  ;;  %13655 = vst [vmem:[#allocation31_spill] sm:$0xff] %v12827_v40  ;;  %v5751_v36 = vadd.f32 %v8818_v14, %v12635_v37 }
 0x3c5   : > { %v12829_v13 = vpop.f32.mrf.mxu0  ;;  %v12831_v50 = vpop.f32.mrf.mxu1 }
 0x3c6   : > { %13656 = vst [vmem:[#allocation63_spill] sm:$0xff] %v12829_v13  ;;  %13657 = vst [vmem:[#allocation69_spill] sm:$0xff] %v12831_v50  ;;  %v5750_v50 = vadd.f32 %v5591_v10, %v12638_v51 }
 0x3c7   : > { %v12833_v44 = vpop.f32.mrf.mxu0  ;;  %v12835_v49 = vpop.f32.mrf.mxu1 }
 0x3c8   : > { %13658 = vst [vmem:[#allocation71_spill] sm:$0xff] %v12833_v44  ;;  %13659 = vst [vmem:[#allocation62_spill] sm:$0xff] %v12835_v49  ;;  %v6019_v37 = vadd.f32 %v12729_v25, %v5750_v50  ;;  %v5754_v50 = vadd.f32 %v12747_v19, %v12650_v63 }
 0x3c9   : > { %v12837_v24 = vpop.f32.mrf.mxu0  ;;  %v12839_v41 = vpop.f32.mrf.mxu1 }
 0x3ca   : > { %13660 = vst [vmem:[#allocation19_spill] sm:$0xff] %v12837_v24  ;;  %13661 = vst [vmem:[#allocation26_spill] sm:$0xff] %v12839_v41  ;;  %v5753_v24 = vadd.f32 %v8821_v12, %v12641_v22  ;;  %v6020_v41 = vadd.f32 %v12724_v9, %v5751_v36  ;;  %v5755_v22 = vadd.f32 %v12743_v45, %v12647_v21 }
 0x3cb   : > { %v12841_v59 = vpop.f32.mrf.mxu1  ;;  %v12843_v39 = vpop.f32.mrf.mxu0  ;;  %v5757_v21 = vadd.f32 %v12751_v29, %v12653_v7  ;;  %v6023_v45 = vadd.f32 %v12741_v5, %v5754_v50  ;;  %v5759_v29 = vadd.f32 %v12759_v52, %v12659_v55 }
 0x3cc   : > { %13662 = vst [vmem:[#allocation36_spill] sm:$0xff] %v12841_v59  ;;  %13663 = vst [vmem:[#allocation30_spill] sm:$0xff] %v12843_v39  ;;  %v5752_v39 = vadd.f32 %v12739_v27, %v12644_v15  ;;  %v6022_v10 = vadd.f32 %v12733_v31, %v5753_v24  ;;  %v6024_v24 = vadd.f32 %v12737_v38, %v5755_v22 }
 0x3cd   : > { %v12846_v40 = vpop.f32.mrf.mxu1  ;;  %v12848_v13 = vpop.f32.mrf.mxu0 }
 0x3ce   : > { %13664 = vst [vmem:[#allocation37_spill] sm:$0xff] %v12848_v13  ;;  %v6021_v27 = vadd.f32 %v12735_v2, %v5752_v39 }
 0x3cf   : > { %v12851_v44 = vpop.f32.mrf.mxu1  ;;  %v8968_v49 = vpop.f32.mrf.mxu0 }
 0x3d1   : > { %v8918_v47 = vpop.f32.mrf.mxu1  ;;  %v6482_v1 = vpop.f32.mrf.mxu0 }
 0x3d2   : > { %v6288_v59 = vadd.f32 %v8918_v47, %v6020_v41 }
 0x3d3   : > { %v6128_v51 = vpop.f32.mrf.mxu1  ;;  %v8971_v14 = vpop.f32.mrf.mxu0 }
 0x3d4   : > { %v6642_v36 = vadd.f32 %v8968_v49, %v6288_v59  ;;  %v6287_v9 = vadd.f32 %v6128_v51, %v6019_v37  ;;  %v6026_v51 = vadd.f32 %v12745_v56, %v5757_v21 }
 0x3d5   : > { %v8921_v15 = vpop.f32.mrf.mxu1  ;;  %v6492_v47 = vpop.f32.mrf.mxu0 }
 0x3d6   : > { %6674 = vst.msk [vmem:[%s12862_s13 + $0x8] sm:$0xff] %vm346_vm0, %v6642_v36  ;;  %v6641_v25 = vadd.f32 %v6482_v1, %v6287_v9  ;;  %v6290_v12 = vadd.f32 %v8921_v15, %v6022_v10  ;;  %v5756_v1 = vadd.f32 %v12755_v48, %v12656_v34  ;;  %v5758_v48 = vadd.f32 %v12763_v32, %v12662_v33 }
 0x3d7   : > { %v6138_v41 = vpop.f32.mrf.mxu1  ;;  %v8974_v13 = vpop.f32.mrf.mxu0  ;;  %v6028_v10 = vadd.f32 %v12753_v16, %v5759_v29  ;;  %v5760_v32 = vadd.f32 %v12771_v17, %v12668_v62  ;;  %v5762_v17 = vadd.f32 %v12779_v28, %v12674_v35  ;;  %v5764_v28 = vadd.f32 %v12787_v53, %v12680_v61 }
 0x3d8   : > { %6673 = vst.msk [vmem:[%s12862_s13] sm:$0xff] %vm346_vm0, %v6641_v25  ;;  %v6644_v49 = vadd.f32 %v8971_v14, %v6290_v12  ;;  %v6289_v59 = vadd.f32 %v6138_v41, %v6021_v27  ;;  %v6025_v36 = vadd.f32 %v12749_v4, %v5756_v1  ;;  %v6027_v50 = vadd.f32 %v12757_v46, %v5758_v48  ;;  %v13667_v48 = vld [vmem:[#allocation100_spill] sm:$0xff] }
 0x3d9   : > { %v8924_v31 = vpop.f32.mrf.mxu1  ;;  %v6502_v63 = vpop.f32.mrf.mxu0  ;;  %v5766_v53 = vadd.f32 %v12795_v3, %v12686_v54  ;;  %v13668_v3 = vld [vmem:[#allocation95_spill] sm:$0xff] }
 0x3da   : > { %6676 = vst.msk [vmem:[%s12862_s13 + $0x18] sm:$0xff] %vm346_vm0, %v6644_v49  ;;  %v6643_v39 = vadd.f32 %v6492_v47, %v6289_v59  ;;  %v6292_v2 = vadd.f32 %v8924_v31, %v6024_v24  ;;  %v6029_v49 = vadd.f32 %v12765_v30, %v5760_v32 }
 0x3db   : > { %v6148_v19 = vpop.f32.mrf.mxu1  ;;  %v8977_v7 = vpop.f32.mrf.mxu0 }
 0x3dc   : > { %6675 = vst.msk [vmem:[%s12862_s13 + $0x10] sm:$0xff] %vm346_vm0, %v6643_v39  ;;  %v6646_v38 = vadd.f32 %v8974_v13, %v6292_v2  ;;  %v6291_v37 = vadd.f32 %v6148_v19, %v6023_v45  ;;  %v5761_v13 = vadd.f32 %v12767_v26, %v12665_v60  ;;  %v5763_v26 = vadd.f32 %v12775_v20, %v12671_v0 }
 0x3dd   : > { %v8927_v14 = vpop.f32.mrf.mxu1  ;;  %v6512_v34 = vpop.f32.mrf.mxu0  ;;  %v5765_v20 = vadd.f32 %v12783_v42, %v12677_v11  ;;  %v6031_v39 = vadd.f32 %v12773_v18, %v5762_v17  ;;  %v5767_v42 = vadd.f32 %v12791_v43, %v12683_v23  ;;  %v13665_v43 = vld [vmem:[#allocation90_spill] sm:$0xff]  ;;  %v13676_v17 = vld [vmem:[#allocation107_spill] sm:$0xff] }
 0x3de   : > { %6678 = vst.msk [vmem:[%s12862_s13 + $0x28] sm:$0xff] %vm346_vm0, %v6646_v38  ;;  %v6645_v5 = vadd.f32 %v6502_v63, %v6291_v37  ;;  %v6294_v22 = vadd.f32 %v8927_v14, %v6026_v51  ;;  %v6030_v27 = vadd.f32 %v12761_v58, %v5761_v13  ;;  %v6032_v31 = vadd.f32 %v12769_v57, %v5763_v26  ;;  %v13666_v51 = vld [vmem:[#allocation28_spill] sm:$0xff]  ;;  %v13670_v13 = vld [vmem:[#allocation102_spill] sm:$0xff] }
 0x3df   : > { %v6158_v9 = vpop.f32.mrf.mxu1  ;;  %v8980_v55 = vpop.f32.mrf.mxu0  ;;  %v6034_v19 = vadd.f32 %v12777_v8, %v5765_v20  ;;  %v6033_v38 = vadd.f32 %v12781_v6, %v5764_v28  ;;  %v5769_v14 = vadd.f32 %v13666_v51, %v13665_v43  ;;  %v13686_v51 = vld [vmem:[#allocation101_spill] sm:$0xff] }
 0x3e0   : > { %6677 = vst.msk [vmem:[%s12862_s13 + $0x20] sm:$0xff] %vm346_vm0, %v6645_v5  ;;  %v6648_v56 = vadd.f32 %v8977_v7, %v6294_v22  ;;  %v6293_v52 = vadd.f32 %v6158_v9, %v6025_v36  ;;  %v6036_v5 = vadd.f32 %v13667_v48, %v5767_v42  ;;  %v13669_v36 = vld [vmem:[#allocation111_spill] sm:$0xff]  ;;  %v13682_v42 = vld [vmem:[#allocation32_spill] sm:$0xff] }
 0x3e1   : > { %v8930_v15 = vpop.f32.mrf.mxu1  ;;  %v6522_v33 = vpop.f32.mrf.mxu0  ;;  %v5768_v9 = vadd.f32 %v13669_v36, %v13668_v3  ;;  %v13689_v36 = vld [vmem:[#allocation103_spill] sm:$0xff] }
 0x3e2   : > { %6680 = vst.msk [vmem:[%s12862_s13 + $0x38] sm:$0xff] %vm346_vm0, %v6648_v56  ;;  %v6647_v4 = vadd.f32 %v6512_v34, %v6293_v52  ;;  %v6296_v47 = vadd.f32 %v8930_v15, %v6028_v10  ;;  %v6035_v56 = vadd.f32 %v13670_v13, %v5766_v53  ;;  %v13671_v15 = vld [vmem:[#allocation61_spill] sm:$0xff] }
 0x3e3   : > { %v6168_v25 = vpop.f32.mrf.mxu1  ;;  %v8983_v60 = vpop.f32.mrf.mxu0 }
 0x3e4   : > { %6679 = vst.msk [vmem:[%s12862_s13 + $0x30] sm:$0xff] %vm346_vm0, %v6647_v4  ;;  %v6650_v16 = vadd.f32 %v8980_v55, %v6296_v47  ;;  %v6295_v12 = vadd.f32 %v6168_v25, %v6027_v50  ;;  %v13673_v50 = vld [vmem:[#allocation104_spill] sm:$0xff] }
 0x3e5   : > { %v8933_v41 = vpop.f32.mrf.mxu1  ;;  %v6532_v62 = vpop.f32.mrf.mxu0  ;;  %v6038_v25 = vadd.f32 %v13673_v50, %v5769_v14  ;;  %v13687_v14 = vld [vmem:[#allocation31_spill] sm:$0xff] }
 0x3e6   : > { %6682 = vst.msk [vmem:[%s12862_s13 + $0x48] sm:$0xff] %vm346_vm0, %v6650_v16  ;;  %v6649_v46 = vadd.f32 %v6522_v33, %v6295_v12  ;;  %v6298_v21 = vadd.f32 %v8933_v41, %v6030_v27  ;;  %v13672_v33 = vld [vmem:[#allocation49_spill] sm:$0xff]  ;;  %v13675_v12 = vld [vmem:[#allocation108_spill] sm:$0xff] }
 0x3e7   : > { %v6178_v59 = vpop.f32.mrf.mxu1  ;;  %v8986_v0 = vpop.f32.mrf.mxu0  ;;  %v5771_v32 = vadd.f32 %v13672_v33, %v13671_v15  ;;  %v13674_v16 = vld [vmem:[#allocation97_spill] sm:$0xff] }
 0x3e8   : > { %6681 = vst.msk [vmem:[%s12862_s13 + $0x40] sm:$0xff] %vm346_vm0, %v6649_v46  ;;  %v6652_v58 = vadd.f32 %v8983_v60, %v6298_v21  ;;  %v6297_v24 = vadd.f32 %v6178_v59, %v6029_v49  ;;  %v5770_v27 = vadd.f32 %v13675_v12, %v13674_v16  ;;  %v6037_v46 = vadd.f32 %v13676_v17, %v5768_v9  ;;  %v13677_v59 = vld [vmem:[#allocation99_spill] sm:$0xff]  ;;  %v13690_v9 = vld [vmem:[#allocation69_spill] sm:$0xff] }
 0x3e9   : > { %v8936_v63 = vpop.f32.mrf.mxu1  ;;  %v6542_v35 = vpop.f32.mrf.mxu0  ;;  %v13692_v33 = vld [vmem:[#allocation25_spill] sm:$0xff] }
 0x3ea   : > { %6684 = vst.msk [vmem:[%s12862_s13 + $0x58] sm:$0xff] %vm346_vm0, %v6652_v58  ;;  %v6651_v30 = vadd.f32 %v6532_v62, %v6297_v24  ;;  %v6300_v1 = vadd.f32 %v8936_v63, %v6032_v31  ;;  %v13679_v31 = vld [vmem:[#allocation109_spill] sm:$0xff] }
 0x3eb   : > { %v6188_v2 = vpop.f32.mrf.mxu1  ;;  %v8989_v11 = vpop.f32.mrf.mxu0  ;;  %v6040_v63 = vadd.f32 %v13679_v31, %v5771_v32  ;;  %v13693_v32 = vld [vmem:[#allocation62_spill] sm:$0xff]  ;;  %v13695_v12 = vld [vmem:[#allocation105_spill] sm:$0xff] }
 0x3ec   : > { %6683 = vst.msk [vmem:[%s12862_s13 + $0x50] sm:$0xff] %vm346_vm0, %v6651_v30  ;;  %v6654_v57 = vadd.f32 %v8986_v0, %v6300_v1  ;;  %v6299_v45 = vadd.f32 %v6188_v2, %v6031_v39  ;;  %v13678_v0 = vld [vmem:[#allocation112_spill] sm:$0xff]  ;;  %v13681_v1 = vld [vmem:[#allocation58_spill] sm:$0xff] }
 0x3ed   : > { %v8939_v7 = vpop.f32.mrf.mxu1  ;;  %v6552_v61 = vpop.f32.mrf.mxu0  ;;  %v5773_v20 = vadd.f32 %v13678_v0, %v13677_v59  ;;  %v13680_v30 = vld [vmem:[#allocation92_spill] sm:$0xff]  ;;  %v13698_v0 = vld [vmem:[#allocation94_spill] sm:$0xff] }
 0x3ee   : > { %6686 = vst.msk [vmem:[%s12862_s13 + $0x68] sm:$0xff] %vm346_vm0, %v6654_v57  ;;  %v6653_v18 = vadd.f32 %v6542_v35, %v6299_v45  ;;  %v6302_v29 = vadd.f32 %v8939_v7, %v6034_v19  ;;  %v5772_v39 = vadd.f32 %v13681_v1, %v13680_v30  ;;  %v6039_v57 = vadd.f32 %v13682_v42, %v5770_v27  ;;  %v13683_v7 = vld [vmem:[#allocation18_spill] sm:$0xff]  ;;  %v13701_v1 = vld [vmem:[#allocation96_spill] sm:$0xff]  ;;  %v13702_v42 = vld [vmem:[#allocation71_spill] sm:$0xff] }
 0x3ef   : > { %v6198_v37 = vpop.f32.mrf.mxu1  ;;  %v8992_v23 = vpop.f32.mrf.mxu0  ;;  %v13696_v27 = vld [vmem:[#allocation26_spill] sm:$0xff] }
 0x3f0   : > { %6685 = vst.msk [vmem:[%s12862_s13 + $0x60] sm:$0xff] %vm346_vm0, %v6653_v18  ;;  %v6656_v8 = vadd.f32 %v8989_v11, %v6302_v29  ;;  %v6301_v34 = vadd.f32 %v6198_v37, %v6033_v38  ;;  %v13685_v38 = vld [vmem:[#allocation106_spill] sm:$0xff] }
 0x3f1   : > { %v8942_v22 = vpop.f32.mrf.mxu1  ;;  %v6562_v54 = vpop.f32.mrf.mxu0  ;;  %v6042_v37 = vadd.f32 %v13685_v38, %v5773_v20  ;;  %v13699_v20 = vld [vmem:[#allocation36_spill] sm:$0xff] }
 0x3f2   : > { %6688 = vst.msk [vmem:[%s12862_s13 + $0x78] sm:$0xff] %vm346_vm0, %v6656_v8  ;;  %v6655_v6 = vadd.f32 %v6552_v61, %v6301_v34  ;;  %v6304_v55 = vadd.f32 %v8942_v22, %v6036_v5  ;;  %v13684_v61 = vld [vmem:[#allocation27_spill] sm:$0xff]  ;;  %v5774_v8 = vadd.f32 %v13687_v14, %v13686_v51  ;;  %v13688_v5 = vld [vmem:[#allocation110_spill] sm:$0xff] }
 0x3f3   : > { %v6208_v52 = vpop.f32.mrf.mxu1  ;;  %v8995_v10 = vpop.f32.mrf.mxu0  ;;  %v5775_v53 = vadd.f32 %v13684_v61, %v13683_v7  ;;  %v6041_v22 = vadd.f32 %v13688_v5, %v5772_v39  ;;  %v5781_v39 = vadd.f32 %v12846_v40, %v13701_v1  ;;  %v13703_v7 = vld [vmem:[#allocation98_spill] sm:$0xff] }
 0x3f4   : > { %6687 = vst.msk [vmem:[%s12862_s13 + $0x70] sm:$0xff] %vm346_vm0, %v6655_v6  ;;  %v6658_v4 = vadd.f32 %v8992_v23, %v6304_v55  ;;  %v6303_v47 = vadd.f32 %v6208_v52, %v6035_v56  ;;  %v5777_v6 = vadd.f32 %v13690_v9, %v13689_v36  ;;  %v13691_v56 = vld [vmem:[#allocation54_spill] sm:$0xff]  ;;  %v5780_v61 = vadd.f32 %v12851_v44, %v13703_v7 }
 0x3f5   : > { %v8945_v60 = vpop.f32.mrf.mxu1  ;;  %v6572_v26 = vpop.f32.mrf.mxu0  ;;  %v6044_v52 = vadd.f32 %v13691_v56, %v5775_v53 }
 0x3f6   : > { %6690 = vst.msk [vmem:[%s12862_s13 + $0x88] sm:$0xff] %vm346_vm0, %v6658_v4  ;;  %v6657_v41 = vadd.f32 %v6562_v54, %v6303_v47  ;;  %v6306_v62 = vadd.f32 %v8945_v60, %v6038_v25  ;;  %v5776_v4 = vadd.f32 %v13693_v32, %v13692_v33  ;;  %v13694_v25 = vld [vmem:[#allocation22_spill] sm:$0xff] }
 0x3f7   : > { %v6218_v21 = vpop.f32.mrf.mxu1  ;;  %v8998_v49 = vpop.f32.mrf.mxu0  ;;  %v6043_v60 = vadd.f32 %v13694_v25, %v5774_v8 }
 0x3f8   : > { %6689 = vst.msk [vmem:[%s12862_s13 + $0x80] sm:$0xff] %vm346_vm0, %v6657_v41  ;;  %v6660_v58 = vadd.f32 %v8995_v10, %v6306_v62  ;;  %v6305_v24 = vadd.f32 %v6218_v21, %v6037_v46  ;;  %v5779_v41 = vadd.f32 %v13696_v27, %v13695_v12  ;;  %v13697_v46 = vld [vmem:[#allocation29_spill] sm:$0xff] }
 0x3f9   : > { %v8948_v35 = vpop.f32.mrf.mxu1  ;;  %v6582_v28 = vpop.f32.mrf.mxu0  ;;  %v6046_v21 = vadd.f32 %v13697_v46, %v5777_v6 }
 0x3fa   : > { %6692 = vst.msk [vmem:[%s12862_s13 + $0x98] sm:$0xff] %vm346_vm0, %v6660_v58  ;;  %v6659_v2 = vadd.f32 %v6572_v26, %v6305_v24  ;;  %v6308_v11 = vadd.f32 %v8948_v35, %v6040_v63  ;;  %v5778_v58 = vadd.f32 %v13699_v20, %v13698_v0  ;;  %v13700_v63 = vld [vmem:[#allocation63_spill] sm:$0xff] }
 0x3fb   : > { %v6228_v45 = vpop.f32.mrf.mxu1  ;;  %v9001_v19 = vpop.f32.mrf.mxu0  ;;  %v6045_v35 = vadd.f32 %v13700_v63, %v5776_v4 }
 0x3fc   : > { %6691 = vst.msk [vmem:[%s12862_s13 + $0x90] sm:$0xff] %vm346_vm0, %v6659_v2  ;;  %v6662_v18 = vadd.f32 %v8998_v49, %v6308_v11  ;;  %v6307_v29 = vadd.f32 %v6228_v45, %v6039_v57  ;;  %v6048_v57 = vadd.f32 %v13702_v42, %v5779_v41 }
 0x3fd   : > { %v8951_v23 = vpop.f32.mrf.mxu1  ;;  %v6592_v43 = vpop.f32.mrf.mxu0 }
 0x3fe   : > { %6694 = vst.msk [vmem:[%s12862_s13 + $0xa8] sm:$0xff] %vm346_vm0, %v6662_v18  ;;  %v6661_v34 = vadd.f32 %v6582_v28, %v6307_v29  ;;  %v6310_v48 = vadd.f32 %v8951_v23, %v6042_v37  ;;  %v13704_v29 = vld [vmem:[#allocation19_spill] sm:$0xff]  ;;  %v13705_v37 = vld [vmem:[#allocation30_spill] sm:$0xff] }
 0x3ff   : > { %v6238_v54 = vpop.f32.mrf.mxu1  ;;  %v9004_v3 = vpop.f32.mrf.mxu0  ;;  %v6047_v38 = vadd.f32 %v13704_v29, %v5778_v58  ;;  %v6050_v23 = vadd.f32 %v13705_v37, %v5781_v39 }
 0x400   : > { %6693 = vst.msk [vmem:[%s12862_s13 + $0xa0] sm:$0xff] %vm346_vm0, %v6661_v34  ;;  %v6664_v55 = vadd.f32 %v9001_v19, %v6310_v48  ;;  %v6309_v13 = vadd.f32 %v6238_v54, %v6041_v22  ;;  %v13706_v34 = vld [vmem:[#allocation37_spill] sm:$0xff] }
 0x401   : > { %v8954_v10 = vpop.f32.mrf.mxu1  ;;  %v6602_v15 = vpop.f32.mrf.mxu0  ;;  %v6049_v44 = vadd.f32 %v13706_v34, %v5780_v61 }
 0x402   : > { %6696 = vst.msk [vmem:[%s12862_s13 + $0xb8] sm:$0xff] %vm346_vm0, %v6664_v55  ;;  %v6663_v47 = vadd.f32 %v6592_v43, %v6309_v13  ;;  %v6312_v50 = vadd.f32 %v8954_v10, %v6044_v52 }
 0x403   : > { %v6248_v26 = vpop.f32.mrf.mxu1  ;;  %v9007_v16 = vpop.f32.mrf.mxu0 }
 0x404   : > { %6695 = vst.msk [vmem:[%s12862_s13 + $0xb0] sm:$0xff] %vm346_vm0, %v6663_v47  ;;  %v6666_v62 = vadd.f32 %v9004_v3, %v6312_v50  ;;  %v6311_v17 = vadd.f32 %v6248_v26, %v6043_v60 }
 0x405   : > { %v8957_v49 = vpop.f32.mrf.mxu1  ;;  %v6612_v59 = vpop.f32.mrf.mxu0 }
 0x406   : > { %6698 = vst.msk [vmem:[%s12862_s13 + $0xc8] sm:$0xff] %vm346_vm0, %v6666_v62  ;;  %v6665_v24 = vadd.f32 %v6602_v15, %v6311_v17  ;;  %v6314_v31 = vadd.f32 %v8957_v49, %v6046_v21 }
 0x407   : > { %v6258_v28 = vpop.f32.mrf.mxu1  ;;  %v9010_v30 = vpop.f32.mrf.mxu0 }
 0x408   : > { %6697 = vst.msk [vmem:[%s12862_s13 + $0xc0] sm:$0xff] %vm346_vm0, %v6665_v24  ;;  %v6668_v2 = vadd.f32 %v9007_v16, %v6314_v31  ;;  %v6313_v11 = vadd.f32 %v6258_v28, %v6045_v35 }
 0x409   : > { %v8960_v45 = vpop.f32.mrf.mxu1  ;;  %v6622_v19 = vpop.f32.mrf.mxu0 }
 0x40a   : > { %6700 = vst.msk [vmem:[%s12862_s13 + $0xd8] sm:$0xff] %vm346_vm0, %v6668_v2  ;;  %v6667_v53 = vadd.f32 %v6612_v59, %v6313_v11  ;;  %v6316_v18 = vadd.f32 %v8960_v45, %v6048_v57 }
 0x40b   : > { %v6268_v40 = vpop.f32.mrf.mxu1  ;;  %v9013_v8 = vpop.f32.mrf.mxu0 }
 0x40c   : > { %6699 = vst.msk [vmem:[%s12862_s13 + $0xd0] sm:$0xff] %vm346_vm0, %v6667_v53  ;;  %v6670_v43 = vadd.f32 %v9010_v30, %v6316_v18  ;;  %v6315_v51 = vadd.f32 %v6268_v40, %v6047_v38 }
 0x40d   : > { %v8963_v14 = vpop.f32.mrf.mxu1  ;;  %v6632_v36 = vpop.f32.mrf.mxu0 }
 0x40e   : > { %6702 = vst.msk [vmem:[%s12862_s13 + $0xe8] sm:$0xff] %vm346_vm0, %v6670_v43  ;;  %v6669_v48 = vadd.f32 %v6622_v19, %v6315_v51  ;;  %v6318_v5 = vadd.f32 %v8963_v14, %v6050_v23 }
 0x40f   : > { %v6278_v22 = vpop.f32.mrf.mxu1 }
 0x410   : > { %6701 = vst.msk [vmem:[%s12862_s13 + $0xe0] sm:$0xff] %vm346_vm0, %v6669_v48  ;;  %v6672_v54 = vadd.f32 %v9013_v8, %v6318_v5  ;;  %v6317_v3 = vadd.f32 %v6278_v22, %v6049_v44 }
 0x412   : > { %6704 = vst.msk [vmem:[%s12862_s13 + $0xf8] sm:$0xff] %vm346_vm0, %v6672_v54  ;;  %v6671_v9 = vadd.f32 %v6632_v36, %v6317_v3 }
 0x414   : > { %6703 = vst.msk [vmem:[%s12862_s13 + $0xf0] sm:$0xff] %vm346_vm0, %v6671_v9 }
 0x415 PF: > { %s20_s30 = sadd.s32 1, %s9047_s30  }
 0x416   : > { %p17_p4 = scmp.ge.s32.totalorder %s20_s30, 4  }
 0x418   :  { %19 = sbr.rel (!%p17_p4) target bundleno = 1 (0x1), region = 114 }

</bundles_post_ra>
